<compile_context>
chip_gen: v5e
topology: v5e:2x2
jax: 0.10.0
libtpu: 0.0.40
codegen_flags: <defaults>
</compile_context>

<pallas_src>
import functools

import jax
import jax.numpy as jnp
from jax.experimental import pallas as pl
from jax.experimental.pallas import tpu as pltpu

INPUT_SIZE = 2
HIDDEN_SIZE = 32
OUTPUT_SIZE = 1
N_HIDDEN_MATMULS = 9                     # Linear(H, H) layers after Linear(2, H)
N_LAYERS = 2 + N_HIDDEN_MATMULS          # 11 Linear layers total


# ---------------------------------------------------------------------------
# Kernel
# ---------------------------------------------------------------------------
def _pinn_mlp_kernel(x_ref, w_ref, b_ref, out_ref, *, n_chains, hidden_dtype):
    """One feature-major batch tile of the PINN MLP forward.

    x_ref  : (2, TN)          coordinate tile ([x; t] rows)
    w_ref  : (11, H, H)       packed weights: [0]=w0 (cols 0:2), [1..9]=hidden,
                              [10]=wo^T stored in column 0
    b_ref  : (11, H, 1)       packed biases:  [0]=b0, [1..9]=hidden, [10,0,0]=bo
    out_ref: (1, TN)          prediction tile (feature-major)
    """
    tn = x_ref.shape[1]
    q = tn // n_chains
    h_dim = HIDDEN_SIZE

    # ---- Layer 0: Linear(2, H) + tanh, as a VPU outer product.  A K=2 MXU
    #      matmul wastes the systolic array and still pays push/drain latency.
    w0 = w_ref[0]                           # (H, H); only columns 0:2 non-zero
    w0x = w0[:, 0:1]                        # (H, 1) weight column for x coord
    w0t = w0[:, 1:2]                        # (H, 1) weight column for t coord
    b0 = jnp.broadcast_to(b_ref[0], (h_dim, q))   # hoisted bias broadcast

    chains = []
    for k in range(n_chains):
        xx = x_ref[0:1, k * q:(k + 1) * q]  # (1, q)
        tt = x_ref[1:2, k * q:(k + 1) * q]  # (1, q)
        h = jnp.tanh(w0x * xx + w0t * tt + b0)       # (H, q) f32
        chains.append(h.astype(hidden_dtype))

    # ---- Hidden layers 1..9: h = tanh(W @ h + b).  Chains are independent, so
    #      one chain's EUP tanh overlaps another chain's MXU matmul.  Bias
    #      broadcast hoisted once per layer (no CSE of broadcast_in_dim).
    for l in range(1, 1 + N_HIDDEN_MATMULS):
        w = w_ref[l].astype(hidden_dtype)                        # (H, H)
        b = jnp.broadcast_to(b_ref[l].astype(hidden_dtype), (h_dim, q))
        for k in range(n_chains):
            acc = jnp.dot(w, chains[k], preferred_element_type=jnp.float32)
            chains[k] = jnp.tanh(acc.astype(hidden_dtype) + b)

    # ---- Output layer Linear(H, 1): VPU multiply + sublane (XLU) reduction.
    #      An M=1 MXU matmul would use 1 of 128-256 rows and still pay a weight
    #      push + result drain per tile.
    wo = w_ref[N_LAYERS - 1][:, 0:1]        # (H, 1)  (torch wo^T in column 0)
    bo = b_ref[N_LAYERS - 1][0:1, :]        # (1, 1)
    for k in range(n_chains):
        h32 = chains[k].astype(jnp.float32)
        y = jnp.sum(wo * h32, axis=0, keepdims=True) + bo        # (1, q)
        out_ref[:, k * q:(k + 1) * q] = y   # lane-dense unmasked store


# ---------------------------------------------------------------------------
# Wrappers
# ---------------------------------------------------------------------------
def _detect_tpu():
    """Return (num_tensorcores_per_chip, bf16_vpu_eup_supported)."""
    try:
        kind = jax.devices()[0].device_kind.lower()
    except Exception:  # noqa: BLE001 - conservative fallback
        return 1, False
    bf16_ok = any(tag in kind for tag in ("v6", "v7", "7x"))   # v6e / v7x
    num_tc = 2 if ("v7" in kind or "7x" in kind) else 1        # v7x: 2 TCs/chip
    return num_tc, bf16_ok


def _choose_tile_n(n, num_cores, *, n_chains=4, cap=4096):
    """Adaptive batch tile: big enough to amortise per-step overhead, sized from
    cdiv(N, num_cores) so (a) a v7x chip gets >=2 grid steps to shard across its
    two TensorCores and (b) small N is not padded to a huge mostly-wasted tile."""
    quantum = 128 * n_chains                       # each chain stays lane-aligned
    per_core = (max(n, 1) + max(num_cores, 1) - 1) // max(num_cores, 1)
    tile = ((per_core + quantum - 1) // quantum) * quantum
    return max(quantum, min(cap, tile))


def _pack_params(params):
    """Pack torch-layout params into one (11,H,H) weight and one (11,H,1) bias."""
    h = HIDDEN_SIZE
    w = jnp.zeros((N_LAYERS, h, h), jnp.float32)
    w = w.at[0, :, :INPUT_SIZE].set(params["w0"])
    w = w.at[1:1 + N_HIDDEN_MATMULS].set(params["wh"])
    w = w.at[N_LAYERS - 1, :, 0].set(params["wo"][0])      # wo^T as column 0
    b = jnp.zeros((N_LAYERS, h, 1), jnp.float32)
    b = b.at[0].set(params["b0"])
    b = b.at[1:1 + N_HIDDEN_MATMULS].set(params["bh"])
    b = b.at[N_LAYERS - 1, 0, 0].set(params["bo"][0, 0])
    return w, b


@functools.partial(jax.jit, static_argnames=("tile_n", "n_chains", "hidden_dtype"))
def _pinn_forward_padded(x_fm, w_packed, b_packed, *, tile_n, n_chains,
                         hidden_dtype):
    n = x_fm.shape[1]
    assert tile_n % (128 * n_chains) == 0
    n_pad = ((n + tile_n - 1) // tile_n) * tile_n
    if n_pad != n:
        x_fm = jnp.pad(x_fm, ((0, 0), (0, n_pad - n)))

    kernel = functools.partial(_pinn_mlp_kernel, n_chains=n_chains,
                               hidden_dtype=hidden_dtype)
    # Small packed weights (~46 KB): whole-array constant-index blocks stay
    # VMEM-resident for the whole grid.
    full = lambda a: pl.BlockSpec(a.shape, lambda i: (0,) * a.ndim)  # noqa: E731

    out = pl.pallas_call(
        kernel,
        out_shape=jax.ShapeDtypeStruct((OUTPUT_SIZE, n_pad), jnp.float32),
        grid_spec=pltpu.PrefetchScalarGridSpec(
            num_scalar_prefetch=0,
            grid=(n_pad // tile_n,),
            in_specs=[
                pl.BlockSpec((INPUT_SIZE, tile_n), lambda i: (0, i)),
                full(w_packed),
                full(b_packed),
            ],
            out_specs=pl.BlockSpec((OUTPUT_SIZE, tile_n), lambda i: (0, i)),
        ),
        compiler_params=pltpu.CompilerParams(
            dimension_semantics=("parallel",)),   # shards steps across v7x TCs
    )(x_fm, w_packed, b_packed)
    return out[:, :n]


def pinn_forward_fm(x_fm, params, *, tile_n=None, hidden_dtype=None, n_chains=4):
    """Feature-major forward: x_fm (2, N) -> (1, N).  Preferred entry point —
    avoids wrapper-side whole-array transposes at training-scale N."""
    num_tc, bf16_ok = _detect_tpu()
    if hidden_dtype is None:
        # bf16 hidden path only where the VPU/EUP are bf16-native (v6e/v7x);
        # f32 on v5e and older (casts there would only add VPU work).
        hidden_dtype = jnp.bfloat16 if bf16_ok else jnp.float32
    if tile_n is None:
        tile_n = _choose_tile_n(x_fm.shape[1], num_tc, n_chains=n_chains)
    w_packed, b_packed = _pack_params(params)
    return _pinn_forward_padded(x_fm, w_packed, b_packed, tile_n=tile_n,
                                n_chains=n_chains, hidden_dtype=hidden_dtype)


def pinn_forward(x, params, **kwargs):
    """Batch-major convenience wrapper: x (N, 2) -> (N, 1).  Note: pays two
    whole-array transposes outside the kernel; prefer pinn_forward_fm."""
    return pinn_forward_fm(x.T, params, **kwargs).T


# ---------------------------------------------------------------------------
# Init + pure-JAX reference
# ---------------------------------------------------------------------------
def init_pinn_params(key, input_size=INPUT_SIZE, hidden_size=HIDDEN_SIZE,
                     output_size=OUTPUT_SIZE):
    """torch.nn.Linear-style init U(-1/sqrt(fan_in), +); torch (out, in) layout."""
    keys = jax.random.split(key, 2 * (2 + N_HIDDEN_MATMULS))
    ki = iter(keys)

    def linear(fan_in, fan_out):
        bound = 1.0 / jnp.sqrt(jnp.float32(fan_in))
        w = jax.random.uniform(next(ki), (fan_out, fan_in), jnp.float32,
                               -bound, bound)
        b = jax.random.uniform(next(ki), (fan_out, 1), jnp.float32,
                               -bound, bound)
        return w, b

    w0, b0 = linear(input_size, hidden_size)
    wh_list, bh_list = [], []
    for _ in range(N_HIDDEN_MATMULS):
        w, b = linear(hidden_size, hidden_size)
        wh_list.append(w)
        bh_list.append(b)
    wo, bo = linear(hidden_size, output_size)

    # c (wave-speed parameter) exists on the module but does not enter forward().
    return {
        "w0": w0, "b0": b0,
        "wh": jnp.stack(wh_list, axis=0),   # (9, H, H)
        "bh": jnp.stack(bh_list, axis=0),   # (9, H, 1)
        "wo": wo, "bo": bo,
        "c": jnp.array([1.0], dtype=jnp.float32),
    }


def pinn_forward_ref(x, params):
    """Pure-JAX reference (batch-major): x (N, 2) -> (N, 1)."""
    h = jnp.tanh(x @ params["w0"].T + params["b0"].T)
    for l in range(N_HIDDEN_MATMULS):
        h = jnp.tanh(h @ params["wh"][l].T + params["bh"][l].T)
    return h @ params["wo"].T + params["bo"].T


# ---------------------------------------------------------------------------
# Demo / correctness check
# ---------------------------------------------------------------------------
if __name__ == "__main__":
    key = jax.random.PRNGKey(0)
    pkey, xkey = jax.random.split(key)
    params = init_pinn_params(pkey)

    # Collocation points (x, t), kept feature-major (2, N) end-to-end so the
    # wrapper never emits a standalone whole-array transpose.  N deliberately
    # not a tile multiple to exercise the padding path.
    n = 1000
    x_fm = jax.random.uniform(xkey, (INPUT_SIZE, n), jnp.float32, -1.0, 1.0)

    ref = pinn_forward_ref(x_fm.T, params)                      # (N, 1)

    # 1) f32 path — runs on every TPU generation, tight tolerance.
    out_f32 = jax.block_until_ready(
        pinn_forward_fm(x_fm, params, hidden_dtype=jnp.float32))
    assert out_f32.shape == (OUTPUT_SIZE, n)
    err_f32 = float(jnp.max(jnp.abs(out_f32.T - ref)))
    assert err_f32 < 2e-4, err_f32

    # 2) Generation-adaptive path — bf16 hidden chain on v6e/v7x, f32 on v5e.
    num_tc, bf16_ok = _detect_tpu()
    try:
        out_auto = jax.block_until_ready(pinn_forward_fm(x_fm, params))
        auto_bf16 = bf16_ok
    except Exception:  # safety net: fall back to f32 if bf16 lowering is absent
        out_auto = jax.block_until_ready(
            pinn_forward_fm(x_fm, params, hidden_dtype=jnp.float32))
        auto_bf16 = False
    tol = 5e-2 if auto_bf16 else 2e-4
    err_auto = float(jnp.max(jnp.abs(out_auto.T - ref)))
    assert err_auto < tol, (err_auto, tol)

    # Batch-major convenience wrapper (same compiled kernel underneath).
    out_bm = jax.block_until_ready(
        pinn_forward(x_fm.T, params, hidden_dtype=jnp.float32))
    assert out_bm.shape == (n, OUTPUT_SIZE)

    # TODO(synk): residual_loss / total_loss need d2u/dx2, d2u/dt2 via autodiff
    # through the network; differentiating through pl.pallas_call requires a
    # custom_jvp/vjp on pinn_forward and is training-time machinery outside
    # this forward kernel (as are MSELoss / Adam).

    print("KERNEL_OK")
</pallas_src>

<mosaic_0001>
module attributes {stable_mosaic.version = 11 : i64} {
  func.func @_pinn_mlp_kernel(%arg0: i32, %arg1: memref<2x1024xf32, #tpu.memory_space<vmem>>, %arg2: memref<11x32x32xf32, #tpu.memory_space<vmem>>, %arg3: memref<11x32x1xf32, #tpu.memory_space<vmem>>, %arg4: memref<1x1024xf32, #tpu.memory_space<vmem>>) attributes {dimension_semantics = [#tpu.dimension_semantics<parallel>], iteration_bounds = array<i64: 1>, scalar_prefetch = 0 : i64, scratch_operands = 0 : i64, tpu.core_type = #tpu.core_type<tc>, window_params = [{transform_indices = @transform_0, window_bounds = array<i64: 2, 1024>}, {pipeline_mode = #tpu.pipeline_mode<synchronous>, transform_indices = @transform_1, window_bounds = array<i64: 11, 32, 32>}, {pipeline_mode = #tpu.pipeline_mode<synchronous>, transform_indices = @transform_2, window_bounds = array<i64: 11, 32, 1>}, {transform_indices = @transform_3, window_bounds = array<i64: 1, 1024>}]} {
    %c0 = arith.constant 0 : index
    %c0_0 = arith.constant 0 : index
    %c0_1 = arith.constant 0 : index
    %0 = vector.load %arg2[%c0, %c0_0, %c0_1] : memref<11x32x32xf32, #tpu.memory_space<vmem>>, vector<1x32x32xf32>
    %1 = vector.shape_cast %0 : vector<1x32x32xf32> to vector<32x32xf32>
    %2 = vector.extract_strided_slice %1 {offsets = [0, 0], sizes = [32, 1], strides = [1, 1]} : vector<32x32xf32> to vector<32x1xf32>
    %3 = vector.extract_strided_slice %1 {offsets = [0, 1], sizes = [32, 1], strides = [1, 1]} : vector<32x32xf32> to vector<32x1xf32>
    %c0_2 = arith.constant 0 : index
    %c0_3 = arith.constant 0 : index
    %c0_4 = arith.constant 0 : index
    %4 = vector.load %arg3[%c0_2, %c0_3, %c0_4] : memref<11x32x1xf32, #tpu.memory_space<vmem>>, vector<1x32x1xf32>
    %5 = vector.shape_cast %4 : vector<1x32x1xf32> to vector<32x1xf32>
    %6 = vector.shape_cast %5 : vector<32x1xf32> to vector<32x1xf32>
    %7 = vector.broadcast %6 : vector<32x1xf32> to vector<32x256xf32>
    %c0_5 = arith.constant 0 : index
    %c0_6 = arith.constant 0 : index
    %8 = vector.load %arg1[%c0_5, %c0_6] : memref<2x1024xf32, #tpu.memory_space<vmem>>, vector<1x256xf32>
    %c1 = arith.constant 1 : index
    %c0_7 = arith.constant 0 : index
    %9 = vector.load %arg1[%c1, %c0_7] : memref<2x1024xf32, #tpu.memory_space<vmem>>, vector<1x256xf32>
    %10 = vector.broadcast %2 : vector<32x1xf32> to vector<32x256xf32>
    %11 = vector.broadcast %8 : vector<1x256xf32> to vector<32x256xf32>
    %12 = arith.mulf %10, %11 : vector<32x256xf32>
    %13 = vector.broadcast %3 : vector<32x1xf32> to vector<32x256xf32>
    %14 = vector.broadcast %9 : vector<1x256xf32> to vector<32x256xf32>
    %15 = arith.mulf %13, %14 : vector<32x256xf32>
    %16 = arith.addf %12, %15 : vector<32x256xf32>
    %17 = arith.addf %16, %7 : vector<32x256xf32>
    %18 = math.tanh %17 : vector<32x256xf32>
    %c0_8 = arith.constant 0 : index
    %c256 = arith.constant 256 : index
    %19 = vector.load %arg1[%c0_8, %c256] : memref<2x1024xf32, #tpu.memory_space<vmem>>, vector<1x256xf32>
    %c1_9 = arith.constant 1 : index
    %c256_10 = arith.constant 256 : index
    %20 = vector.load %arg1[%c1_9, %c256_10] : memref<2x1024xf32, #tpu.memory_space<vmem>>, vector<1x256xf32>
    %21 = vector.broadcast %2 : vector<32x1xf32> to vector<32x256xf32>
    %22 = vector.broadcast %19 : vector<1x256xf32> to vector<32x256xf32>
    %23 = arith.mulf %21, %22 : vector<32x256xf32>
    %24 = vector.broadcast %3 : vector<32x1xf32> to vector<32x256xf32>
    %25 = vector.broadcast %20 : vector<1x256xf32> to vector<32x256xf32>
    %26 = arith.mulf %24, %25 : vector<32x256xf32>
    %27 = arith.addf %23, %26 : vector<32x256xf32>
    %28 = arith.addf %27, %7 : vector<32x256xf32>
    %29 = math.tanh %28 : vector<32x256xf32>
    %c0_11 = arith.constant 0 : index
    %c512 = arith.constant 512 : index
    %30 = vector.load %arg1[%c0_11, %c512] : memref<2x1024xf32, #tpu.memory_space<vmem>>, vector<1x256xf32>
    %c1_12 = arith.constant 1 : index
    %c512_13 = arith.constant 512 : index
    %31 = vector.load %arg1[%c1_12, %c512_13] : memref<2x1024xf32, #tpu.memory_space<vmem>>, vector<1x256xf32>
    %32 = vector.broadcast %2 : vector<32x1xf32> to vector<32x256xf32>
    %33 = vector.broadcast %30 : vector<1x256xf32> to vector<32x256xf32>
    %34 = arith.mulf %32, %33 : vector<32x256xf32>
    %35 = vector.broadcast %3 : vector<32x1xf32> to vector<32x256xf32>
    %36 = vector.broadcast %31 : vector<1x256xf32> to vector<32x256xf32>
    %37 = arith.mulf %35, %36 : vector<32x256xf32>
    %38 = arith.addf %34, %37 : vector<32x256xf32>
    %39 = arith.addf %38, %7 : vector<32x256xf32>
    %40 = math.tanh %39 : vector<32x256xf32>
    %c0_14 = arith.constant 0 : index
    %c768 = arith.constant 768 : index
    %41 = vector.load %arg1[%c0_14, %c768] : memref<2x1024xf32, #tpu.memory_space<vmem>>, vector<1x256xf32>
    %c1_15 = arith.constant 1 : index
    %c768_16 = arith.constant 768 : index
    %42 = vector.load %arg1[%c1_15, %c768_16] : memref<2x1024xf32, #tpu.memory_space<vmem>>, vector<1x256xf32>
    %43 = vector.broadcast %2 : vector<32x1xf32> to vector<32x256xf32>
    %44 = vector.broadcast %41 : vector<1x256xf32> to vector<32x256xf32>
    %45 = arith.mulf %43, %44 : vector<32x256xf32>
    %46 = vector.broadcast %3 : vector<32x1xf32> to vector<32x256xf32>
    %47 = vector.broadcast %42 : vector<1x256xf32> to vector<32x256xf32>
    %48 = arith.mulf %46, %47 : vector<32x256xf32>
    %49 = arith.addf %45, %48 : vector<32x256xf32>
    %50 = arith.addf %49, %7 : vector<32x256xf32>
    %51 = math.tanh %50 : vector<32x256xf32>
    %c1_17 = arith.constant 1 : index
    %c0_18 = arith.constant 0 : index
    %c0_19 = arith.constant 0 : index
    %52 = vector.load %arg2[%c1_17, %c0_18, %c0_19] : memref<11x32x32xf32, #tpu.memory_space<vmem>>, vector<1x32x32xf32>
    %53 = vector.shape_cast %52 : vector<1x32x32xf32> to vector<32x32xf32>
    %c1_20 = arith.constant 1 : index
    %c0_21 = arith.constant 0 : index
    %c0_22 = arith.constant 0 : index
    %54 = vector.load %arg3[%c1_20, %c0_21, %c0_22] : memref<11x32x1xf32, #tpu.memory_space<vmem>>, vector<1x32x1xf32>
    %55 = vector.shape_cast %54 : vector<1x32x1xf32> to vector<32x1xf32>
    %56 = vector.shape_cast %55 : vector<32x1xf32> to vector<32x1xf32>
    %57 = vector.broadcast %56 : vector<32x1xf32> to vector<32x256xf32>
    %cst = arith.constant dense<0.000000e+00> : vector<32x256xf32>
    %58 = tpu.matmul %53, %18, %cst {dimension_numbers = #tpu.dot_dimension_numbers<[1], [0], [0], [1], [0, 0, 1, 1], [], []>} : vector<32x32xf32>, vector<32x256xf32>, vector<32x256xf32> -> vector<32x256xf32>
    %59 = arith.addf %58, %57 : vector<32x256xf32>
    %60 = math.tanh %59 : vector<32x256xf32>
    %cst_23 = arith.constant dense<0.000000e+00> : vector<32x256xf32>
    %61 = tpu.matmul %53, %29, %cst_23 {dimension_numbers = #tpu.dot_dimension_numbers<[1], [0], [0], [1], [0, 0, 1, 1], [], []>} : vector<32x32xf32>, vector<32x256xf32>, vector<32x256xf32> -> vector<32x256xf32>
    %62 = arith.addf %61, %57 : vector<32x256xf32>
    %63 = math.tanh %62 : vector<32x256xf32>
    %cst_24 = arith.constant dense<0.000000e+00> : vector<32x256xf32>
    %64 = tpu.matmul %53, %40, %cst_24 {dimension_numbers = #tpu.dot_dimension_numbers<[1], [0], [0], [1], [0, 0, 1, 1], [], []>} : vector<32x32xf32>, vector<32x256xf32>, vector<32x256xf32> -> vector<32x256xf32>
    %65 = arith.addf %64, %57 : vector<32x256xf32>
    %66 = math.tanh %65 : vector<32x256xf32>
    %cst_25 = arith.constant dense<0.000000e+00> : vector<32x256xf32>
    %67 = tpu.matmul %53, %51, %cst_25 {dimension_numbers = #tpu.dot_dimension_numbers<[1], [0], [0], [1], [0, 0, 1, 1], [], []>} : vector<32x32xf32>, vector<32x256xf32>, vector<32x256xf32> -> vector<32x256xf32>
    %68 = arith.addf %67, %57 : vector<32x256xf32>
    %69 = math.tanh %68 : vector<32x256xf32>
    %c2 = arith.constant 2 : index
    %c0_26 = arith.constant 0 : index
    %c0_27 = arith.constant 0 : index
    %70 = vector.load %arg2[%c2, %c0_26, %c0_27] : memref<11x32x32xf32, #tpu.memory_space<vmem>>, vector<1x32x32xf32>
    %71 = vector.shape_cast %70 : vector<1x32x32xf32> to vector<32x32xf32>
    %c2_28 = arith.constant 2 : index
    %c0_29 = arith.constant 0 : index
    %c0_30 = arith.constant 0 : index
    %72 = vector.load %arg3[%c2_28, %c0_29, %c0_30] : memref<11x32x1xf32, #tpu.memory_space<vmem>>, vector<1x32x1xf32>
    %73 = vector.shape_cast %72 : vector<1x32x1xf32> to vector<32x1xf32>
    %74 = vector.shape_cast %73 : vector<32x1xf32> to vector<32x1xf32>
    %75 = vector.broadcast %74 : vector<32x1xf32> to vector<32x256xf32>
    %cst_31 = arith.constant dense<0.000000e+00> : vector<32x256xf32>
    %76 = tpu.matmul %71, %60, %cst_31 {dimension_numbers = #tpu.dot_dimension_numbers<[1], [0], [0], [1], [0, 0, 1, 1], [], []>} : vector<32x32xf32>, vector<32x256xf32>, vector<32x256xf32> -> vector<32x256xf32>
    %77 = arith.addf %76, %75 : vector<32x256xf32>
    %78 = math.tanh %77 : vector<32x256xf32>
    %cst_32 = arith.constant dense<0.000000e+00> : vector<32x256xf32>
    %79 = tpu.matmul %71, %63, %cst_32 {dimension_numbers = #tpu.dot_dimension_numbers<[1], [0], [0], [1], [0, 0, 1, 1], [], []>} : vector<32x32xf32>, vector<32x256xf32>, vector<32x256xf32> -> vector<32x256xf32>
    %80 = arith.addf %79, %75 : vector<32x256xf32>
    %81 = math.tanh %80 : vector<32x256xf32>
    %cst_33 = arith.constant dense<0.000000e+00> : vector<32x256xf32>
    %82 = tpu.matmul %71, %66, %cst_33 {dimension_numbers = #tpu.dot_dimension_numbers<[1], [0], [0], [1], [0, 0, 1, 1], [], []>} : vector<32x32xf32>, vector<32x256xf32>, vector<32x256xf32> -> vector<32x256xf32>
    %83 = arith.addf %82, %75 : vector<32x256xf32>
    %84 = math.tanh %83 : vector<32x256xf32>
    %cst_34 = arith.constant dense<0.000000e+00> : vector<32x256xf32>
    %85 = tpu.matmul %71, %69, %cst_34 {dimension_numbers = #tpu.dot_dimension_numbers<[1], [0], [0], [1], [0, 0, 1, 1], [], []>} : vector<32x32xf32>, vector<32x256xf32>, vector<32x256xf32> -> vector<32x256xf32>
    %86 = arith.addf %85, %75 : vector<32x256xf32>
    %87 = math.tanh %86 : vector<32x256xf32>
    %c3 = arith.constant 3 : index
    %c0_35 = arith.constant 0 : index
    %c0_36 = arith.constant 0 : index
    %88 = vector.load %arg2[%c3, %c0_35, %c0_36] : memref<11x32x32xf32, #tpu.memory_space<vmem>>, vector<1x32x32xf32>
    %89 = vector.shape_cast %88 : vector<1x32x32xf32> to vector<32x32xf32>
    %c3_37 = arith.constant 3 : index
    %c0_38 = arith.constant 0 : index
    %c0_39 = arith.constant 0 : index
    %90 = vector.load %arg3[%c3_37, %c0_38, %c0_39] : memref<11x32x1xf32, #tpu.memory_space<vmem>>, vector<1x32x1xf32>
    %91 = vector.shape_cast %90 : vector<1x32x1xf32> to vector<32x1xf32>
    %92 = vector.shape_cast %91 : vector<32x1xf32> to vector<32x1xf32>
    %93 = vector.broadcast %92 : vector<32x1xf32> to vector<32x256xf32>
    %cst_40 = arith.constant dense<0.000000e+00> : vector<32x256xf32>
    %94 = tpu.matmul %89, %78, %cst_40 {dimension_numbers = #tpu.dot_dimension_numbers<[1], [0], [0], [1], [0, 0, 1, 1], [], []>} : vector<32x32xf32>, vector<32x256xf32>, vector<32x256xf32> -> vector<32x256xf32>
    %95 = arith.addf %94, %93 : vector<32x256xf32>
    %96 = math.tanh %95 : vector<32x256xf32>
    %cst_41 = arith.constant dense<0.000000e+00> : vector<32x256xf32>
    %97 = tpu.matmul %89, %81, %cst_41 {dimension_numbers = #tpu.dot_dimension_numbers<[1], [0], [0], [1], [0, 0, 1, 1], [], []>} : vector<32x32xf32>, vector<32x256xf32>, vector<32x256xf32> -> vector<32x256xf32>
    %98 = arith.addf %97, %93 : vector<32x256xf32>
    %99 = math.tanh %98 : vector<32x256xf32>
    %cst_42 = arith.constant dense<0.000000e+00> : vector<32x256xf32>
    %100 = tpu.matmul %89, %84, %cst_42 {dimension_numbers = #tpu.dot_dimension_numbers<[1], [0], [0], [1], [0, 0, 1, 1], [], []>} : vector<32x32xf32>, vector<32x256xf32>, vector<32x256xf32> -> vector<32x256xf32>
    %101 = arith.addf %100, %93 : vector<32x256xf32>
    %102 = math.tanh %101 : vector<32x256xf32>
    %cst_43 = arith.constant dense<0.000000e+00> : vector<32x256xf32>
    %103 = tpu.matmul %89, %87, %cst_43 {dimension_numbers = #tpu.dot_dimension_numbers<[1], [0], [0], [1], [0, 0, 1, 1], [], []>} : vector<32x32xf32>, vector<32x256xf32>, vector<32x256xf32> -> vector<32x256xf32>
    %104 = arith.addf %103, %93 : vector<32x256xf32>
    %105 = math.tanh %104 : vector<32x256xf32>
    %c4 = arith.constant 4 : index
    %c0_44 = arith.constant 0 : index
    %c0_45 = arith.constant 0 : index
    %106 = vector.load %arg2[%c4, %c0_44, %c0_45] : memref<11x32x32xf32, #tpu.memory_space<vmem>>, vector<1x32x32xf32>
    %107 = vector.shape_cast %106 : vector<1x32x32xf32> to vector<32x32xf32>
    %c4_46 = arith.constant 4 : index
    %c0_47 = arith.constant 0 : index
    %c0_48 = arith.constant 0 : index
    %108 = vector.load %arg3[%c4_46, %c0_47, %c0_48] : memref<11x32x1xf32, #tpu.memory_space<vmem>>, vector<1x32x1xf32>
    %109 = vector.shape_cast %108 : vector<1x32x1xf32> to vector<32x1xf32>
    %110 = vector.shape_cast %109 : vector<32x1xf32> to vector<32x1xf32>
    %111 = vector.broadcast %110 : vector<32x1xf32> to vector<32x256xf32>
    %cst_49 = arith.constant dense<0.000000e+00> : vector<32x256xf32>
    %112 = tpu.matmul %107, %96, %cst_49 {dimension_numbers = #tpu.dot_dimension_numbers<[1], [0], [0], [1], [0, 0, 1, 1], [], []>} : vector<32x32xf32>, vector<32x256xf32>, vector<32x256xf32> -> vector<32x256xf32>
    %113 = arith.addf %112, %111 : vector<32x256xf32>
    %114 = math.tanh %113 : vector<32x256xf32>
    %cst_50 = arith.constant dense<0.000000e+00> : vector<32x256xf32>
    %115 = tpu.matmul %107, %99, %cst_50 {dimension_numbers = #tpu.dot_dimension_numbers<[1], [0], [0], [1], [0, 0, 1, 1], [], []>} : vector<32x32xf32>, vector<32x256xf32>, vector<32x256xf32> -> vector<32x256xf32>
    %116 = arith.addf %115, %111 : vector<32x256xf32>
    %117 = math.tanh %116 : vector<32x256xf32>
    %cst_51 = arith.constant dense<0.000000e+00> : vector<32x256xf32>
    %118 = tpu.matmul %107, %102, %cst_51 {dimension_numbers = #tpu.dot_dimension_numbers<[1], [0], [0], [1], [0, 0, 1, 1], [], []>} : vector<32x32xf32>, vector<32x256xf32>, vector<32x256xf32> -> vector<32x256xf32>
    %119 = arith.addf %118, %111 : vector<32x256xf32>
    %120 = math.tanh %119 : vector<32x256xf32>
    %cst_52 = arith.constant dense<0.000000e+00> : vector<32x256xf32>
    %121 = tpu.matmul %107, %105, %cst_52 {dimension_numbers = #tpu.dot_dimension_numbers<[1], [0], [0], [1], [0, 0, 1, 1], [], []>} : vector<32x32xf32>, vector<32x256xf32>, vector<32x256xf32> -> vector<32x256xf32>
    %122 = arith.addf %121, %111 : vector<32x256xf32>
    %123 = math.tanh %122 : vector<32x256xf32>
    %c5 = arith.constant 5 : index
    %c0_53 = arith.constant 0 : index
    %c0_54 = arith.constant 0 : index
    %124 = vector.load %arg2[%c5, %c0_53, %c0_54] : memref<11x32x32xf32, #tpu.memory_space<vmem>>, vector<1x32x32xf32>
    %125 = vector.shape_cast %124 : vector<1x32x32xf32> to vector<32x32xf32>
    %c5_55 = arith.constant 5 : index
    %c0_56 = arith.constant 0 : index
    %c0_57 = arith.constant 0 : index
    %126 = vector.load %arg3[%c5_55, %c0_56, %c0_57] : memref<11x32x1xf32, #tpu.memory_space<vmem>>, vector<1x32x1xf32>
    %127 = vector.shape_cast %126 : vector<1x32x1xf32> to vector<32x1xf32>
    %128 = vector.shape_cast %127 : vector<32x1xf32> to vector<32x1xf32>
    %129 = vector.broadcast %128 : vector<32x1xf32> to vector<32x256xf32>
    %cst_58 = arith.constant dense<0.000000e+00> : vector<32x256xf32>
    %130 = tpu.matmul %125, %114, %cst_58 {dimension_numbers = #tpu.dot_dimension_numbers<[1], [0], [0], [1], [0, 0, 1, 1], [], []>} : vector<32x32xf32>, vector<32x256xf32>, vector<32x256xf32> -> vector<32x256xf32>
    %131 = arith.addf %130, %129 : vector<32x256xf32>
    %132 = math.tanh %131 : vector<32x256xf32>
    %cst_59 = arith.constant dense<0.000000e+00> : vector<32x256xf32>
    %133 = tpu.matmul %125, %117, %cst_59 {dimension_numbers = #tpu.dot_dimension_numbers<[1], [0], [0], [1], [0, 0, 1, 1], [], []>} : vector<32x32xf32>, vector<32x256xf32>, vector<32x256xf32> -> vector<32x256xf32>
    %134 = arith.addf %133, %129 : vector<32x256xf32>
    %135 = math.tanh %134 : vector<32x256xf32>
    %cst_60 = arith.constant dense<0.000000e+00> : vector<32x256xf32>
    %136 = tpu.matmul %125, %120, %cst_60 {dimension_numbers = #tpu.dot_dimension_numbers<[1], [0], [0], [1], [0, 0, 1, 1], [], []>} : vector<32x32xf32>, vector<32x256xf32>, vector<32x256xf32> -> vector<32x256xf32>
    %137 = arith.addf %136, %129 : vector<32x256xf32>
    %138 = math.tanh %137 : vector<32x256xf32>
    %cst_61 = arith.constant dense<0.000000e+00> : vector<32x256xf32>
    %139 = tpu.matmul %125, %123, %cst_61 {dimension_numbers = #tpu.dot_dimension_numbers<[1], [0], [0], [1], [0, 0, 1, 1], [], []>} : vector<32x32xf32>, vector<32x256xf32>, vector<32x256xf32> -> vector<32x256xf32>
    %140 = arith.addf %139, %129 : vector<32x256xf32>
    %141 = math.tanh %140 : vector<32x256xf32>
    %c6 = arith.constant 6 : index
    %c0_62 = arith.constant 0 : index
    %c0_63 = arith.constant 0 : index
    %142 = vector.load %arg2[%c6, %c0_62, %c0_63] : memref<11x32x32xf32, #tpu.memory_space<vmem>>, vector<1x32x32xf32>
    %143 = vector.shape_cast %142 : vector<1x32x32xf32> to vector<32x32xf32>
    %c6_64 = arith.constant 6 : index
    %c0_65 = arith.constant 0 : index
    %c0_66 = arith.constant 0 : index
    %144 = vector.load %arg3[%c6_64, %c0_65, %c0_66] : memref<11x32x1xf32, #tpu.memory_space<vmem>>, vector<1x32x1xf32>
    %145 = vector.shape_cast %144 : vector<1x32x1xf32> to vector<32x1xf32>
    %146 = vector.shape_cast %145 : vector<32x1xf32> to vector<32x1xf32>
    %147 = vector.broadcast %146 : vector<32x1xf32> to vector<32x256xf32>
    %cst_67 = arith.constant dense<0.000000e+00> : vector<32x256xf32>
    %148 = tpu.matmul %143, %132, %cst_67 {dimension_numbers = #tpu.dot_dimension_numbers<[1], [0], [0], [1], [0, 0, 1, 1], [], []>} : vector<32x32xf32>, vector<32x256xf32>, vector<32x256xf32> -> vector<32x256xf32>
    %149 = arith.addf %148, %147 : vector<32x256xf32>
    %150 = math.tanh %149 : vector<32x256xf32>
    %cst_68 = arith.constant dense<0.000000e+00> : vector<32x256xf32>
    %151 = tpu.matmul %143, %135, %cst_68 {dimension_numbers = #tpu.dot_dimension_numbers<[1], [0], [0], [1], [0, 0, 1, 1], [], []>} : vector<32x32xf32>, vector<32x256xf32>, vector<32x256xf32> -> vector<32x256xf32>
    %152 = arith.addf %151, %147 : vector<32x256xf32>
    %153 = math.tanh %152 : vector<32x256xf32>
    %cst_69 = arith.constant dense<0.000000e+00> : vector<32x256xf32>
    %154 = tpu.matmul %143, %138, %cst_69 {dimension_numbers = #tpu.dot_dimension_numbers<[1], [0], [0], [1], [0, 0, 1, 1], [], []>} : vector<32x32xf32>, vector<32x256xf32>, vector<32x256xf32> -> vector<32x256xf32>
    %155 = arith.addf %154, %147 : vector<32x256xf32>
    %156 = math.tanh %155 : vector<32x256xf32>
    %cst_70 = arith.constant dense<0.000000e+00> : vector<32x256xf32>
    %157 = tpu.matmul %143, %141, %cst_70 {dimension_numbers = #tpu.dot_dimension_numbers<[1], [0], [0], [1], [0, 0, 1, 1], [], []>} : vector<32x32xf32>, vector<32x256xf32>, vector<32x256xf32> -> vector<32x256xf32>
    %158 = arith.addf %157, %147 : vector<32x256xf32>
    %159 = math.tanh %158 : vector<32x256xf32>
    %c7 = arith.constant 7 : index
    %c0_71 = arith.constant 0 : index
    %c0_72 = arith.constant 0 : index
    %160 = vector.load %arg2[%c7, %c0_71, %c0_72] : memref<11x32x32xf32, #tpu.memory_space<vmem>>, vector<1x32x32xf32>
    %161 = vector.shape_cast %160 : vector<1x32x32xf32> to vector<32x32xf32>
    %c7_73 = arith.constant 7 : index
    %c0_74 = arith.constant 0 : index
    %c0_75 = arith.constant 0 : index
    %162 = vector.load %arg3[%c7_73, %c0_74, %c0_75] : memref<11x32x1xf32, #tpu.memory_space<vmem>>, vector<1x32x1xf32>
    %163 = vector.shape_cast %162 : vector<1x32x1xf32> to vector<32x1xf32>
    %164 = vector.shape_cast %163 : vector<32x1xf32> to vector<32x1xf32>
    %165 = vector.broadcast %164 : vector<32x1xf32> to vector<32x256xf32>
    %cst_76 = arith.constant dense<0.000000e+00> : vector<32x256xf32>
    %166 = tpu.matmul %161, %150, %cst_76 {dimension_numbers = #tpu.dot_dimension_numbers<[1], [0], [0], [1], [0, 0, 1, 1], [], []>} : vector<32x32xf32>, vector<32x256xf32>, vector<32x256xf32> -> vector<32x256xf32>
    %167 = arith.addf %166, %165 : vector<32x256xf32>
    %168 = math.tanh %167 : vector<32x256xf32>
    %cst_77 = arith.constant dense<0.000000e+00> : vector<32x256xf32>
    %169 = tpu.matmul %161, %153, %cst_77 {dimension_numbers = #tpu.dot_dimension_numbers<[1], [0], [0], [1], [0, 0, 1, 1], [], []>} : vector<32x32xf32>, vector<32x256xf32>, vector<32x256xf32> -> vector<32x256xf32>
    %170 = arith.addf %169, %165 : vector<32x256xf32>
    %171 = math.tanh %170 : vector<32x256xf32>
    %cst_78 = arith.constant dense<0.000000e+00> : vector<32x256xf32>
    %172 = tpu.matmul %161, %156, %cst_78 {dimension_numbers = #tpu.dot_dimension_numbers<[1], [0], [0], [1], [0, 0, 1, 1], [], []>} : vector<32x32xf32>, vector<32x256xf32>, vector<32x256xf32> -> vector<32x256xf32>
    %173 = arith.addf %172, %165 : vector<32x256xf32>
    %174 = math.tanh %173 : vector<32x256xf32>
    %cst_79 = arith.constant dense<0.000000e+00> : vector<32x256xf32>
    %175 = tpu.matmul %161, %159, %cst_79 {dimension_numbers = #tpu.dot_dimension_numbers<[1], [0], [0], [1], [0, 0, 1, 1], [], []>} : vector<32x32xf32>, vector<32x256xf32>, vector<32x256xf32> -> vector<32x256xf32>
    %176 = arith.addf %175, %165 : vector<32x256xf32>
    %177 = math.tanh %176 : vector<32x256xf32>
    %c8 = arith.constant 8 : index
    %c0_80 = arith.constant 0 : index
    %c0_81 = arith.constant 0 : index
    %178 = vector.load %arg2[%c8, %c0_80, %c0_81] : memref<11x32x32xf32, #tpu.memory_space<vmem>>, vector<1x32x32xf32>
    %179 = vector.shape_cast %178 : vector<1x32x32xf32> to vector<32x32xf32>
    %c8_82 = arith.constant 8 : index
    %c0_83 = arith.constant 0 : index
    %c0_84 = arith.constant 0 : index
    %180 = vector.load %arg3[%c8_82, %c0_83, %c0_84] : memref<11x32x1xf32, #tpu.memory_space<vmem>>, vector<1x32x1xf32>
    %181 = vector.shape_cast %180 : vector<1x32x1xf32> to vector<32x1xf32>
    %182 = vector.shape_cast %181 : vector<32x1xf32> to vector<32x1xf32>
    %183 = vector.broadcast %182 : vector<32x1xf32> to vector<32x256xf32>
    %cst_85 = arith.constant dense<0.000000e+00> : vector<32x256xf32>
    %184 = tpu.matmul %179, %168, %cst_85 {dimension_numbers = #tpu.dot_dimension_numbers<[1], [0], [0], [1], [0, 0, 1, 1], [], []>} : vector<32x32xf32>, vector<32x256xf32>, vector<32x256xf32> -> vector<32x256xf32>
    %185 = arith.addf %184, %183 : vector<32x256xf32>
    %186 = math.tanh %185 : vector<32x256xf32>
    %cst_86 = arith.constant dense<0.000000e+00> : vector<32x256xf32>
    %187 = tpu.matmul %179, %171, %cst_86 {dimension_numbers = #tpu.dot_dimension_numbers<[1], [0], [0], [1], [0, 0, 1, 1], [], []>} : vector<32x32xf32>, vector<32x256xf32>, vector<32x256xf32> -> vector<32x256xf32>
    %188 = arith.addf %187, %183 : vector<32x256xf32>
    %189 = math.tanh %188 : vector<32x256xf32>
    %cst_87 = arith.constant dense<0.000000e+00> : vector<32x256xf32>
    %190 = tpu.matmul %179, %174, %cst_87 {dimension_numbers = #tpu.dot_dimension_numbers<[1], [0], [0], [1], [0, 0, 1, 1], [], []>} : vector<32x32xf32>, vector<32x256xf32>, vector<32x256xf32> -> vector<32x256xf32>
    %191 = arith.addf %190, %183 : vector<32x256xf32>
    %192 = math.tanh %191 : vector<32x256xf32>
    %cst_88 = arith.constant dense<0.000000e+00> : vector<32x256xf32>
    %193 = tpu.matmul %179, %177, %cst_88 {dimension_numbers = #tpu.dot_dimension_numbers<[1], [0], [0], [1], [0, 0, 1, 1], [], []>} : vector<32x32xf32>, vector<32x256xf32>, vector<32x256xf32> -> vector<32x256xf32>
    %194 = arith.addf %193, %183 : vector<32x256xf32>
    %195 = math.tanh %194 : vector<32x256xf32>
    %c9 = arith.constant 9 : index
    %c0_89 = arith.constant 0 : index
    %c0_90 = arith.constant 0 : index
    %196 = vector.load %arg2[%c9, %c0_89, %c0_90] : memref<11x32x32xf32, #tpu.memory_space<vmem>>, vector<1x32x32xf32>
    %197 = vector.shape_cast %196 : vector<1x32x32xf32> to vector<32x32xf32>
    %c9_91 = arith.constant 9 : index
    %c0_92 = arith.constant 0 : index
    %c0_93 = arith.constant 0 : index
    %198 = vector.load %arg3[%c9_91, %c0_92, %c0_93] : memref<11x32x1xf32, #tpu.memory_space<vmem>>, vector<1x32x1xf32>
    %199 = vector.shape_cast %198 : vector<1x32x1xf32> to vector<32x1xf32>
    %200 = vector.shape_cast %199 : vector<32x1xf32> to vector<32x1xf32>
    %201 = vector.broadcast %200 : vector<32x1xf32> to vector<32x256xf32>
    %cst_94 = arith.constant dense<0.000000e+00> : vector<32x256xf32>
    %202 = tpu.matmul %197, %186, %cst_94 {dimension_numbers = #tpu.dot_dimension_numbers<[1], [0], [0], [1], [0, 0, 1, 1], [], []>} : vector<32x32xf32>, vector<32x256xf32>, vector<32x256xf32> -> vector<32x256xf32>
    %203 = arith.addf %202, %201 : vector<32x256xf32>
    %204 = math.tanh %203 : vector<32x256xf32>
    %cst_95 = arith.constant dense<0.000000e+00> : vector<32x256xf32>
    %205 = tpu.matmul %197, %189, %cst_95 {dimension_numbers = #tpu.dot_dimension_numbers<[1], [0], [0], [1], [0, 0, 1, 1], [], []>} : vector<32x32xf32>, vector<32x256xf32>, vector<32x256xf32> -> vector<32x256xf32>
    %206 = arith.addf %205, %201 : vector<32x256xf32>
    %207 = math.tanh %206 : vector<32x256xf32>
    %cst_96 = arith.constant dense<0.000000e+00> : vector<32x256xf32>
    %208 = tpu.matmul %197, %192, %cst_96 {dimension_numbers = #tpu.dot_dimension_numbers<[1], [0], [0], [1], [0, 0, 1, 1], [], []>} : vector<32x32xf32>, vector<32x256xf32>, vector<32x256xf32> -> vector<32x256xf32>
    %209 = arith.addf %208, %201 : vector<32x256xf32>
    %210 = math.tanh %209 : vector<32x256xf32>
    %cst_97 = arith.constant dense<0.000000e+00> : vector<32x256xf32>
    %211 = tpu.matmul %197, %195, %cst_97 {dimension_numbers = #tpu.dot_dimension_numbers<[1], [0], [0], [1], [0, 0, 1, 1], [], []>} : vector<32x32xf32>, vector<32x256xf32>, vector<32x256xf32> -> vector<32x256xf32>
    %212 = arith.addf %211, %201 : vector<32x256xf32>
    %213 = math.tanh %212 : vector<32x256xf32>
    %c10 = arith.constant 10 : index
    %c0_98 = arith.constant 0 : index
    %c0_99 = arith.constant 0 : index
    %214 = vector.load %arg2[%c10, %c0_98, %c0_99] : memref<11x32x32xf32, #tpu.memory_space<vmem>>, vector<1x32x32xf32>
    %215 = vector.shape_cast %214 : vector<1x32x32xf32> to vector<32x32xf32>
    %216 = vector.extract_strided_slice %215 {offsets = [0, 0], sizes = [32, 1], strides = [1, 1]} : vector<32x32xf32> to vector<32x1xf32>
    %c10_100 = arith.constant 10 : index
    %c0_101 = arith.constant 0 : index
    %c0_102 = arith.constant 0 : index
    %217 = vector.load %arg3[%c10_100, %c0_101, %c0_102] : memref<11x32x1xf32, #tpu.memory_space<vmem>>, vector<1x32x1xf32>
    %218 = vector.shape_cast %217 : vector<1x32x1xf32> to vector<32x1xf32>
    %219 = vector.extract_strided_slice %218 {offsets = [0, 0], sizes = [1, 1], strides = [1, 1]} : vector<32x1xf32> to vector<1x1xf32>
    %220 = vector.broadcast %216 : vector<32x1xf32> to vector<32x256xf32>
    %221 = arith.mulf %220, %204 : vector<32x256xf32>
    %cst_103 = arith.constant dense<0.000000e+00> : vector<256xf32>
    %222 = vector.multi_reduction <add>, %221, %cst_103 [0] : vector<32x256xf32> to vector<256xf32>
    %223 = vector.shape_cast %222 : vector<256xf32> to vector<1x256xf32>
    %224 = vector.broadcast %219 : vector<1x1xf32> to vector<1x256xf32>
    %225 = arith.addf %223, %224 : vector<1x256xf32>
    %c0_104 = arith.constant 0 : index
    %c0_105 = arith.constant 0 : index
    %226 = vector.load %arg4[%c0_104, %c0_105] : memref<1x1024xf32, #tpu.memory_space<vmem>>, vector<1x256xf32>
    tpu.vector_store %arg4[%c0_104, %c0_105], %225 {strides = array<i32>} : memref<1x1024xf32, #tpu.memory_space<vmem>>, vector<1x256xf32>,
    %227 = vector.broadcast %216 : vector<32x1xf32> to vector<32x256xf32>
    %228 = arith.mulf %227, %207 : vector<32x256xf32>
    %cst_106 = arith.constant dense<0.000000e+00> : vector<256xf32>
    %229 = vector.multi_reduction <add>, %228, %cst_106 [0] : vector<32x256xf32> to vector<256xf32>
    %230 = vector.shape_cast %229 : vector<256xf32> to vector<1x256xf32>
    %231 = vector.broadcast %219 : vector<1x1xf32> to vector<1x256xf32>
    %232 = arith.addf %230, %231 : vector<1x256xf32>
    %c0_107 = arith.constant 0 : index
    %c256_108 = arith.constant 256 : index
    %233 = vector.load %arg4[%c0_107, %c256_108] : memref<1x1024xf32, #tpu.memory_space<vmem>>, vector<1x256xf32>
    tpu.vector_store %arg4[%c0_107, %c256_108], %232 {strides = array<i32>} : memref<1x1024xf32, #tpu.memory_space<vmem>>, vector<1x256xf32>,
    %234 = vector.broadcast %216 : vector<32x1xf32> to vector<32x256xf32>
    %235 = arith.mulf %234, %210 : vector<32x256xf32>
    %cst_109 = arith.constant dense<0.000000e+00> : vector<256xf32>
    %236 = vector.multi_reduction <add>, %235, %cst_109 [0] : vector<32x256xf32> to vector<256xf32>
    %237 = vector.shape_cast %236 : vector<256xf32> to vector<1x256xf32>
    %238 = vector.broadcast %219 : vector<1x1xf32> to vector<1x256xf32>
    %239 = arith.addf %237, %238 : vector<1x256xf32>
    %c0_110 = arith.constant 0 : index
    %c512_111 = arith.constant 512 : index
    %240 = vector.load %arg4[%c0_110, %c512_111] : memref<1x1024xf32, #tpu.memory_space<vmem>>, vector<1x256xf32>
    tpu.vector_store %arg4[%c0_110, %c512_111], %239 {strides = array<i32>} : memref<1x1024xf32, #tpu.memory_space<vmem>>, vector<1x256xf32>,
    %241 = vector.broadcast %216 : vector<32x1xf32> to vector<32x256xf32>
    %242 = arith.mulf %241, %213 : vector<32x256xf32>
    %cst_112 = arith.constant dense<0.000000e+00> : vector<256xf32>
    %243 = vector.multi_reduction <add>, %242, %cst_112 [0] : vector<32x256xf32> to vector<256xf32>
    %244 = vector.shape_cast %243 : vector<256xf32> to vector<1x256xf32>
    %245 = vector.broadcast %219 : vector<1x1xf32> to vector<1x256xf32>
    %246 = arith.addf %244, %245 : vector<1x256xf32>
    %c0_113 = arith.constant 0 : index
    %c768_114 = arith.constant 768 : index
    %247 = vector.load %arg4[%c0_113, %c768_114] : memref<1x1024xf32, #tpu.memory_space<vmem>>, vector<1x256xf32>
    tpu.vector_store %arg4[%c0_113, %c768_114], %246 {strides = array<i32>} : memref<1x1024xf32, #tpu.memory_space<vmem>>, vector<1x256xf32>,
    return
  }
  func.func @transform_0(%arg0: i32) -> (i32, i32) {
    %c0_i32 = arith.constant 0 : i32
    %c0_i32_0 = arith.constant 0 : i32
    return %c0_i32, %arg0 : i32, i32
  }
  func.func @transform_1(%arg0: i32) -> (i32, i32, i32) {
    %c0_i32 = arith.constant 0 : i32
    %c0_i32_0 = arith.constant 0 : i32
    %c0_i32_1 = arith.constant 0 : i32
    %c0_i32_2 = arith.constant 0 : i32
    return %c0_i32, %c0_i32_0, %c0_i32_1 : i32, i32, i32
  }
  func.func @transform_2(%arg0: i32) -> (i32, i32, i32) {
    %c0_i32 = arith.constant 0 : i32
    %c0_i32_0 = arith.constant 0 : i32
    %c0_i32_1 = arith.constant 0 : i32
    %c0_i32_2 = arith.constant 0 : i32
    return %c0_i32, %c0_i32_0, %c0_i32_1 : i32, i32, i32
  }
  func.func @transform_3(%arg0: i32) -> (i32, i32) {
    %c0_i32 = arith.constant 0 : i32
    %c0_i32_0 = arith.constant 0 : i32
    return %c0_i32, %arg0 : i32, i32
  }
}

</mosaic_0001>

<bundles_post_ra>
// kernel: _pinn_forward_padded.1
= control target key start
LH: loop header
LB: loop body
LE: loop exit
PB: predicated region body
PF: predicated region fallthrough
CT: control target
= control target key end

     0   :  { %v4285_v3 = vmov 1   ;;  %v4286_v4 = vmov 0   ;;  %s5922_s0 = inlined_call_operand.vmem [shape: f32[2,1024], index: 0, kind: input, shape index: {}]   ;;  %s5923_s1 = inlined_call_operand.vmem [shape: f32[11,32,32], index: 1, kind: input, shape index: {}]   ;;  %s5924_s2 = inlined_call_operand.vmem [shape: f32[11,32,1], index: 2, kind: input, shape index: {}]   ;;  %s5925_s3 = inlined_call_operand.hbm [shape: f32[1,1024], index: 3, kind: output, shape index: {}]  }
   0x1   :  { %v22_v0 = vld [vmem:[%s5924_s2 + $0x18] sm:$0xff]  ;;  %v17_v2 = vld [vmem:[%s5923_s1 + $0x10] sm:$0xff]  ;;  %3613 = vset.pattern.permute.xlu0 %v4285_v3  ;;  %3617 = vset.pattern.permute.xlu2 %v4286_v4 }
   0x2   :  { %v18_v1 = vld [vmem:[%s5923_s1 + $0x18] sm:$0xff]  ;;  %3615 = vset.pattern.permute.xlu1 %v4286_v4  ;;  %40 = vperm.xlu2 %3617, %v22_v0  }
   0x3   :  { %92 = vperm.xlu0 %3613, %v18_v1   ;;  %58 = vperm.xlu1 %3615, %v17_v2  }
   0x4   :  { %8 = vsyncpa [#allocation3], 0  ;;  %v16_v5 = vld [vmem:[%s5923_s1 + $0x8] sm:$0xff]  ;;  %v21_v6 = vld [vmem:[%s5924_s2 + $0x10] sm:$0xff]  ;;  %vm324_vm0 = vcmask 261120   ;;  %vm3112_vm1 = vcmask 1040384  }
   0x5   :  { %v15_v7 = vld [vmem:[%s5923_s1] sm:$0xff]  ;;  %v20_v8 = vld [vmem:[%s5924_s2 + $0x8] sm:$0xff]  ;;  %v3251_v9 = vld [vmem:[%s5924_s2 + $0x30] sm:$0xff]  ;;  %s3229_s5 = sshll.u32 %s5925_s3, 4  ;;  %s3230_s5 = int_to_ptr.hbm [resolvable:$true] %s3229_s5 }
   0x6   :  { %v3252_v10 = vld [vmem:[%s5924_s2 + $0x38] sm:$0xff]  ;;  %v19_v12 = vld [vmem:[%s5924_s2] sm:$0xff]  ;;  %v3250_v15 = vld [vmem:[%s5924_s2 + $0x28] sm:$0xff] }
   0x7   :  { %v3292_v11 = vld [vmem:[%s5924_s2 + $0x58] sm:$0xff]  ;;  %v3249_v13 = vld [vmem:[%s5924_s2 + $0x20] sm:$0xff]  ;;  %v3290_v16 = vld [vmem:[%s5924_s2 + $0x48] sm:$0xff] }
   0x8   :  { %v3289_v14 = vld [vmem:[%s5924_s2 + $0x40] sm:$0xff]  ;;  %v3330_v17 = vld [vmem:[%s5924_s2 + $0x68] sm:$0xff]  ;;  %v3291_v18 = vld [vmem:[%s5924_s2 + $0x50] sm:$0xff] }
   0x9   :  { %v3331_v19 = vld [vmem:[%s5924_s2 + $0x70] sm:$0xff]  ;;  %v3332_v21 = vld [vmem:[%s5924_s2 + $0x78] sm:$0xff]  ;;  %v3329_v24 = vld [vmem:[%s5924_s2 + $0x60] sm:$0xff] }
   0xa   :  { %53 = vperm.xlu2 %3617, %v16_v5   ;;  %v3371_v20 = vld [vmem:[%s5924_s2 + $0x90] sm:$0xff]  ;;  %v3372_v22 = vld [vmem:[%s5924_s2 + $0x98] sm:$0xff]  ;;  %v3369_v25 = vld [vmem:[%s5924_s2 + $0x80] sm:$0xff] }
   0xb   :  { %3614 = vset.pattern.permute.xlu0 %v4286_v4  ;;  %3616 = vset.pattern.permute.xlu1 %v4285_v3  ;;  %v3412_v23 = vld [vmem:[%s5924_s2 + $0xb8] sm:$0xff]  ;;  %v3409_v26 = vld [vmem:[%s5924_s2 + $0xa0] sm:$0xff]  ;;  %v3370_v27 = vld [vmem:[%s5924_s2 + $0x88] sm:$0xff] }
   0xc   :  { %63 = vperm.xlu0 %3614, %v18_v1   ;;  %88 = vperm.xlu1 %3616, %v17_v2   ;;  %v3410_v28 = vld [vmem:[%s5924_s2 + $0xa8] sm:$0xff]  ;;  %v3411_v30 = vld [vmem:[%s5924_s2 + $0xb0] sm:$0xff]  ;;  %v3452_v33 = vld [vmem:[%s5924_s2 + $0xd8] sm:$0xff] }
   0xd   :  { %v3450_v29 = vld [vmem:[%s5924_s2 + $0xc8] sm:$0xff]  ;;  %v3451_v31 = vld [vmem:[%s5924_s2 + $0xd0] sm:$0xff]  ;;  %v3492_v34 = vld [vmem:[%s5924_s2 + $0xf8] sm:$0xff] }
   0xe   :  { %v3491_v32 = vld [vmem:[%s5924_s2 + $0xf0] sm:$0xff]  ;;  %v3532_v35 = vld [vmem:[%s5924_s2 + $0x118] sm:$0xff]  ;;  %v3449_v36 = vld [vmem:[%s5924_s2 + $0xc0] sm:$0xff] }
   0xf   :  { %v3489_v37 = vld [vmem:[%s5924_s2 + $0xe0] sm:$0xff]  ;;  %v3490_v39 = vld [vmem:[%s5924_s2 + $0xe8] sm:$0xff]  ;;  %v3571_v44 = vld [vmem:[%s5924_s2 + $0x130] sm:$0xff] }
  0x10   :  { %v3529_v38 = vld [vmem:[%s5924_s2 + $0x100] sm:$0xff]  ;;  %v3530_v41 = vld [vmem:[%s5924_s2 + $0x108] sm:$0xff]  ;;  %v3531_v45 = vld [vmem:[%s5924_s2 + $0x110] sm:$0xff] }
  0x11   :  { %v43_v42 = vld [vmem:[%s5922_s0] ss:$2 sm:$0x3]  ;;  %v3239_v43 = vld [vmem:[%s5922_s0 + $0x4] ss:$2 sm:$0x3] }
  0x12   :  { %35 = vperm.xlu2 %3617, %v21_v6   ;;  %v4439_v46 = vperm.slane %v43_v42, 0  ;;  %v4441_v47 = vperm.slane %v43_v42, 1  ;;  %v4443_v48 = vperm.slane %v3239_v43, 0  ;;  %v3238_v49 = vld [vmem:[%s5922_s0 + $0x1] ss:$2 sm:$0x3] }
  0x13   :  { %v3240_v50 = vld [vmem:[%s5922_s0 + $0x5] ss:$2 sm:$0x3]  ;;  %v3241_v53 = vld [vmem:[%s5922_s0 + $0x8] ss:$2 sm:$0x3] }
  0x14   :  { %84 = vperm.xlu1 %3616, %v16_v5   ;;  %48 = vperm.xlu0 %3614, %v15_v7   ;;  %v3243_v54 = vld [vmem:[%s5922_s0 + $0xc] ss:$2 sm:$0x3]  ;;  %v3242_v56 = vld [vmem:[%s5922_s0 + $0x9] ss:$2 sm:$0x3] }
  0x15   :  { %v3244_v57 = vld [vmem:[%s5922_s0 + $0xd] ss:$2 sm:$0x3]  ;;  %v4470_v59 = vperm.slane %v3238_v49, 0  ;;  %v4472_v60 = vperm.slane %v3238_v49, 1  ;;  %v4474_v61 = vperm.slane %v3240_v50, 0 }
  0x16   :  { %v3570_v58 = vld [vmem:[%s5924_s2 + $0x128] sm:$0xff]  ;;  %v4476_v62 = vperm.slane %v3239_v43, 1  ;;  %v4478_v63 = vperm.slane %v3240_v50, 1  ;;  %v4480_v0 = vperm.slane %v3241_v53, 0  ;;  %v4482_v1 = vperm.slane %v3241_v53, 1  ;;  %v3609_v42 = vld [vmem:[%s5924_s2 + $0x140] sm:$0xff] }
  0x17   :  { %v4484_v2 = vperm.slane %v3243_v54, 0  ;;  %v3606_v3 = vld [vmem:[%s5923_s1 + $0x148] sm:$0xff]  ;;  %v4491_v5 = vperm.slane %v3242_v56, 1  ;;  %v4493_v6 = vperm.slane %v3244_v57, 0  ;;  %v3572_v50 = vld [vmem:[%s5924_s2 + $0x138] sm:$0xff] }
  0x1a   :  { %30 = vperm.xlu2 %3617, %v20_v8   ;;  %v3569_v8 = vld [vmem:[%s5924_s2 + $0x120] sm:$0xff] }
  0x1c   :  { %80 = vperm.xlu1 %3616, %v15_v7   ;;  %316 = vperm.xlu0 %3614, %v3251_v9   ;;  %v4495_v7 = vperm.slane %v3243_v54, 1 }
  0x22   :  { %321 = vperm.xlu2 %3617, %v3252_v10  }
  0x24   :  { %3618 = vset.pattern.permute.xlu1 %v4286_v4  ;;  %628 = vperm.xlu0 %3614, %v3292_v11   ;;  %v4489_v4 = vperm.slane %v3242_v56, 0 }
  0x25   :  { %25 = vperm.xlu1 %3618, %v19_v12   ;;  %v4512_v12 = vperm.slane %v3244_v57, 1 }
  0x2a   :  { %306 = vperm.xlu2 %3617, %v3249_v13  }
  0x2c   :  { %613 = vperm.xlu0 %3614, %v3289_v14  }
  0x2d   :  { %311 = vperm.xlu1 %3618, %v3250_v15  }
  0x32   :  { %618 = vperm.xlu2 %3617, %v3290_v16  }
  0x34   :  { %924 = vperm.xlu0 %3614, %v3330_v17  }
  0x35   :  { %623 = vperm.xlu1 %3618, %v3291_v18  }
  0x3a   :  { %929 = vperm.xlu2 %3617, %v3331_v19  }
  0x3c   :  { %1235 = vperm.xlu0 %3614, %v3371_v20  }
  0x3d   :  { %934 = vperm.xlu1 %3618, %v3332_v21  }
  0x42   :  { %1240 = vperm.xlu2 %3617, %v3372_v22  }
  0x44   :  { %1546 = vperm.xlu0 %3614, %v3412_v23  }
  0x45   :  { %919 = vperm.xlu1 %3618, %v3329_v24  }
  0x4a   :  { %1225 = vperm.xlu2 %3617, %v3369_v25  }
  0x4c   :  { %1531 = vperm.xlu0 %3614, %v3409_v26  }
  0x4d   :  { %1230 = vperm.xlu1 %3618, %v3370_v27  }
  0x52   :  { %1536 = vperm.xlu2 %3617, %v3410_v28  }
  0x54   :  { %1842 = vperm.xlu0 %3614, %v3450_v29  }
  0x55   :  { %1541 = vperm.xlu1 %3618, %v3411_v30  }
  0x5a   :  { %1847 = vperm.xlu2 %3617, %v3451_v31   ;;  %v3605_v31 = vld [vmem:[%s5923_s1 + $0x140] sm:$0xff] }
  0x5c   :  { %2153 = vperm.xlu0 %3614, %v3491_v32   ;;  %v4422_v40 = vpop.permute.xlu2 %40 }
  0x5d   :  { %1852 = vperm.xlu1 %3618, %v3452_v33  }
  0x62   :  { %2158 = vperm.xlu2 %3617, %v3492_v34  }
  0x64   :  { %2464 = vperm.xlu0 %3614, %v3532_v35   ;;  %v4459_v55 = vpop.permute.xlu2 %53 }
  0x65   :  { %1837 = vperm.xlu1 %3618, %v3449_v36   ;;  %v4502_v9 = vmul.f32 %v4439_v46, %v4459_v55  ;;  %v4506_v10 = vmul.f32 %v4441_v47, %v4459_v55  ;;  %v4510_v11 = vmul.f32 %v4443_v48, %v4459_v55  ;;  %v4519_v16 = vmul.f32 %v4476_v62, %v4459_v55 }
  0x6a   :  { %2143 = vperm.xlu2 %3617, %v3489_v37  }
  0x6c   :  { %2449 = vperm.xlu0 %3614, %v3529_v38   ;;  %v4563_v36 = vpop.permute.xlu2 %35 }
  0x6d   :  { %2148 = vperm.xlu1 %3618, %v3490_v39  }
  0x72   :  { %2454 = vperm.xlu2 %3617, %v3530_v41  }
  0x74   :  { %2765 = vperm.xlu0 %3614, %v3571_v44  }
  0x75   :  { %v4451_v51 = vpop.permute.xlu1 %58  ;;  %2459 = vperm.xlu1 %3618, %v3531_v45   ;;  %v93_v52 = vpop.permute.xlu0 %92 }
  0x76   :  { %v106_v13 = vmul.f32 %v4470_v59, %v93_v52  ;;  %v107_v14 = vmul.f32 %v4472_v60, %v93_v52  ;;  %v160_v15 = vmul.f32 %v4474_v61, %v93_v52  ;;  %v161_v17 = vmul.f32 %v4478_v63, %v93_v52 }
  0x77   :  { %v75_v18 = vmul.f32 %v4439_v46, %v4451_v51  ;;  %v76_v19 = vmul.f32 %v4441_v47, %v4451_v51  ;;  %v145_v20 = vmul.f32 %v4443_v48, %v4451_v51  ;;  %v146_v21 = vmul.f32 %v4476_v62, %v4451_v51 }
  0x78   :  { %v4531_v22 = vmul.f32 %v4489_v4, %v93_v52  ;;  %v4534_v23 = vmul.f32 %v4491_v5, %v93_v52  ;;  %v4537_v24 = vmul.f32 %v4493_v6, %v93_v52  ;;  %v4542_v27 = vmul.f32 %v4512_v12, %v93_v52 }
  0x79   :  { %v4546_v28 = vmul.f32 %v4480_v0, %v4451_v51  ;;  %v4550_v29 = vmul.f32 %v4482_v1, %v4451_v51  ;;  %v4554_v30 = vmul.f32 %v4484_v2, %v4451_v51 }
  0x7a   :  { %2760 = vperm.xlu2 %3617, %v3570_v58  }
  0x7c   :  { %3063 = vperm.xlu0 %3614, %v3606_v3  }
  0x7d   :  { %2755 = vperm.xlu1 %3618, %v3569_v8   ;;  %v4584_v8 = vmul.f32 %v4495_v7, %v4451_v51 }
  0x7e   :  { %v64_v25 = vpop.permute.xlu0 %63  ;;  %v4539_v26 = vpop.permute.xlu1 %88 }
  0x7f   :  { %v77_v32 = vmul.f32 %v4439_v46, %v64_v25  ;;  %v78_v33 = vmul.f32 %v4441_v47, %v64_v25  ;;  %v147_v34 = vmul.f32 %v4443_v48, %v64_v25  ;;  %v148_v35 = vmul.f32 %v4476_v62, %v64_v25 }
  0x80   :  { %v104_v37 = vmul.f32 %v4470_v59, %v4539_v26  ;;  %v105_v38 = vmul.f32 %v4472_v60, %v4539_v26  ;;  %v158_v39 = vmul.f32 %v4474_v61, %v4539_v26  ;;  %v159_v41 = vmul.f32 %v4478_v63, %v4539_v26 }
  0x81   :  { %v114_v43 = vadd.f32 %v106_v13, %v77_v32  ;;  %v115_v44 = vadd.f32 %v107_v14, %v78_v33  ;;  %v168_v45 = vadd.f32 %v160_v15, %v147_v34  ;;  %v169_v49 = vadd.f32 %v161_v17, %v148_v35  ;;  %v3608_v33 = vld [vmem:[%s5923_s1 + $0x158] sm:$0xff] }
  0x82   :  { %3058 = vperm.xlu2 %3617, %v3605_v31   ;;  %v112_v52 = vadd.f32 %v104_v37, %v75_v18  ;;  %v113_v53 = vadd.f32 %v105_v38, %v76_v19  ;;  %v166_v54 = vadd.f32 %v158_v39, %v145_v20  ;;  %v167_v56 = vadd.f32 %v159_v41, %v146_v21 }
  0x83   :  { %v122_v57 = vadd.f32 %v114_v43, %v4422_v40  ;;  %v123_v58 = vadd.f32 %v115_v44, %v4422_v40  ;;  %v176_v3 = vadd.f32 %v168_v45, %v4422_v40  ;;  %v177_v13 = vadd.f32 %v169_v49, %v4422_v40  ;;  %v4623_v45 = vpop.permute.xlu2 %30  ;;  %v3607_v49 = vld [vmem:[%s5923_s1 + $0x150] sm:$0xff] }
  0x84   :  { %3104 = vperm.xlu0 %3614, %v3609_v42   ;;  %v4589_v14 = vmul.f32 %v4480_v0, %v4459_v55  ;;  %v4593_v15 = vmul.f32 %v4482_v1, %v4459_v55  ;;  %v4597_v17 = vmul.f32 %v4484_v2, %v4459_v55  ;;  %v120_v51 = vadd.f32 %v112_v52, %v4563_v36 }
  0x85   :  { %2770 = vperm.xlu1 %3618, %v3572_v50   ;;  %3619 = vtanh.f32 %v122_v57  ;;  %v121_v18 = vadd.f32 %v113_v53, %v4563_v36  ;;  %v174_v19 = vadd.f32 %v166_v54, %v4563_v36  ;;  %v175_v21 = vadd.f32 %v167_v56, %v4563_v36 }
  0x86   :  { %v4602_v20 = vpop.permute.xlu1 %84  ;;  %3621 = vtanh.f32 %v123_v58  ;;  %v201_v31 = vmul.f32 %v4480_v0, %v64_v25  ;;  %v202_v32 = vmul.f32 %v4482_v1, %v64_v25  ;;  %v255_v39 = vmul.f32 %v4484_v2, %v64_v25  ;;  %v4638_v56 = vpop.permute.xlu0 %48 }
  0x87   :  { %3623 = vtanh.f32 %v176_v3  ;;  %v102_v34 = vmul.f32 %v4470_v59, %v4602_v20  ;;  %v103_v35 = vmul.f32 %v4472_v60, %v4602_v20  ;;  %v156_v37 = vmul.f32 %v4474_v61, %v4602_v20 }
  0x88   :  { %3625 = vtanh.f32 %v177_v13  ;;  %v157_v38 = vmul.f32 %v4478_v63, %v4602_v20  ;;  %v256_v41 = vmul.f32 %v4495_v7, %v64_v25  ;;  %v212_v25 = vmul.f32 %v4489_v4, %v4539_v26 }
  0x89   :  { %3627 = vtanh.f32 %v120_v51  ;;  %v110_v42 = vadd.f32 %v102_v34, %v4502_v9  ;;  %v111_v43 = vadd.f32 %v103_v35, %v4506_v10  ;;  %v164_v44 = vadd.f32 %v156_v37, %v4510_v11 }
  0x8a   :  { %3073 = vperm.xlu2 %3617, %v3608_v33   ;;  %3629 = vtanh.f32 %v121_v18  ;;  %v165_v50 = vadd.f32 %v157_v38, %v4519_v16  ;;  %v4633_v9 = vmul.f32 %v4495_v7, %v4459_v55  ;;  %v222_v57 = vadd.f32 %v4531_v22, %v201_v31 }
  0x8b   :  { %v3620_v10 = vpop.eup %3619  ;;  %3631 = vtanh.f32 %v174_v19  ;;  %v118_v11 = vadd.f32 %v110_v42, %v4623_v45  ;;  %v119_v52 = vadd.f32 %v111_v43, %v4623_v45  ;;  %v172_v53 = vadd.f32 %v164_v44, %v4623_v45 }
  0x8c   :  { %v3622_v54 = vpop.eup %3621  ;;  %349 = vmatpush.msra.mxu0 %v3620_v10  ;;  %3633 = vtanh.f32 %v175_v21  ;;  %v173_v16 = vadd.f32 %v165_v50, %v4623_v45  ;;  %v223_v55 = vadd.f32 %v4534_v23, %v202_v32  ;;  %v71_v3 = vmul.f32 %v4439_v46, %v4638_v56 }
  0x8d   :  { %v3624_v58 = vpop.eup %3623  ;;  %378 = vmatpush.msra.mxu1 %v3622_v54  ;;  %3068 = vperm.xlu1 %3618, %v3607_v49   ;;  %3635 = vtanh.f32 %v118_v11  ;;  %v276_v13 = vadd.f32 %v4537_v24, %v255_v39  ;;  %v277_v51 = vadd.f32 %v4542_v27, %v256_v41  ;;  %v230_v22 = vadd.f32 %v222_v57, %v4422_v40 }
  0x8e   :  { %v3626_v18 = vpop.eup %3625  ;;  %415 = vmatpush.msra.mxu2 %v3624_v58  ;;  %v4647_v19 = vpop.permute.xlu1 %80  ;;  %3637 = vtanh.f32 %v119_v52  ;;  %v220_v23 = vadd.f32 %v212_v25, %v4546_v28  ;;  %v213_v21 = vmul.f32 %v4491_v5, %v4539_v26  ;;  %v72_v24 = vmul.f32 %v4441_v47, %v4638_v56 }
  0x8f   :  { %v3628_v31 = vpop.eup %3627  ;;  %444 = vmatpush.msra.mxu3 %v3626_v18  ;;  %3639 = vtanh.f32 %v172_v53  ;;  %v100_v46 = vmul.f32 %v4470_v59, %v4647_v19  ;;  %v231_v27 = vadd.f32 %v223_v55, %v4422_v40  ;;  %v141_v28 = vmul.f32 %v4443_v48, %v4638_v56 }
  0x90   :  { %v3630_v32 = vpop.eup %3629  ;;  %350 = vmatpush.msra.mxu0 %v3628_v31  ;;  %3641 = vtanh.f32 %v173_v16  ;;  %v142_v33 = vmul.f32 %v4476_v62, %v4638_v56  ;;  %v284_v34 = vadd.f32 %v276_v13, %v4422_v40  ;;  %v101_v59 = vmul.f32 %v4472_v60, %v4647_v19 }
  0x91   :  { %v3632_v35 = vpop.eup %3631  ;;  %379 = vmatpush.msra.mxu1 %v3630_v32  ;;  %v154_v47 = vmul.f32 %v4474_v61, %v4647_v19  ;;  %v155_v37 = vmul.f32 %v4478_v63, %v4647_v19  ;;  %v285_v38 = vadd.f32 %v277_v51, %v4422_v40  ;;  %v108_v48 = vadd.f32 %v100_v46, %v71_v3 }
  0x92   :  { %v3634_v39 = vpop.eup %3633  ;;  %416 = vmatpush.msra.mxu2 %v3632_v35  ;;  %3643 = vtanh.f32 %v230_v22  ;;  %v228_v62 = vadd.f32 %v220_v23, %v4563_v36  ;;  %v221_v41 = vadd.f32 %v213_v21, %v4550_v29  ;;  %v266_v60 = vmul.f32 %v4493_v6, %v4539_v26 }
  0x93   :  { %v3636_v42 = vpop.eup %3635  ;;  %445 = vmatpush.msra.mxu3 %v3634_v39  ;;  %3645 = vtanh.f32 %v231_v27  ;;  %v267_v61 = vmul.f32 %v4512_v12, %v4539_v26  ;;  %v210_v40 = vmul.f32 %v4489_v4, %v4602_v20  ;;  %v211_v29 = vmul.f32 %v4491_v5, %v4602_v20 }
  0x94   :  { %v3638_v63 = vpop.eup %3637  ;;  %351 = vmatpush.msra.mxu0 %v3636_v42  ;;  %3647 = vtanh.f32 %v284_v34  ;;  %v229_v43 = vadd.f32 %v221_v41, %v4563_v36  ;;  %v264_v44 = vmul.f32 %v4493_v6, %v4602_v20  ;;  %v109_v50 = vadd.f32 %v101_v59, %v72_v24 }
  0x95   :  { %v3640_v49 = vpop.eup %3639  ;;  %380 = vmatpush.msra.mxu1 %v3638_v63  ;;  %3649 = vtanh.f32 %v285_v38  ;;  %v274_v26 = vadd.f32 %v266_v60, %v4554_v30  ;;  %v275_v25 = vadd.f32 %v267_v61, %v4584_v8  ;;  %v162_v11 = vadd.f32 %v154_v47, %v141_v28  ;;  %v3246_v61 = vld [vmem:[%s5923_s1 + $0x28] sm:$0xff] }
  0x96   :  { %v3642_v10 = vpop.eup %3641  ;;  %417 = vmatpush.msra.mxu2 %v3640_v49  ;;  %v163_v52 = vadd.f32 %v155_v37, %v142_v33  ;;  %3651 = vtanh.f32 %v228_v62  ;;  %v265_v53 = vmul.f32 %v4512_v12, %v4602_v20  ;;  %v218_v57 = vadd.f32 %v210_v40, %v4589_v14 }
  0x97   :  { %446 = vmatpush.msra.mxu3 %v3642_v10  ;;  %v26_v54 = vpop.permute.xlu1 %25  ;;  %3653 = vtanh.f32 %v229_v43  ;;  %v282_v16 = vadd.f32 %v274_v26, %v4563_v36  ;;  %v219_v55 = vadd.f32 %v211_v29, %v4593_v15  ;;  %v272_v13 = vadd.f32 %v264_v44, %v4597_v17  ;;  %v3247_v43 = vld [vmem:[%s5923_s1 + $0x30] sm:$0xff]  ;;  %v3248_v29 = vld [vmem:[%s5923_s1 + $0x38] sm:$0xff] }
  0x98   :  { %v3644_v30 = vpop.eup %3643  ;;  %v116_v58 = vadd.f32 %v108_v48, %v26_v54  ;;  %v117_v8 = vadd.f32 %v109_v50, %v26_v54  ;;  %v170_v3 = vadd.f32 %v162_v11, %v26_v54  ;;  %v171_v18 = vadd.f32 %v163_v52, %v26_v54  ;;  %v4767_v11 = vpop.permute.xlu2 %321 }
  0x99   :  { %v3646_v51 = vpop.eup %3645  ;;  %3655 = vtanh.f32 %v282_v16  ;;  %v283_v20 = vadd.f32 %v275_v25, %v4563_v36  ;;  %v273_v23 = vadd.f32 %v265_v53, %v4633_v9  ;;  %v208_v14 = vmul.f32 %v4489_v4, %v4647_v19 }
  0x9a   :  { %v3648_v22 = vpop.eup %3647  ;;  %3657 = vtanh.f32 %v116_v58  ;;  %v209_v15 = vmul.f32 %v4491_v5, %v4647_v19  ;;  %v226_v31 = vadd.f32 %v218_v57, %v4623_v45  ;;  %v195_v17 = vmul.f32 %v4480_v0, %v4638_v56 }
  0x9b   :  { %v3650_v21 = vpop.eup %3649  ;;  %3659 = vtanh.f32 %v117_v8  ;;  %v262_v36 = vmul.f32 %v4493_v6, %v4647_v19  ;;  %v227_v9 = vadd.f32 %v219_v55, %v4623_v45  ;;  %v280_v24 = vadd.f32 %v272_v13, %v4623_v45  ;;  %v4773_v13 = vpop.permute.xlu0 %316 }
  0x9c   :  { %v3652_v46 = vpop.eup %3651  ;;  %3661 = vtanh.f32 %v170_v3  ;;  %v196_v4 = vmul.f32 %v4482_v1, %v4638_v56  ;;  %v216_v27 = vadd.f32 %v208_v14, %v195_v17  ;;  %v249_v32 = vmul.f32 %v4484_v2, %v4638_v56  ;;  %v4716_v1 = vld [vmem:[%s5923_s1 + $0x20] sm:$0xff] }
  0x9d   :  { %v3654_v5 = vpop.eup %3653  ;;  %3663 = vtanh.f32 %v171_v18  ;;  %v263_v0 = vmul.f32 %v4512_v12, %v4647_v19  ;;  %v281_v6 = vadd.f32 %v273_v23, %v4623_v45  ;;  %v250_v33 = vmul.f32 %v4495_v7, %v4638_v56 }
  0x9e   :  { %3665 = vtanh.f32 %v283_v20  ;;  %v217_v28 = vadd.f32 %v209_v15, %v196_v4  ;;  %v224_v35 = vadd.f32 %v216_v27, %v26_v54  ;;  %v270_v2 = vadd.f32 %v262_v36, %v249_v32 }
  0x9f   :  { %v3656_v34 = vpop.eup %3655  ;;  %3667 = vtanh.f32 %v226_v31  ;;  %v271_v19 = vadd.f32 %v263_v0, %v250_v33  ;;  %v4778_v23 = vpop.permute.xlu1 %311 }
  0xa0   :  { %v3658_v59 = vpop.eup %3657  ;;  %3669 = vtanh.f32 %v227_v9  ;;  %v225_v12 = vadd.f32 %v217_v28, %v26_v54  ;;  %v278_v45 = vadd.f32 %v270_v2, %v26_v54  ;;  %v4769_v57 = vpop.permute.xlu2 %306 }
  0xa1   :  { %v3660_v47 = vpop.eup %3659  ;;  %352 = vmatpush.msra.mxu0 %v3658_v59  ;;  %3671 = vtanh.f32 %v280_v24  ;;  %v279_v7 = vadd.f32 %v271_v19, %v26_v54 }
  0xa2   :  { %v3662_v37 = vpop.eup %3661  ;;  %381 = vmatpush.msra.mxu1 %v3660_v47  ;;  %3253 = vmatmul.msk.f32.vlgmr.msra.gmra.mxu0 %vm324_vm0, %v4716_v1  ;;  %3673 = vtanh.f32 %v281_v6 }
  0xa3   :  { %v3664_v56 = vpop.eup %3663  ;;  %418 = vmatpush.msra.mxu2 %v3662_v37  ;;  %3257 = vmatmul.msk.f32.vlgmr.msra.gmra.mxu1 %vm324_vm0, %v4716_v1  ;;  %3675 = vtanh.f32 %v224_v35 }
  0xa4   :  { %v3666_v38 = vpop.eup %3665  ;;  %447 = vmatpush.msra.mxu3 %v3664_v56  ;;  %3261 = vmatmul.msk.f32.vlgmr.msra.gmra.mxu2 %vm324_vm0, %v4716_v1  ;;  %3677 = vtanh.f32 %v225_v12 }
  0xa5   :  { %v3668_v39 = vpop.eup %3667  ;;  %3265 = vmatmul.msk.f32.vlgmr.msra.gmra.mxu3 %vm324_vm0, %v4716_v1  ;;  %481 = vmatpush.msrb.mxu0 %v3644_v30  ;;  %3679 = vtanh.f32 %v278_v45 }
  0xa6   :  { %v3670_v48 = vpop.eup %3669  ;;  %510 = vmatpush.msrb.mxu1 %v3646_v51  ;;  %547 = vmatpush.msrb.mxu2 %v3648_v22  ;;  %3681 = vtanh.f32 %v279_v7  ;;  %v4800_v7 = vld [vmem:[%s5923_s1 + $0x40] sm:$0xff] }
  0xa7   :  { %v3672_v62 = vpop.eup %3671  ;;  %576 = vmatpush.msrb.mxu3 %v3650_v21  ;;  %482 = vmatpush.msrb.mxu0 %v3652_v46 }
  0xa8   :  { %v3674_v41 = vpop.eup %3673  ;;  %511 = vmatpush.msrb.mxu1 %v3654_v5  ;;  %548 = vmatpush.msrb.mxu2 %v3656_v34 }
  0xa9   :  { %v3676_v42 = vpop.eup %3675  ;;  %577 = vmatpush.msrb.mxu3 %v3666_v38  ;;  %483 = vmatpush.msrb.mxu0 %v3668_v39 }
  0xaa   :  { %v3678_v60 = vpop.eup %3677  ;;  %512 = vmatpush.msrb.mxu1 %v3670_v48  ;;  %549 = vmatpush.msrb.mxu2 %v3672_v62 }
  0xab   :  { %v3680_v40 = vpop.eup %3679  ;;  %578 = vmatpush.msrb.mxu3 %v3674_v41  ;;  %484 = vmatpush.msrb.mxu0 %v3676_v42 }
  0xac   :  { %v3682_v63 = vpop.eup %3681  ;;  %513 = vmatpush.msrb.mxu1 %v3678_v60  ;;  %550 = vmatpush.msrb.mxu2 %v3680_v40 }
  0xad   :  { %579 = vmatpush.msrb.mxu3 %v3682_v63  ;;  %3254 = vmatmul.msk.f32.gmra.mxu0 %vm324_vm0, %v3246_v61 }
  0xae   :  { %3258 = vmatmul.msk.f32.gmra.mxu1 %vm324_vm0, %v3246_v61  ;;  %3262 = vmatmul.msk.f32.gmra.mxu2 %vm324_vm0, %v3246_v61 }
  0xaf   :  { %3266 = vmatmul.msk.f32.gmra.mxu3 %vm324_vm0, %v3246_v61 }
  0xb5   :  { %3255 = vmatmul.msk.f32.gmra.mxu0 %vm324_vm0, %v3247_v43 }
  0xb6   :  { %3259 = vmatmul.msk.f32.gmra.mxu1 %vm324_vm0, %v3247_v43  ;;  %3263 = vmatmul.msk.f32.gmra.mxu2 %vm324_vm0, %v3247_v43 }
  0xb7   :  { %3267 = vmatmul.msk.f32.gmra.mxu3 %vm324_vm0, %v3247_v43 }
  0xbd   :  { %3256 = vmatmul.msk.f32.gmra.mxu0 %vm324_vm0, %v3248_v29 }
  0xbe   :  { %3260 = vmatmul.msk.f32.gmra.mxu1 %vm324_vm0, %v3248_v29  ;;  %3264 = vmatmul.msk.f32.gmra.mxu2 %vm324_vm0, %v3248_v29 }
  0xbf   :  { %3268 = vmatmul.msk.f32.gmra.mxu3 %vm324_vm0, %v3248_v29 }
  0xc5   :  { %3269 = vmatmul.msk.f32.vlgmr.msrb.gmra.mxu0 %vm324_vm0, %v4716_v1 }
  0xc6   :  { %3273 = vmatmul.msk.f32.vlgmr.msrb.gmra.mxu1 %vm324_vm0, %v4716_v1  ;;  %3277 = vmatmul.msk.f32.vlgmr.msrb.gmra.mxu2 %vm324_vm0, %v4716_v1 }
  0xc7   :  { %3281 = vmatmul.msk.f32.vlgmr.msrb.gmra.mxu3 %vm324_vm0, %v4716_v1 }
  0xcd   :  { %3270 = vmatmul.msk.f32.gmra.mxu0 %vm324_vm0, %v3246_v61 }
  0xce   :  { %3274 = vmatmul.msk.f32.gmra.mxu1 %vm324_vm0, %v3246_v61  ;;  %3278 = vmatmul.msk.f32.gmra.mxu2 %vm324_vm0, %v3246_v61 }
  0xcf   :  { %3282 = vmatmul.msk.f32.gmra.mxu3 %vm324_vm0, %v3246_v61 }
  0xd5   :  { %3271 = vmatmul.msk.f32.gmra.mxu0 %vm324_vm0, %v3247_v43 }
  0xd6   :  { %3275 = vmatmul.msk.f32.gmra.mxu1 %vm324_vm0, %v3247_v43  ;;  %3279 = vmatmul.msk.f32.gmra.mxu2 %vm324_vm0, %v3247_v43 }
  0xd7   :  { %3283 = vmatmul.msk.f32.gmra.mxu3 %vm324_vm0, %v3247_v43  ;;  %v4809_v43 = vld [vmem:[%s5923_s1 + $0x48] sm:$0xff] }
  0xdd   :  { %3272 = vmatmul.msk.f32.gmra.mxu0 %vm324_vm0, %v3248_v29 }
  0xde   :  { %3276 = vmatmul.msk.f32.gmra.mxu1 %vm324_vm0, %v3248_v29  ;;  %3280 = vmatmul.msk.f32.gmra.mxu2 %vm324_vm0, %v3248_v29 }
  0xdf   :  { %3284 = vmatmul.msk.f32.gmra.mxu3 %vm324_vm0, %v3248_v29 }
 0x11f   :  { %v354_v44 = vpop.f32.mrf.mxu0 }
 0x120   :  { %v383_v49 = vpop.f32.mrf.mxu1  ;;  %v355_v55 = vadd.f32 %v354_v44, %v4769_v57 }
 0x121   :  { %v384_v30 = vadd.f32 %v383_v49, %v4769_v57 }
 0x122   :  { %3683 = vtanh.f32 %v355_v55 }
 0x123   :  { %3685 = vtanh.f32 %v384_v30 }
 0x127   :  { %v420_v50 = vpop.f32.mrf.mxu2 }
 0x128   :  { %v449_v26 = vpop.f32.mrf.mxu3  ;;  %v3684_v17 = vpop.eup %3683  ;;  %v421_v1 = vadd.f32 %v420_v50, %v4769_v57 }
 0x129   :  { %v3686_v4 = vpop.eup %3685  ;;  %v450_v2 = vadd.f32 %v449_v26, %v4769_v57 }
 0x12a   :  { %v357_v25 = vpop.f32.mrf.mxu0 }
 0x12b   :  { %v386_v10 = vpop.f32.mrf.mxu1  ;;  %v358_v15 = vadd.f32 %v357_v25, %v4778_v23 }
 0x12c   :  { %v387_v21 = vadd.f32 %v386_v10, %v4778_v23  ;;  %v4825_v10 = vld [vmem:[%s5923_s1 + $0x50] sm:$0xff] }
 0x131   :  { %v423_v52 = vpop.f32.mrf.mxu2 }
 0x132   :  { %v452_v53 = vpop.f32.mrf.mxu3  ;;  %v360_v54 = vpop.f32.mrf.mxu0  ;;  %v424_v6 = vadd.f32 %v423_v52, %v4778_v23 }
 0x133   :  { %v389_v16 = vpop.f32.mrf.mxu1  ;;  %v361_v20 = vadd.f32 %v360_v54, %v4773_v13  ;;  %v453_v33 = vadd.f32 %v452_v53, %v4778_v23 }
 0x134   :  { %v390_v14 = vadd.f32 %v389_v16, %v4773_v13 }
 0x139   :  { %v426_v58 = vpop.f32.mrf.mxu2 }
 0x13a   :  { %v455_v8 = vpop.f32.mrf.mxu3  ;;  %v363_v3 = vpop.f32.mrf.mxu0  ;;  %v427_v36 = vadd.f32 %v426_v58, %v4773_v13 }
 0x13b   :  { %v364_v51 = vadd.f32 %v363_v3, %v4767_v11  ;;  %v392_v18 = vpop.f32.mrf.mxu1  ;;  %v456_v5 = vadd.f32 %v455_v8, %v4773_v13 }
 0x13c   :  { %v393_v22 = vadd.f32 %v392_v18, %v4767_v11 }
 0x13d   :  { %3687 = vtanh.f32 %v364_v51 }
 0x13e   :  { %3689 = vtanh.f32 %v393_v22 }
 0x13f   :  { %3691 = vtanh.f32 %v361_v20  ;;  %v4845_v20 = vld [vmem:[%s5923_s1 + $0x58] sm:$0xff] }
 0x140   :  { %3693 = vtanh.f32 %v390_v14 }
 0x141   :  { %v429_v31 = vpop.f32.mrf.mxu2  ;;  %3695 = vtanh.f32 %v358_v15 }
 0x142   :  { %v430_v46 = vadd.f32 %v429_v31, %v4767_v11  ;;  %v458_v9 = vpop.f32.mrf.mxu3  ;;  %v4785_v24 = vpop.f32.mrf.mxu0  ;;  %3697 = vtanh.f32 %v387_v21 }
 0x143   :  { %v459_v27 = vadd.f32 %v458_v9, %v4767_v11  ;;  %v515_v32 = vpop.f32.mrf.mxu1  ;;  %v3688_v0 = vpop.eup %3687  ;;  %v487_v44 = vadd.f32 %v4785_v24, %v4769_v57 }
 0x144   :  { %3699 = vtanh.f32 %v430_v46  ;;  %v3690_v28 = vpop.eup %3689  ;;  %655 = vmatpush.msra.mxu0 %v3688_v0  ;;  %v516_v49 = vadd.f32 %v515_v32, %v4769_v57 }
 0x145   :  { %3701 = vtanh.f32 %v459_v27  ;;  %v3692_v34 = vpop.eup %3691  ;;  %684 = vmatpush.msra.mxu1 %v3690_v28 }
 0x146   :  { %3703 = vtanh.f32 %v427_v36  ;;  %v3694_v35 = vpop.eup %3693  ;;  %656 = vmatpush.msra.mxu0 %v3692_v34 }
 0x147   :  { %3705 = vtanh.f32 %v456_v5  ;;  %v3696_v59 = vpop.eup %3695  ;;  %685 = vmatpush.msra.mxu1 %v3694_v35 }
 0x148   :  { %3707 = vtanh.f32 %v424_v6  ;;  %v3698_v12 = vpop.eup %3697  ;;  %657 = vmatpush.msra.mxu0 %v3696_v59 }
 0x149   :  { %3709 = vtanh.f32 %v453_v33  ;;  %v4793_v19 = vpop.f32.mrf.mxu2  ;;  %686 = vmatpush.msra.mxu1 %v3698_v12 }
 0x14a   :  { %v3700_v47 = vpop.eup %3699  ;;  %3711 = vtanh.f32 %v421_v1  ;;  %v4795_v45 = vpop.f32.mrf.mxu3  ;;  %658 = vmatpush.msra.mxu0 %v3684_v17 }
 0x14b   :  { %v489_v37 = vpop.f32.mrf.mxu0  ;;  %v3702_v56 = vpop.eup %3701  ;;  %3713 = vtanh.f32 %v450_v2  ;;  %721 = vmatpush.msra.mxu2 %v3700_v47  ;;  %687 = vmatpush.msra.mxu1 %v3686_v4  ;;  %v582_v4 = vadd.f32 %v4795_v45, %v4769_v57 }
 0x14c   :  { %v518_v38 = vpop.f32.mrf.mxu1  ;;  %v3704_v39 = vpop.eup %3703  ;;  %750 = vmatpush.msra.mxu3 %v3702_v56  ;;  %3293 = vmatmul.msk.f32.vlgmr.msra.gmra.mxu0 %vm324_vm0, %v4800_v7  ;;  %3715 = vtanh.f32 %v487_v44  ;;  %v490_v30 = vadd.f32 %v489_v37, %v4778_v23 }
 0x14d   :  { %v3706_v48 = vpop.eup %3705  ;;  %3297 = vmatmul.msk.f32.vlgmr.msra.gmra.mxu1 %vm324_vm0, %v4800_v7  ;;  %722 = vmatpush.msra.mxu2 %v3704_v39  ;;  %3717 = vtanh.f32 %v516_v49  ;;  %v519_v58 = vadd.f32 %v518_v38, %v4778_v23  ;;  %v4902_v45 = vpop.permute.xlu0 %628 }
 0x14e   :  { %v3708_v62 = vpop.eup %3707  ;;  %751 = vmatpush.msra.mxu3 %v3706_v48  ;;  %v4904_v56 = vpop.permute.xlu1 %623 }
 0x14f   :  { %v3710_v41 = vpop.eup %3709  ;;  %723 = vmatpush.msra.mxu2 %v3708_v62 }
 0x150   :  { %v3712_v42 = vpop.eup %3711  ;;  %752 = vmatpush.msra.mxu3 %v3710_v41 }
 0x151   :  { %v3714_v60 = vpop.eup %3713  ;;  %v555_v61 = vpop.f32.mrf.mxu2  ;;  %724 = vmatpush.msra.mxu2 %v3712_v42 }
 0x152   :  { %v584_v40 = vpop.f32.mrf.mxu3  ;;  %753 = vmatpush.msra.mxu3 %v3714_v60  ;;  %3301 = vmatmul.msk.f32.vlgmr.msra.gmra.mxu2 %vm324_vm0, %v4800_v7  ;;  %v3716_v3 = vpop.eup %3715  ;;  %v556_v36 = vadd.f32 %v555_v61, %v4778_v23 }
 0x153   :  { %v492_v63 = vpop.f32.mrf.mxu0  ;;  %3305 = vmatmul.msk.f32.vlgmr.msra.gmra.mxu3 %vm324_vm0, %v4800_v7  ;;  %v3718_v22 = vpop.eup %3717  ;;  %v585_v46 = vadd.f32 %v584_v40, %v4778_v23 }
 0x154   :  { %v521_v29 = vpop.f32.mrf.mxu1  ;;  %3294 = vmatmul.msk.f32.gmra.mxu0 %vm324_vm0, %v4809_v43  ;;  %v493_v54 = vadd.f32 %v492_v63, %v4773_v13  ;;  %v4909_v42 = vpop.permute.xlu2 %618 }
 0x155   :  { %3298 = vmatmul.msk.f32.gmra.mxu1 %vm324_vm0, %v4809_v43  ;;  %v522_v55 = vadd.f32 %v521_v29, %v4773_v13  ;;  %v4912_v61 = vpop.permute.xlu0 %613 }
 0x159   :  { %v558_v50 = vpop.f32.mrf.mxu2 }
 0x15a   :  { %v587_v26 = vpop.f32.mrf.mxu3  ;;  %3302 = vmatmul.msk.f32.gmra.mxu2 %vm324_vm0, %v4809_v43  ;;  %v559_v14 = vadd.f32 %v558_v50, %v4773_v13 }
 0x15b   :  { %v495_v25 = vpop.f32.mrf.mxu0  ;;  %3306 = vmatmul.msk.f32.gmra.mxu3 %vm324_vm0, %v4809_v43  ;;  %v588_v31 = vadd.f32 %v587_v26, %v4773_v13  ;;  %v553_v13 = vadd.f32 %v4793_v19, %v4769_v57 }
 0x15c   :  { %v496_v52 = vadd.f32 %v495_v25, %v4767_v11  ;;  %v524_v53 = vpop.f32.mrf.mxu1  ;;  %3295 = vmatmul.msk.f32.gmra.mxu0 %vm324_vm0, %v4825_v10 }
 0x15d   :  { %v525_v16 = vadd.f32 %v524_v53, %v4767_v11  ;;  %3299 = vmatmul.msk.f32.gmra.mxu1 %vm324_vm0, %v4825_v10 }
 0x15e   :  { %3719 = vtanh.f32 %v496_v52 }
 0x15f   :  { %3721 = vtanh.f32 %v525_v16 }
 0x160   :  { %3723 = vtanh.f32 %v493_v54 }
 0x161   :  { %3725 = vtanh.f32 %v522_v55  ;;  %v561_v8 = vpop.f32.mrf.mxu2 }
 0x162   :  { %3727 = vtanh.f32 %v490_v30  ;;  %v562_v51 = vadd.f32 %v561_v8, %v4767_v11  ;;  %v590_v18 = vpop.f32.mrf.mxu3  ;;  %3303 = vmatmul.msk.f32.gmra.mxu2 %vm324_vm0, %v4825_v10 }
 0x163   :  { %3729 = vtanh.f32 %v519_v58  ;;  %v591_v15 = vadd.f32 %v590_v18, %v4767_v11  ;;  %3307 = vmatmul.msk.f32.gmra.mxu3 %vm324_vm0, %v4825_v10  ;;  %v4929_v18 = vld [vmem:[%s5923_s1 + $0x60] sm:$0xff] }
 0x164   :  { %v3720_v21 = vpop.eup %3719  ;;  %3731 = vtanh.f32 %v562_v51  ;;  %3296 = vmatmul.msk.f32.gmra.mxu0 %vm324_vm0, %v4845_v20 }
 0x165   :  { %v3722_v17 = vpop.eup %3721  ;;  %3733 = vtanh.f32 %v591_v15  ;;  %3300 = vmatmul.msk.f32.gmra.mxu1 %vm324_vm0, %v4845_v20  ;;  %787 = vmatpush.msrb.mxu0 %v3720_v21 }
 0x166   :  { %v3724_v11 = vpop.eup %3723  ;;  %816 = vmatpush.msrb.mxu1 %v3722_v17  ;;  %3735 = vtanh.f32 %v559_v14 }
 0x167   :  { %v3726_v9 = vpop.eup %3725  ;;  %3737 = vtanh.f32 %v588_v31  ;;  %788 = vmatpush.msrb.mxu0 %v3724_v11 }
 0x168   :  { %v3728_v24 = vpop.eup %3727  ;;  %817 = vmatpush.msrb.mxu1 %v3726_v9  ;;  %3739 = vtanh.f32 %v556_v36 }
 0x169   :  { %v3730_v5 = vpop.eup %3729  ;;  %3741 = vtanh.f32 %v585_v46  ;;  %789 = vmatpush.msrb.mxu0 %v3728_v24  ;;  %v4947_v24 = vld [vmem:[%s5923_s1 + $0x68] sm:$0xff] }
 0x16a   :  { %v3732_v27 = vpop.eup %3731  ;;  %818 = vmatpush.msrb.mxu1 %v3730_v5  ;;  %3743 = vtanh.f32 %v553_v13  ;;  %3304 = vmatmul.msk.f32.gmra.mxu2 %vm324_vm0, %v4845_v20 }
 0x16b   :  { %v3734_v23 = vpop.eup %3733  ;;  %3308 = vmatmul.msk.f32.gmra.mxu3 %vm324_vm0, %v4845_v20  ;;  %3745 = vtanh.f32 %v582_v4  ;;  %790 = vmatpush.msrb.mxu0 %v3716_v3 }
 0x16c   :  { %819 = vmatpush.msrb.mxu1 %v3718_v22  ;;  %v3736_v57 = vpop.eup %3735  ;;  %853 = vmatpush.msrb.mxu2 %v3732_v27 }
 0x16d   :  { %882 = vmatpush.msrb.mxu3 %v3734_v23  ;;  %v3738_v32 = vpop.eup %3737  ;;  %3309 = vmatmul.msk.f32.vlgmr.msrb.gmra.mxu0 %vm324_vm0, %v4800_v7 }
 0x16e   :  { %3313 = vmatmul.msk.f32.vlgmr.msrb.gmra.mxu1 %vm324_vm0, %v4800_v7  ;;  %v3740_v0 = vpop.eup %3739  ;;  %854 = vmatpush.msrb.mxu2 %v3736_v57 }
 0x16f   :  { %883 = vmatpush.msrb.mxu3 %v3738_v32  ;;  %v3742_v6 = vpop.eup %3741 }
 0x170   :  { %v3744_v28 = vpop.eup %3743  ;;  %855 = vmatpush.msrb.mxu2 %v3740_v0 }
 0x171   :  { %884 = vmatpush.msrb.mxu3 %v3742_v6  ;;  %v3746_v33 = vpop.eup %3745 }
 0x172   :  { %856 = vmatpush.msrb.mxu2 %v3744_v28 }
 0x173   :  { %885 = vmatpush.msrb.mxu3 %v3746_v33  ;;  %3317 = vmatmul.msk.f32.vlgmr.msrb.gmra.mxu2 %vm324_vm0, %v4800_v7 }
 0x174   :  { %3321 = vmatmul.msk.f32.vlgmr.msrb.gmra.mxu3 %vm324_vm0, %v4800_v7 }
 0x175   :  { %3310 = vmatmul.msk.f32.gmra.mxu0 %vm324_vm0, %v4809_v43 }
 0x176   :  { %3314 = vmatmul.msk.f32.gmra.mxu1 %vm324_vm0, %v4809_v43 }
 0x17b   :  { %3318 = vmatmul.msk.f32.gmra.mxu2 %vm324_vm0, %v4809_v43 }
 0x17c   :  { %3322 = vmatmul.msk.f32.gmra.mxu3 %vm324_vm0, %v4809_v43 }
 0x17d   :  { %3311 = vmatmul.msk.f32.gmra.mxu0 %vm324_vm0, %v4825_v10 }
 0x17e   :  { %3315 = vmatmul.msk.f32.gmra.mxu1 %vm324_vm0, %v4825_v10 }
 0x183   :  { %3319 = vmatmul.msk.f32.gmra.mxu2 %vm324_vm0, %v4825_v10 }
 0x184   :  { %3323 = vmatmul.msk.f32.gmra.mxu3 %vm324_vm0, %v4825_v10 }
 0x185   :  { %3312 = vmatmul.msk.f32.gmra.mxu0 %vm324_vm0, %v4845_v20 }
 0x186   :  { %3316 = vmatmul.msk.f32.gmra.mxu1 %vm324_vm0, %v4845_v20 }
 0x18b   :  { %3320 = vmatmul.msk.f32.gmra.mxu2 %vm324_vm0, %v4845_v20 }
 0x18c   :  { %3324 = vmatmul.msk.f32.gmra.mxu3 %vm324_vm0, %v4845_v20 }
 0x1c9   :  { %v660_v34 = vpop.f32.mrf.mxu0 }
 0x1ca   :  { %v689_v1 = vpop.f32.mrf.mxu1  ;;  %v661_v44 = vadd.f32 %v660_v34, %v4912_v61  ;;  %v4960_v34 = vld [vmem:[%s5923_s1 + $0x70] sm:$0xff] }
 0x1cb   :  { %v690_v49 = vadd.f32 %v689_v1, %v4912_v61 }
 0x1d1   :  { %v663_v35 = vpop.f32.mrf.mxu0 }
 0x1d2   :  { %v692_v2 = vpop.f32.mrf.mxu1  ;;  %v664_v40 = vadd.f32 %v663_v35, %v4909_v42 }
 0x1d3   :  { %v693_v63 = vadd.f32 %v692_v2, %v4909_v42 }
 0x1d5   :  { %v726_v59 = vpop.f32.mrf.mxu2 }
 0x1d6   :  { %v4900_v12 = vpop.f32.mrf.mxu3  ;;  %v727_v21 = vadd.f32 %v726_v59, %v4912_v61 }
 0x1d7   :  { %v756_v36 = vadd.f32 %v4900_v12, %v4912_v61 }
 0x1d9   :  { %v666_v19 = vpop.f32.mrf.mxu0 }
 0x1da   :  { %v695_v47 = vpop.f32.mrf.mxu1  ;;  %v667_v48 = vadd.f32 %v666_v19, %v4904_v56 }
 0x1db   :  { %v696_v60 = vadd.f32 %v695_v47, %v4904_v56 }
 0x1dd   :  { %v729_v37 = vpop.f32.mrf.mxu2 }
 0x1de   :  { %v758_v7 = vpop.f32.mrf.mxu3  ;;  %v730_v22 = vadd.f32 %v729_v37, %v4909_v42 }
 0x1df   :  { %v759_v15 = vadd.f32 %v758_v7, %v4909_v42 }
 0x1e1   :  { %v669_v38 = vpop.f32.mrf.mxu0 }
 0x1e2   :  { %v698_v39 = vpop.f32.mrf.mxu1  ;;  %v670_v62 = vadd.f32 %v669_v38, %v4902_v45 }
 0x1e3   :  { %v699_v41 = vadd.f32 %v698_v39, %v4902_v45 }
 0x1e4   :  { %3747 = vtanh.f32 %v670_v62 }
 0x1e5   :  { %3749 = vtanh.f32 %v699_v41  ;;  %v732_v43 = vpop.f32.mrf.mxu2 }
 0x1e6   :  { %v761_v29 = vpop.f32.mrf.mxu3  ;;  %3751 = vtanh.f32 %v667_v48  ;;  %v733_v30 = vadd.f32 %v732_v43, %v4904_v56  ;;  %v4981_v48 = vld [vmem:[%s5923_s1 + $0x78] sm:$0xff] }
 0x1e7   :  { %3753 = vtanh.f32 %v696_v60  ;;  %v762_v51 = vadd.f32 %v761_v29, %v4904_v56 }
 0x1e8   :  { %3755 = vtanh.f32 %v664_v40 }
 0x1e9   :  { %3757 = vtanh.f32 %v693_v63 }
 0x1ea   :  { %v3748_v50 = vpop.eup %3747  ;;  %3759 = vtanh.f32 %v661_v44  ;;  %v4918_v26 = vpop.f32.mrf.mxu0 }
 0x1eb   :  { %v4920_v25 = vpop.f32.mrf.mxu1  ;;  %v3750_v10 = vpop.eup %3749  ;;  %3761 = vtanh.f32 %v690_v49  ;;  %961 = vmatpush.msra.mxu0 %v3748_v50  ;;  %v793_v39 = vadd.f32 %v4918_v26, %v4912_v61 }
 0x1ec   :  { %v3752_v52 = vpop.eup %3751  ;;  %990 = vmatpush.msra.mxu1 %v3750_v10  ;;  %v822_v62 = vadd.f32 %v4920_v25, %v4912_v61 }
 0x1ed   :  { %v3754_v53 = vpop.eup %3753  ;;  %v735_v54 = vpop.f32.mrf.mxu2  ;;  %962 = vmatpush.msra.mxu0 %v3752_v52 }
 0x1ee   :  { %v764_v16 = vpop.f32.mrf.mxu3  ;;  %v3756_v55 = vpop.eup %3755  ;;  %v736_v58 = vadd.f32 %v735_v54, %v4902_v45  ;;  %991 = vmatpush.msra.mxu1 %v3754_v53 }
 0x1ef   :  { %v765_v8 = vadd.f32 %v764_v16, %v4902_v45  ;;  %v3758_v3 = vpop.eup %3757  ;;  %963 = vmatpush.msra.mxu0 %v3756_v55 }
 0x1f0   :  { %v3760_v20 = vpop.eup %3759  ;;  %3763 = vtanh.f32 %v736_v58  ;;  %992 = vmatpush.msra.mxu1 %v3758_v3 }
 0x1f1   :  { %v3762_v14 = vpop.eup %3761  ;;  %3765 = vtanh.f32 %v765_v8  ;;  %964 = vmatpush.msra.mxu0 %v3760_v20 }
 0x1f2   :  { %3767 = vtanh.f32 %v733_v30  ;;  %v795_v31 = vpop.f32.mrf.mxu0  ;;  %993 = vmatpush.msra.mxu1 %v3762_v14  ;;  %3333 = vmatmul.msk.f32.vlgmr.msra.gmra.mxu0 %vm324_vm0, %v4929_v18 }
 0x1f3   :  { %v824_v17 = vpop.f32.mrf.mxu1  ;;  %3769 = vtanh.f32 %v762_v51  ;;  %3337 = vmatmul.msk.f32.vlgmr.msra.gmra.mxu1 %vm324_vm0, %v4929_v18  ;;  %v796_v47 = vadd.f32 %v795_v31, %v4909_v42  ;;  %v5039_v31 = vpop.permute.xlu1 %934 }
 0x1f4   :  { %3771 = vtanh.f32 %v730_v22  ;;  %v825_v37 = vadd.f32 %v824_v17, %v4909_v42 }
 0x1f5   :  { %3773 = vtanh.f32 %v759_v15 }
 0x1f6   :  { %v3764_v11 = vpop.eup %3763  ;;  %3775 = vtanh.f32 %v727_v21  ;;  %v4940_v46 = vpop.f32.mrf.mxu2 }
 0x1f7   :  { %v4942_v9 = vpop.f32.mrf.mxu3  ;;  %v3766_v13 = vpop.eup %3765  ;;  %3777 = vtanh.f32 %v756_v36  ;;  %1027 = vmatpush.msra.mxu2 %v3764_v11 }
 0x1f8   :  { %v3768_v4 = vpop.eup %3767  ;;  %1056 = vmatpush.msra.mxu3 %v3766_v13  ;;  %v5041_v11 = vpop.permute.xlu2 %929 }
 0x1f9   :  { %v3770_v5 = vpop.eup %3769  ;;  %1028 = vmatpush.msra.mxu2 %v3768_v4  ;;  %v5045_v4 = vpop.permute.xlu0 %924 }
 0x1fa   :  { %v3772_v27 = vpop.eup %3771  ;;  %v798_v23 = vpop.f32.mrf.mxu0  ;;  %1057 = vmatpush.msra.mxu3 %v3770_v5  ;;  %3334 = vmatmul.msk.f32.gmra.mxu0 %vm324_vm0, %v4947_v24 }
 0x1fb   :  { %v827_v57 = vpop.f32.mrf.mxu1  ;;  %v3774_v32 = vpop.eup %3773  ;;  %3338 = vmatmul.msk.f32.gmra.mxu1 %vm324_vm0, %v4947_v24  ;;  %1029 = vmatpush.msra.mxu2 %v3772_v27  ;;  %v799_v2 = vadd.f32 %v798_v23, %v4904_v56 }
 0x1fc   :  { %v3776_v0 = vpop.eup %3775  ;;  %1058 = vmatpush.msra.mxu3 %v3774_v32  ;;  %v828_v19 = vadd.f32 %v827_v57, %v4904_v56 }
 0x1fd   :  { %v3778_v6 = vpop.eup %3777  ;;  %1030 = vmatpush.msra.mxu2 %v3776_v0  ;;  %v5050_v0 = vpop.permute.xlu1 %919 }
 0x1fe   :  { %v861_v28 = vpop.f32.mrf.mxu2  ;;  %1059 = vmatpush.msra.mxu3 %v3778_v6  ;;  %3341 = vmatmul.msk.f32.vlgmr.msra.gmra.mxu2 %vm324_vm0, %v4929_v18 }
 0x1ff   :  { %v890_v33 = vpop.f32.mrf.mxu3  ;;  %3345 = vmatmul.msk.f32.vlgmr.msra.gmra.mxu3 %vm324_vm0, %v4929_v18  ;;  %v862_v53 = vadd.f32 %v861_v28, %v4909_v42 }
 0x200   :  { %v891_v16 = vadd.f32 %v890_v33, %v4909_v42 }
 0x202   :  { %v801_v1 = vpop.f32.mrf.mxu0  ;;  %3335 = vmatmul.msk.f32.gmra.mxu0 %vm324_vm0, %v4960_v34 }
 0x203   :  { %v830_v35 = vpop.f32.mrf.mxu1  ;;  %v802_v59 = vadd.f32 %v801_v1, %v4902_v45  ;;  %3339 = vmatmul.msk.f32.gmra.mxu1 %vm324_vm0, %v4960_v34 }
 0x204   :  { %v831_v12 = vadd.f32 %v830_v35, %v4902_v45 }
 0x205   :  { %3779 = vtanh.f32 %v802_v59 }
 0x206   :  { %3781 = vtanh.f32 %v831_v12  ;;  %v864_v7 = vpop.f32.mrf.mxu2  ;;  %3342 = vmatmul.msk.f32.gmra.mxu2 %vm324_vm0, %v4947_v24 }
 0x207   :  { %v893_v38 = vpop.f32.mrf.mxu3  ;;  %3783 = vtanh.f32 %v799_v2  ;;  %3346 = vmatmul.msk.f32.gmra.mxu3 %vm324_vm0, %v4947_v24  ;;  %v865_v49 = vadd.f32 %v864_v7, %v4904_v56 }
 0x208   :  { %3785 = vtanh.f32 %v828_v19  ;;  %v894_v10 = vadd.f32 %v893_v38, %v4904_v56  ;;  %v888_v56 = vadd.f32 %v4942_v9, %v4912_v61  ;;  %v5062_v38 = vld [vmem:[%s5923_s1 + $0x80] sm:$0xff] }
 0x209   :  { %3787 = vtanh.f32 %v796_v47 }
 0x20a   :  { %3789 = vtanh.f32 %v825_v37  ;;  %3336 = vmatmul.msk.f32.gmra.mxu0 %vm324_vm0, %v4981_v48 }
 0x20b   :  { %v3780_v41 = vpop.eup %3779  ;;  %3791 = vtanh.f32 %v793_v39  ;;  %3340 = vmatmul.msk.f32.gmra.mxu1 %vm324_vm0, %v4981_v48 }
 0x20c   :  { %v3782_v60 = vpop.eup %3781  ;;  %3793 = vtanh.f32 %v822_v62  ;;  %1093 = vmatpush.msrb.mxu0 %v3780_v41 }
 0x20d   :  { %v3784_v40 = vpop.eup %3783  ;;  %1122 = vmatpush.msrb.mxu1 %v3782_v60 }
 0x20e   :  { %v3786_v63 = vpop.eup %3785  ;;  %v867_v43 = vpop.f32.mrf.mxu2  ;;  %1094 = vmatpush.msrb.mxu0 %v3784_v40  ;;  %3343 = vmatmul.msk.f32.gmra.mxu2 %vm324_vm0, %v4960_v34 }
 0x20f   :  { %v896_v29 = vpop.f32.mrf.mxu3  ;;  %v3788_v44 = vpop.eup %3787  ;;  %v868_v50 = vadd.f32 %v867_v43, %v4902_v45  ;;  %1123 = vmatpush.msrb.mxu1 %v3786_v63  ;;  %3347 = vmatmul.msk.f32.gmra.mxu3 %vm324_vm0, %v4960_v34 }
 0x210   :  { %v897_v26 = vadd.f32 %v896_v29, %v4902_v45  ;;  %v3790_v25 = vpop.eup %3789  ;;  %1095 = vmatpush.msrb.mxu0 %v3788_v44  ;;  %v859_v45 = vadd.f32 %v4940_v46, %v4912_v61 }
 0x211   :  { %v3792_v52 = vpop.eup %3791  ;;  %3795 = vtanh.f32 %v868_v50  ;;  %1124 = vmatpush.msrb.mxu1 %v3790_v25  ;;  %v5076_v50 = vld [vmem:[%s5923_s1 + $0x88] sm:$0xff] }
 0x212   :  { %v3794_v54 = vpop.eup %3793  ;;  %3797 = vtanh.f32 %v897_v26  ;;  %1096 = vmatpush.msrb.mxu0 %v3792_v52 }
 0x213   :  { %3799 = vtanh.f32 %v865_v49  ;;  %1125 = vmatpush.msrb.mxu1 %v3794_v54  ;;  %3349 = vmatmul.msk.f32.vlgmr.msrb.gmra.mxu0 %vm324_vm0, %v4929_v18 }
 0x214   :  { %3801 = vtanh.f32 %v894_v10  ;;  %3353 = vmatmul.msk.f32.vlgmr.msrb.gmra.mxu1 %vm324_vm0, %v4929_v18 }
 0x215   :  { %3803 = vtanh.f32 %v862_v53 }
 0x216   :  { %3805 = vtanh.f32 %v891_v16  ;;  %3344 = vmatmul.msk.f32.gmra.mxu2 %vm324_vm0, %v4981_v48 }
 0x217   :  { %v3796_v42 = vpop.eup %3795  ;;  %3807 = vtanh.f32 %v859_v45  ;;  %3348 = vmatmul.msk.f32.gmra.mxu3 %vm324_vm0, %v4981_v48 }
 0x218   :  { %v3798_v55 = vpop.eup %3797  ;;  %3809 = vtanh.f32 %v888_v56  ;;  %1159 = vmatpush.msrb.mxu2 %v3796_v42 }
 0x219   :  { %v3800_v30 = vpop.eup %3799  ;;  %1188 = vmatpush.msrb.mxu3 %v3798_v55  ;;  %v5092_v55 = vld [vmem:[%s5923_s1 + $0x90] sm:$0xff] }
 0x21a   :  { %v3802_v61 = vpop.eup %3801  ;;  %1160 = vmatpush.msrb.mxu2 %v3800_v30 }
 0x21b   :  { %v3804_v58 = vpop.eup %3803  ;;  %1189 = vmatpush.msrb.mxu3 %v3802_v61  ;;  %3350 = vmatmul.msk.f32.gmra.mxu0 %vm324_vm0, %v4947_v24 }
 0x21c   :  { %v3806_v8 = vpop.eup %3805  ;;  %3354 = vmatmul.msk.f32.gmra.mxu1 %vm324_vm0, %v4947_v24  ;;  %1161 = vmatpush.msrb.mxu2 %v3804_v58 }
 0x21d   :  { %v3808_v3 = vpop.eup %3807  ;;  %1190 = vmatpush.msrb.mxu3 %v3806_v8 }
 0x21e   :  { %v3810_v51 = vpop.eup %3809  ;;  %1162 = vmatpush.msrb.mxu2 %v3808_v3 }
 0x21f   :  { %1191 = vmatpush.msrb.mxu3 %v3810_v51  ;;  %3357 = vmatmul.msk.f32.vlgmr.msrb.gmra.mxu2 %vm324_vm0, %v4929_v18 }
 0x220   :  { %3361 = vmatmul.msk.f32.vlgmr.msrb.gmra.mxu3 %vm324_vm0, %v4929_v18 }
 0x223   :  { %3351 = vmatmul.msk.f32.gmra.mxu0 %vm324_vm0, %v4960_v34 }
 0x224   :  { %3355 = vmatmul.msk.f32.gmra.mxu1 %vm324_vm0, %v4960_v34 }
 0x227   :  { %3358 = vmatmul.msk.f32.gmra.mxu2 %vm324_vm0, %v4947_v24 }
 0x228   :  { %3362 = vmatmul.msk.f32.gmra.mxu3 %vm324_vm0, %v4947_v24 }
 0x22b   :  { %3352 = vmatmul.msk.f32.gmra.mxu0 %vm324_vm0, %v4981_v48 }
 0x22c   :  { %3356 = vmatmul.msk.f32.gmra.mxu1 %vm324_vm0, %v4981_v48 }
 0x22f   :  { %3359 = vmatmul.msk.f32.gmra.mxu2 %vm324_vm0, %v4960_v34 }
 0x230   :  { %3363 = vmatmul.msk.f32.gmra.mxu3 %vm324_vm0, %v4960_v34 }
 0x237   :  { %3360 = vmatmul.msk.f32.gmra.mxu2 %vm324_vm0, %v4981_v48 }
 0x238   :  { %3364 = vmatmul.msk.f32.gmra.mxu3 %vm324_vm0, %v4981_v48 }
 0x26f   :  { %v966_v18 = vpop.f32.mrf.mxu0 }
 0x270   :  { %v995_v20 = vpop.f32.mrf.mxu1  ;;  %v967_v28 = vadd.f32 %v966_v18, %v5050_v0 }
 0x271   :  { %v996_v33 = vadd.f32 %v995_v20, %v5050_v0 }
 0x277   :  { %v969_v22 = vpop.f32.mrf.mxu0 }
 0x278   :  { %v998_v14 = vpop.f32.mrf.mxu1  ;;  %v970_v57 = vadd.f32 %v969_v22, %v5045_v4 }
 0x279   :  { %v999_v6 = vadd.f32 %v998_v14, %v5045_v4 }
 0x27f   :  { %v972_v15 = vpop.f32.mrf.mxu0 }
 0x280   :  { %v1001_v21 = vpop.f32.mrf.mxu1  ;;  %v973_v9 = vadd.f32 %v972_v15, %v5041_v11 }
 0x281   :  { %v1032_v17 = vpop.f32.mrf.mxu2  ;;  %v1002_v5 = vadd.f32 %v1001_v21, %v5041_v11 }
 0x282   :  { %v1061_v36 = vpop.f32.mrf.mxu3  ;;  %v1033_v25 = vadd.f32 %v1032_v17, %v5050_v0 }
 0x283   :  { %v1062_v10 = vadd.f32 %v1061_v36, %v5050_v0 }
 0x287   :  { %v975_v46 = vpop.f32.mrf.mxu0 }
 0x288   :  { %v976_v13 = vadd.f32 %v975_v46, %v5039_v31  ;;  %v1004_v24 = vpop.f32.mrf.mxu1 }
 0x289   :  { %v1005_v27 = vadd.f32 %v1004_v24, %v5039_v31  ;;  %v1035_v23 = vpop.f32.mrf.mxu2 }
 0x28a   :  { %3811 = vtanh.f32 %v976_v13  ;;  %v1064_v32 = vpop.f32.mrf.mxu3  ;;  %v1036_v49 = vadd.f32 %v1035_v23, %v5045_v4  ;;  %v5113_v13 = vld [vmem:[%s5923_s1 + $0x98] sm:$0xff] }
 0x28b   :  { %3813 = vtanh.f32 %v1005_v27  ;;  %v1065_v26 = vadd.f32 %v1064_v32, %v5045_v4 }
 0x28c   :  { %3815 = vtanh.f32 %v973_v9 }
 0x28d   :  { %3817 = vtanh.f32 %v1002_v5 }
 0x28e   :  { %3819 = vtanh.f32 %v970_v57 }
 0x28f   :  { %3821 = vtanh.f32 %v999_v6 }
 0x290   :  { %v3812_v34 = vpop.eup %3811  ;;  %3823 = vtanh.f32 %v967_v28  ;;  %v5055_v1 = vpop.f32.mrf.mxu0 }
 0x291   :  { %v3814_v35 = vpop.eup %3813  ;;  %3825 = vtanh.f32 %v996_v33  ;;  %v5057_v2 = vpop.f32.mrf.mxu1  ;;  %1267 = vmatpush.msra.mxu0 %v3812_v34  ;;  %v1099_v9 = vadd.f32 %v5055_v1, %v5050_v0 }
 0x292   :  { %v1038_v59 = vpop.f32.mrf.mxu2  ;;  %v3816_v12 = vpop.eup %3815  ;;  %1296 = vmatpush.msra.mxu1 %v3814_v35  ;;  %v1128_v24 = vadd.f32 %v5057_v2, %v5050_v0 }
 0x293   :  { %v1067_v19 = vpop.f32.mrf.mxu3  ;;  %v3818_v47 = vpop.eup %3817  ;;  %1268 = vmatpush.msra.mxu0 %v3816_v12  ;;  %v1039_v43 = vadd.f32 %v1038_v59, %v5041_v11 }
 0x294   :  { %v3820_v37 = vpop.eup %3819  ;;  %1297 = vmatpush.msra.mxu1 %v3818_v47  ;;  %v1068_v44 = vadd.f32 %v1067_v19, %v5041_v11 }
 0x295   :  { %v3822_v7 = vpop.eup %3821  ;;  %1269 = vmatpush.msra.mxu0 %v3820_v37 }
 0x296   :  { %v3824_v39 = vpop.eup %3823  ;;  %1298 = vmatpush.msra.mxu1 %v3822_v7 }
 0x297   :  { %v3826_v48 = vpop.eup %3825  ;;  %1270 = vmatpush.msra.mxu0 %v3824_v39 }
 0x298   :  { %v1101_v62 = vpop.f32.mrf.mxu0  ;;  %1299 = vmatpush.msra.mxu1 %v3826_v48  ;;  %3373 = vmatmul.msk.f32.vlgmr.msra.gmra.mxu0 %vm324_vm0, %v5062_v38 }
 0x299   :  { %v1130_v41 = vpop.f32.mrf.mxu1  ;;  %3377 = vmatmul.msk.f32.vlgmr.msra.gmra.mxu1 %vm324_vm0, %v5062_v38  ;;  %v1102_v17 = vadd.f32 %v1101_v62, %v5045_v4 }
 0x29a   :  { %v1041_v60 = vpop.f32.mrf.mxu2  ;;  %v1131_v46 = vadd.f32 %v1130_v41, %v5045_v4 }
 0x29b   :  { %v1042_v40 = vadd.f32 %v1041_v60, %v5039_v31  ;;  %v1070_v63 = vpop.f32.mrf.mxu3 }
 0x29c   :  { %v1071_v29 = vadd.f32 %v1070_v63, %v5039_v31 }
 0x29d   :  { %3827 = vtanh.f32 %v1042_v40 }
 0x29e   :  { %3829 = vtanh.f32 %v1071_v29 }
 0x29f   :  { %3831 = vtanh.f32 %v1039_v43 }
 0x2a0   :  { %3833 = vtanh.f32 %v1068_v44  ;;  %v1104_v52 = vpop.f32.mrf.mxu0  ;;  %3374 = vmatmul.msk.f32.gmra.mxu0 %vm324_vm0, %v5076_v50 }
 0x2a1   :  { %3835 = vtanh.f32 %v1036_v49  ;;  %v1133_v53 = vpop.f32.mrf.mxu1  ;;  %3378 = vmatmul.msk.f32.gmra.mxu1 %vm324_vm0, %v5076_v50  ;;  %v1105_v51 = vadd.f32 %v1104_v52, %v5041_v11 }
 0x2a2   :  { %3837 = vtanh.f32 %v1065_v26  ;;  %v5085_v54 = vpop.f32.mrf.mxu2  ;;  %v1134_v14 = vadd.f32 %v1133_v53, %v5041_v11  ;;  %v5175_v26 = vpop.permute.xlu2 %1240 }
 0x2a3   :  { %v3828_v16 = vpop.eup %3827  ;;  %3839 = vtanh.f32 %v1033_v25  ;;  %v5087_v45 = vpop.f32.mrf.mxu3  ;;  %v1165_v39 = vadd.f32 %v5085_v54, %v5050_v0 }
 0x2a4   :  { %v3830_v56 = vpop.eup %3829  ;;  %3841 = vtanh.f32 %v1062_v10  ;;  %1333 = vmatpush.msra.mxu2 %v3828_v16  ;;  %v1194_v48 = vadd.f32 %v5087_v45, %v5050_v0  ;;  %v5181_v16 = vpop.permute.xlu1 %1230 }
 0x2a5   :  { %v3832_v42 = vpop.eup %3831  ;;  %1362 = vmatpush.msra.mxu3 %v3830_v56 }
 0x2a6   :  { %v3834_v30 = vpop.eup %3833  ;;  %1334 = vmatpush.msra.mxu2 %v3832_v42 }
 0x2a7   :  { %v3836_v61 = vpop.eup %3835  ;;  %1363 = vmatpush.msra.mxu3 %v3834_v30 }
 0x2a8   :  { %v3838_v58 = vpop.eup %3837  ;;  %v1107_v8 = vpop.f32.mrf.mxu0  ;;  %1335 = vmatpush.msra.mxu2 %v3836_v61  ;;  %3375 = vmatmul.msk.f32.gmra.mxu0 %vm324_vm0, %v5092_v55 }
 0x2a9   :  { %v3840_v3 = vpop.eup %3839  ;;  %v1108_v18 = vadd.f32 %v1107_v8, %v5039_v31  ;;  %v1136_v20 = vpop.f32.mrf.mxu1  ;;  %1364 = vmatpush.msra.mxu3 %v3838_v58  ;;  %3379 = vmatmul.msk.f32.gmra.mxu1 %vm324_vm0, %v5092_v55 }
 0x2aa   :  { %v3842_v22 = vpop.eup %3841  ;;  %v1137_v15 = vadd.f32 %v1136_v20, %v5039_v31  ;;  %v1167_v21 = vpop.f32.mrf.mxu2  ;;  %1336 = vmatpush.msra.mxu2 %v3840_v3 }
 0x2ab   :  { %3843 = vtanh.f32 %v1108_v18  ;;  %v1196_v36 = vpop.f32.mrf.mxu3  ;;  %1365 = vmatpush.msra.mxu3 %v3842_v22  ;;  %3381 = vmatmul.msk.f32.vlgmr.msra.gmra.mxu2 %vm324_vm0, %v5062_v38  ;;  %v1168_v37 = vadd.f32 %v1167_v21, %v5045_v4  ;;  %v5186_v30 = vpop.permute.xlu2 %1225 }
 0x2ac   :  { %3845 = vtanh.f32 %v1137_v15  ;;  %3385 = vmatmul.msk.f32.vlgmr.msra.gmra.mxu3 %vm324_vm0, %v5062_v38  ;;  %v1197_v7 = vadd.f32 %v1196_v36, %v5045_v4 }
 0x2ad   :  { %3847 = vtanh.f32 %v1105_v51 }
 0x2ae   :  { %3849 = vtanh.f32 %v1134_v14 }
 0x2af   :  { %3851 = vtanh.f32 %v1102_v17 }
 0x2b0   :  { %3853 = vtanh.f32 %v1131_v46  ;;  %3376 = vmatmul.msk.f32.gmra.mxu0 %vm324_vm0, %v5113_v13  ;;  %v5198_v46 = vld [vmem:[%s5923_s1 + $0xa0] sm:$0xff] }
 0x2b1   :  { %v3844_v5 = vpop.eup %3843  ;;  %3855 = vtanh.f32 %v1099_v9  ;;  %3380 = vmatmul.msk.f32.gmra.mxu1 %vm324_vm0, %v5113_v13 }
 0x2b2   :  { %v3846_v27 = vpop.eup %3845  ;;  %3857 = vtanh.f32 %v1128_v24  ;;  %v1170_v23 = vpop.f32.mrf.mxu2  ;;  %1399 = vmatpush.msrb.mxu0 %v3844_v5 }
 0x2b3   :  { %v3848_v57 = vpop.eup %3847  ;;  %v1199_v32 = vpop.f32.mrf.mxu3  ;;  %1428 = vmatpush.msrb.mxu1 %v3846_v27  ;;  %3382 = vmatmul.msk.f32.gmra.mxu2 %vm324_vm0, %v5076_v50  ;;  %v1171_v2 = vadd.f32 %v1170_v23, %v5041_v11 }
 0x2b4   :  { %v3850_v6 = vpop.eup %3849  ;;  %3386 = vmatmul.msk.f32.gmra.mxu3 %vm324_vm0, %v5076_v50  ;;  %1400 = vmatpush.msrb.mxu0 %v3848_v57  ;;  %v1200_v19 = vadd.f32 %v1199_v32, %v5041_v11  ;;  %v5207_v57 = vld [vmem:[%s5923_s1 + $0xa8] sm:$0xff] }
 0x2b5   :  { %v3852_v28 = vpop.eup %3851  ;;  %1429 = vmatpush.msrb.mxu1 %v3850_v6 }
 0x2b6   :  { %v3854_v33 = vpop.eup %3853  ;;  %1401 = vmatpush.msrb.mxu0 %v3852_v28 }
 0x2b7   :  { %v3856_v34 = vpop.eup %3855  ;;  %1430 = vmatpush.msrb.mxu1 %v3854_v33 }
 0x2b8   :  { %v3858_v1 = vpop.eup %3857  ;;  %1402 = vmatpush.msrb.mxu0 %v3856_v34 }
 0x2b9   :  { %1431 = vmatpush.msrb.mxu1 %v3858_v1  ;;  %3389 = vmatmul.msk.f32.vlgmr.msrb.gmra.mxu0 %vm324_vm0, %v5062_v38 }
 0x2ba   :  { %3393 = vmatmul.msk.f32.vlgmr.msrb.gmra.mxu1 %vm324_vm0, %v5062_v38  ;;  %v1173_v35 = vpop.f32.mrf.mxu2 }
 0x2bb   :  { %v1174_v59 = vadd.f32 %v1173_v35, %v5039_v31  ;;  %v1202_v12 = vpop.f32.mrf.mxu3  ;;  %3383 = vmatmul.msk.f32.gmra.mxu2 %vm324_vm0, %v5092_v55 }
 0x2bc   :  { %v1203_v47 = vadd.f32 %v1202_v12, %v5039_v31  ;;  %3387 = vmatmul.msk.f32.gmra.mxu3 %vm324_vm0, %v5092_v55 }
 0x2bd   :  { %3859 = vtanh.f32 %v1174_v59 }
 0x2be   :  { %3861 = vtanh.f32 %v1203_v47  ;;  %v5223_v47 = vld [vmem:[%s5923_s1 + $0xb0] sm:$0xff] }
 0x2bf   :  { %3863 = vtanh.f32 %v1171_v2 }
 0x2c0   :  { %3865 = vtanh.f32 %v1200_v19 }
 0x2c1   :  { %3867 = vtanh.f32 %v1168_v37  ;;  %3390 = vmatmul.msk.f32.gmra.mxu0 %vm324_vm0, %v5076_v50 }
 0x2c2   :  { %3869 = vtanh.f32 %v1197_v7  ;;  %3394 = vmatmul.msk.f32.gmra.mxu1 %vm324_vm0, %v5076_v50 }
 0x2c3   :  { %v3860_v31 = vpop.eup %3859  ;;  %3871 = vtanh.f32 %v1165_v39  ;;  %3384 = vmatmul.msk.f32.gmra.mxu2 %vm324_vm0, %v5113_v13 }
 0x2c4   :  { %v3862_v11 = vpop.eup %3861  ;;  %3873 = vtanh.f32 %v1194_v48  ;;  %3388 = vmatmul.msk.f32.gmra.mxu3 %vm324_vm0, %v5113_v13  ;;  %1465 = vmatpush.msrb.mxu2 %v3860_v31 }
 0x2c5   :  { %v3864_v4 = vpop.eup %3863  ;;  %1494 = vmatpush.msrb.mxu3 %v3862_v11 }
 0x2c6   :  { %v3866_v0 = vpop.eup %3865  ;;  %1466 = vmatpush.msrb.mxu2 %v3864_v4 }
 0x2c7   :  { %v3868_v62 = vpop.eup %3867  ;;  %1495 = vmatpush.msrb.mxu3 %v3866_v0 }
 0x2c8   :  { %v3870_v41 = vpop.eup %3869  ;;  %1467 = vmatpush.msrb.mxu2 %v3868_v62 }
 0x2c9   :  { %v3872_v60 = vpop.eup %3871  ;;  %1496 = vmatpush.msrb.mxu3 %v3870_v41  ;;  %3391 = vmatmul.msk.f32.gmra.mxu0 %vm324_vm0, %v5092_v55 }
 0x2ca   :  { %v3874_v40 = vpop.eup %3873  ;;  %3395 = vmatmul.msk.f32.gmra.mxu1 %vm324_vm0, %v5092_v55  ;;  %1468 = vmatpush.msrb.mxu2 %v3872_v60 }
 0x2cb   :  { %1497 = vmatpush.msrb.mxu3 %v3874_v40  ;;  %3397 = vmatmul.msk.f32.vlgmr.msrb.gmra.mxu2 %vm324_vm0, %v5062_v38 }
 0x2cc   :  { %3401 = vmatmul.msk.f32.vlgmr.msrb.gmra.mxu3 %vm324_vm0, %v5062_v38 }
 0x2d1   :  { %3392 = vmatmul.msk.f32.gmra.mxu0 %vm324_vm0, %v5113_v13 }
 0x2d2   :  { %3396 = vmatmul.msk.f32.gmra.mxu1 %vm324_vm0, %v5113_v13 }
 0x2d3   :  { %3398 = vmatmul.msk.f32.gmra.mxu2 %vm324_vm0, %v5076_v50 }
 0x2d4   :  { %3402 = vmatmul.msk.f32.gmra.mxu3 %vm324_vm0, %v5076_v50  ;;  %v5177_v50 = vpop.permute.xlu0 %1235 }
 0x2db   :  { %3399 = vmatmul.msk.f32.gmra.mxu2 %vm324_vm0, %v5092_v55 }
 0x2dc   :  { %3403 = vmatmul.msk.f32.gmra.mxu3 %vm324_vm0, %v5092_v55 }
 0x2e3   :  { %3400 = vmatmul.msk.f32.gmra.mxu2 %vm324_vm0, %v5113_v13 }
 0x2e4   :  { %3404 = vmatmul.msk.f32.gmra.mxu3 %vm324_vm0, %v5113_v13 }
 0x315   :  { %v1272_v38 = vpop.f32.mrf.mxu0 }
 0x316   :  { %v1301_v63 = vpop.f32.mrf.mxu1  ;;  %v1273_v58 = vadd.f32 %v1272_v38, %v5186_v30 }
 0x317   :  { %v1302_v8 = vadd.f32 %v1301_v63, %v5186_v30 }
 0x31d   :  { %v1275_v43 = vpop.f32.mrf.mxu0 }
 0x31e   :  { %v1304_v29 = vpop.f32.mrf.mxu1  ;;  %v1276_v55 = vadd.f32 %v1275_v43, %v5181_v16 }
 0x31f   :  { %v1305_v61 = vadd.f32 %v1304_v29, %v5181_v16 }
 0x325   :  { %v1278_v44 = vpop.f32.mrf.mxu0 }
 0x326   :  { %v1307_v49 = vpop.f32.mrf.mxu1  ;;  %v1279_v10 = vadd.f32 %v1278_v44, %v5177_v50 }
 0x327   :  { %v1308_v45 = vadd.f32 %v1307_v49, %v5177_v50  ;;  %v5245_v49 = vld [vmem:[%s5923_s1 + $0xb8] sm:$0xff] }
 0x32d   :  { %v1281_v25 = vpop.f32.mrf.mxu0 }
 0x32e   :  { %v1282_v52 = vadd.f32 %v1281_v25, %v5175_v26  ;;  %v1310_v53 = vpop.f32.mrf.mxu1  ;;  %v1338_v54 = vpop.f32.mrf.mxu2 }
 0x32f   :  { %v1311_v56 = vadd.f32 %v1310_v53, %v5175_v26  ;;  %v1367_v42 = vpop.f32.mrf.mxu3  ;;  %v1339_v19 = vadd.f32 %v1338_v54, %v5186_v30 }
 0x330   :  { %3875 = vtanh.f32 %v1282_v52  ;;  %v1368_v37 = vadd.f32 %v1367_v42, %v5186_v30 }
 0x331   :  { %3877 = vtanh.f32 %v1311_v56 }
 0x332   :  { %3879 = vtanh.f32 %v1279_v10 }
 0x333   :  { %3881 = vtanh.f32 %v1308_v45 }
 0x334   :  { %3883 = vtanh.f32 %v1276_v55 }
 0x335   :  { %3885 = vtanh.f32 %v1305_v61 }
 0x336   :  { %v3876_v3 = vpop.eup %3875  ;;  %3887 = vtanh.f32 %v1273_v58  ;;  %v1341_v51 = vpop.f32.mrf.mxu2 }
 0x337   :  { %v5191_v18 = vpop.f32.mrf.mxu0  ;;  %v3878_v20 = vpop.eup %3877  ;;  %3889 = vtanh.f32 %v1302_v8  ;;  %1573 = vmatpush.msra.mxu0 %v3876_v3  ;;  %v1342_v59 = vadd.f32 %v1341_v51, %v5181_v16 }
 0x338   :  { %v1370_v22 = vpop.f32.mrf.mxu3  ;;  %v5193_v14 = vpop.f32.mrf.mxu1  ;;  %1602 = vmatpush.msra.mxu1 %v3878_v20  ;;  %v1405_v44 = vadd.f32 %v5191_v18, %v5186_v30 }
 0x339   :  { %v3880_v15 = vpop.eup %3879  ;;  %v1371_v12 = vadd.f32 %v1370_v22, %v5181_v16  ;;  %v1434_v10 = vadd.f32 %v5193_v14, %v5186_v30 }
 0x33a   :  { %v3882_v21 = vpop.eup %3881  ;;  %1574 = vmatpush.msra.mxu0 %v3880_v15 }
 0x33b   :  { %v3884_v17 = vpop.eup %3883  ;;  %1603 = vmatpush.msra.mxu1 %v3882_v21 }
 0x33c   :  { %v3886_v36 = vpop.eup %3885  ;;  %1575 = vmatpush.msra.mxu0 %v3884_v17 }
 0x33d   :  { %v3888_v9 = vpop.eup %3887  ;;  %1604 = vmatpush.msra.mxu1 %v3886_v36 }
 0x33e   :  { %v3890_v13 = vpop.eup %3889  ;;  %1576 = vmatpush.msra.mxu0 %v3888_v9  ;;  %v1344_v24 = vpop.f32.mrf.mxu2 }
 0x33f   :  { %v1407_v5 = vpop.f32.mrf.mxu0  ;;  %1605 = vmatpush.msra.mxu1 %v3890_v13  ;;  %3413 = vmatmul.msk.f32.vlgmr.msra.gmra.mxu0 %vm324_vm0, %v5198_v46  ;;  %v1345_v28 = vadd.f32 %v1344_v24, %v5177_v50 }
 0x340   :  { %v1373_v27 = vpop.f32.mrf.mxu3  ;;  %v1436_v23 = vpop.f32.mrf.mxu1  ;;  %3417 = vmatmul.msk.f32.vlgmr.msra.gmra.mxu1 %vm324_vm0, %v5198_v46  ;;  %v1408_v38 = vadd.f32 %v1407_v5, %v5181_v16 }
 0x341   :  { %v1374_v35 = vadd.f32 %v1373_v27, %v5177_v50  ;;  %v1437_v43 = vadd.f32 %v1436_v23, %v5181_v16 }
 0x346   :  { %v1347_v32 = vpop.f32.mrf.mxu2 }
 0x347   :  { %v1410_v6 = vpop.f32.mrf.mxu0  ;;  %3414 = vmatmul.msk.f32.gmra.mxu0 %vm324_vm0, %v5207_v57  ;;  %v1348_v33 = vadd.f32 %v1347_v32, %v5175_v26 }
 0x348   :  { %v1376_v34 = vpop.f32.mrf.mxu3  ;;  %v1439_v1 = vpop.f32.mrf.mxu1  ;;  %3418 = vmatmul.msk.f32.gmra.mxu1 %vm324_vm0, %v5207_v57  ;;  %v1411_v31 = vadd.f32 %v1410_v6, %v5177_v50 }
 0x349   :  { %v1377_v2 = vadd.f32 %v1376_v34, %v5175_v26  ;;  %3891 = vtanh.f32 %v1348_v33  ;;  %v1440_v41 = vadd.f32 %v1439_v1, %v5177_v50 }
 0x34b   :  { %3893 = vtanh.f32 %v1377_v2  ;;  %v5311_v2 = vpop.permute.xlu0 %1546 }
 0x34c   :  { %3895 = vtanh.f32 %v1345_v28 }
 0x34d   :  { %3897 = vtanh.f32 %v1374_v35 }
 0x34e   :  { %3899 = vtanh.f32 %v1342_v59  ;;  %v5226_v39 = vpop.f32.mrf.mxu2 }
 0x34f   :  { %3901 = vtanh.f32 %v1371_v12  ;;  %v1413_v7 = vpop.f32.mrf.mxu0  ;;  %3415 = vmatmul.msk.f32.gmra.mxu0 %vm324_vm0, %v5223_v47  ;;  %v3892_v48 = vpop.eup %3891  ;;  %v1471_v13 = vadd.f32 %v5226_v39, %v5186_v30 }
 0x350   :  { %3903 = vtanh.f32 %v1339_v19  ;;  %v1414_v11 = vadd.f32 %v1413_v7, %v5175_v26  ;;  %v1442_v4 = vpop.f32.mrf.mxu1  ;;  %v5232_v0 = vpop.f32.mrf.mxu3  ;;  %3419 = vmatmul.msk.f32.gmra.mxu1 %vm324_vm0, %v5223_v47  ;;  %1639 = vmatpush.msra.mxu2 %v3892_v48 }
 0x351   :  { %v3894_v62 = vpop.eup %3893  ;;  %3905 = vtanh.f32 %v1368_v37  ;;  %v1443_v60 = vadd.f32 %v1442_v4, %v5175_v26  ;;  %v1500_v24 = vadd.f32 %v5232_v0, %v5186_v30  ;;  %v5317_v37 = vpop.permute.xlu2 %1536 }
 0x352   :  { %v3896_v40 = vpop.eup %3895  ;;  %3907 = vtanh.f32 %v1414_v11  ;;  %1668 = vmatpush.msra.mxu3 %v3894_v62 }
 0x353   :  { %v3898_v63 = vpop.eup %3897  ;;  %3909 = vtanh.f32 %v1443_v60  ;;  %1640 = vmatpush.msra.mxu2 %v3896_v40 }
 0x354   :  { %v3900_v29 = vpop.eup %3899  ;;  %3911 = vtanh.f32 %v1411_v31  ;;  %1669 = vmatpush.msra.mxu3 %v3898_v63  ;;  %v5322_v31 = vpop.permute.xlu0 %1531 }
 0x355   :  { %v3902_v25 = vpop.eup %3901  ;;  %3913 = vtanh.f32 %v1440_v41  ;;  %1641 = vmatpush.msra.mxu2 %v3900_v29 }
 0x356   :  { %v3904_v52 = vpop.eup %3903  ;;  %3915 = vtanh.f32 %v1408_v38  ;;  %1670 = vmatpush.msra.mxu3 %v3902_v25  ;;  %v1473_v54 = vpop.f32.mrf.mxu2  ;;  %v5334_v25 = vld [vmem:[%s5923_s1 + $0xc0] sm:$0xff] }
 0x357   :  { %v3906_v53 = vpop.eup %3905  ;;  %3917 = vtanh.f32 %v1437_v43  ;;  %1642 = vmatpush.msra.mxu2 %v3904_v52  ;;  %3416 = vmatmul.msk.f32.gmra.mxu0 %vm324_vm0, %v5245_v49  ;;  %v1474_v9 = vadd.f32 %v1473_v54, %v5181_v16 }
 0x358   :  { %v3908_v45 = vpop.eup %3907  ;;  %3919 = vtanh.f32 %v1405_v44  ;;  %v1502_v56 = vpop.f32.mrf.mxu3  ;;  %1671 = vmatpush.msra.mxu3 %v3906_v53  ;;  %3420 = vmatmul.msk.f32.gmra.mxu1 %vm324_vm0, %v5245_v49 }
 0x359   :  { %v3910_v42 = vpop.eup %3909  ;;  %3921 = vtanh.f32 %v1434_v10  ;;  %3421 = vmatmul.msk.f32.vlgmr.msra.gmra.mxu2 %vm324_vm0, %v5198_v46  ;;  %3425 = vmatmul.msk.f32.vlgmr.msra.gmra.mxu3 %vm324_vm0, %v5198_v46 }
 0x35a   :  { %v3912_v55 = vpop.eup %3911  ;;  %1705 = vmatpush.msrb.mxu0 %v3908_v45  ;;  %1734 = vmatpush.msrb.mxu1 %v3910_v42  ;;  %v5343_v42 = vld [vmem:[%s5923_s1 + $0xc8] sm:$0xff] }
 0x35b   :  { %v3914_v61 = vpop.eup %3913 }
 0x35c   :  { %v3916_v58 = vpop.eup %3915  ;;  %1706 = vmatpush.msrb.mxu0 %v3912_v55  ;;  %1735 = vmatpush.msrb.mxu1 %v3914_v61 }
 0x35d   :  { %v3918_v8 = vpop.eup %3917 }
 0x35e   :  { %v3920_v3 = vpop.eup %3919  ;;  %1707 = vmatpush.msrb.mxu0 %v3916_v58  ;;  %1736 = vmatpush.msrb.mxu1 %v3918_v8  ;;  %v1476_v18 = vpop.f32.mrf.mxu2 }
 0x35f   :  { %v3922_v51 = vpop.eup %3921  ;;  %v1477_v21 = vadd.f32 %v1476_v18, %v5177_v50 }
 0x360   :  { %v1505_v20 = vpop.f32.mrf.mxu3  ;;  %1708 = vmatpush.msrb.mxu0 %v3920_v3  ;;  %1737 = vmatpush.msrb.mxu1 %v3922_v51 }
 0x361   :  { %3422 = vmatmul.msk.f32.gmra.mxu2 %vm324_vm0, %v5207_v57  ;;  %3426 = vmatmul.msk.f32.gmra.mxu3 %vm324_vm0, %v5207_v57  ;;  %v1506_v36 = vadd.f32 %v1505_v20, %v5177_v50 }
 0x362   :  { %3429 = vmatmul.msk.f32.vlgmr.msrb.gmra.mxu0 %vm324_vm0, %v5198_v46  ;;  %3433 = vmatmul.msk.f32.vlgmr.msrb.gmra.mxu1 %vm324_vm0, %v5198_v46 }
 0x366   :  { %v1479_v22 = vpop.f32.mrf.mxu2 }
 0x367   :  { %v1480_v14 = vadd.f32 %v1479_v22, %v5175_v26 }
 0x368   :  { %v1508_v15 = vpop.f32.mrf.mxu3 }
 0x369   :  { %v1509_v17 = vadd.f32 %v1508_v15, %v5175_v26  ;;  %3423 = vmatmul.msk.f32.gmra.mxu2 %vm324_vm0, %v5223_v47  ;;  %3427 = vmatmul.msk.f32.gmra.mxu3 %vm324_vm0, %v5223_v47  ;;  %3923 = vtanh.f32 %v1480_v14  ;;  %v1503_v26 = vadd.f32 %v1502_v56, %v5181_v16  ;;  %v5357_v14 = vld [vmem:[%s5923_s1 + $0xd0] sm:$0xff] }
 0x36a   :  { %3430 = vmatmul.msk.f32.gmra.mxu0 %vm324_vm0, %v5207_v57  ;;  %3434 = vmatmul.msk.f32.gmra.mxu1 %vm324_vm0, %v5207_v57 }
 0x36b   :  { %3925 = vtanh.f32 %v1509_v17 }
 0x36c   :  { %3927 = vtanh.f32 %v1477_v21 }
 0x36d   :  { %3929 = vtanh.f32 %v1506_v36 }
 0x36e   :  { %3931 = vtanh.f32 %v1474_v9 }
 0x36f   :  { %v3924_v50 = vpop.eup %3923  ;;  %3933 = vtanh.f32 %v1503_v26 }
 0x370   :  { %3935 = vtanh.f32 %v1471_v13  ;;  %1771 = vmatpush.msrb.mxu2 %v3924_v50 }
 0x371   :  { %v3926_v5 = vpop.eup %3925  ;;  %3424 = vmatmul.msk.f32.gmra.mxu2 %vm324_vm0, %v5245_v49  ;;  %3428 = vmatmul.msk.f32.gmra.mxu3 %vm324_vm0, %v5245_v49  ;;  %3937 = vtanh.f32 %v1500_v24 }
 0x372   :  { %3431 = vmatmul.msk.f32.gmra.mxu0 %vm324_vm0, %v5223_v47  ;;  %3435 = vmatmul.msk.f32.gmra.mxu1 %vm324_vm0, %v5223_v47  ;;  %v3928_v16 = vpop.eup %3927 }
 0x373   :  { %1800 = vmatpush.msrb.mxu3 %v3926_v5  ;;  %v3930_v30 = vpop.eup %3929  ;;  %1772 = vmatpush.msrb.mxu2 %v3928_v16 }
 0x374   :  { %v3932_v27 = vpop.eup %3931 }
 0x375   :  { %1801 = vmatpush.msrb.mxu3 %v3930_v30  ;;  %v3934_v23 = vpop.eup %3933  ;;  %1773 = vmatpush.msrb.mxu2 %v3932_v27 }
 0x376   :  { %v3936_v32 = vpop.eup %3935 }
 0x377   :  { %1802 = vmatpush.msrb.mxu3 %v3934_v23  ;;  %v3938_v6 = vpop.eup %3937  ;;  %1774 = vmatpush.msrb.mxu2 %v3936_v32 }
 0x379   :  { %1803 = vmatpush.msrb.mxu3 %v3938_v6  ;;  %3437 = vmatmul.msk.f32.vlgmr.msrb.gmra.mxu2 %vm324_vm0, %v5198_v46  ;;  %v5374_v6 = vld [vmem:[%s5923_s1 + $0xd8] sm:$0xff] }
 0x37a   :  { %3432 = vmatmul.msk.f32.gmra.mxu0 %vm324_vm0, %v5245_v49  ;;  %3436 = vmatmul.msk.f32.gmra.mxu1 %vm324_vm0, %v5245_v49 }
 0x37b   :  { %3441 = vmatmul.msk.f32.vlgmr.msrb.gmra.mxu3 %vm324_vm0, %v5198_v46 }
 0x381   :  { %3438 = vmatmul.msk.f32.gmra.mxu2 %vm324_vm0, %v5207_v57 }
 0x383   :  { %3442 = vmatmul.msk.f32.gmra.mxu3 %vm324_vm0, %v5207_v57  ;;  %v5313_v57 = vpop.permute.xlu1 %1541 }
 0x389   :  { %3439 = vmatmul.msk.f32.gmra.mxu2 %vm324_vm0, %v5223_v47 }
 0x38b   :  { %3443 = vmatmul.msk.f32.gmra.mxu3 %vm324_vm0, %v5223_v47 }
 0x391   :  { %3440 = vmatmul.msk.f32.gmra.mxu2 %vm324_vm0, %v5245_v49 }
 0x393   :  { %3444 = vmatmul.msk.f32.gmra.mxu3 %vm324_vm0, %v5245_v49 }
 0x3bc   :  { %v1578_v28 = vpop.f32.mrf.mxu0 }
 0x3bd   :  { %v1607_v46 = vpop.f32.mrf.mxu1  ;;  %v1579_v4 = vadd.f32 %v1578_v28, %v5322_v31 }
 0x3be   :  { %v1608_v0 = vadd.f32 %v1607_v46, %v5322_v31 }
 0x3c4   :  { %v1581_v33 = vpop.f32.mrf.mxu0 }
 0x3c5   :  { %v1610_v34 = vpop.f32.mrf.mxu1  ;;  %v1582_v48 = vadd.f32 %v1581_v33, %v5317_v37 }
 0x3c6   :  { %v1611_v11 = vadd.f32 %v1610_v34, %v5317_v37 }
 0x3cc   :  { %v1584_v1 = vpop.f32.mrf.mxu0 }
 0x3cd   :  { %v1613_v35 = vpop.f32.mrf.mxu1  ;;  %v1585_v12 = vadd.f32 %v1584_v1, %v5313_v57 }
 0x3ce   :  { %v1614_v7 = vadd.f32 %v1613_v35, %v5313_v57 }
 0x3d4   :  { %v1587_v59 = vpop.f32.mrf.mxu0 }
 0x3d5   :  { %v1588_v19 = vadd.f32 %v1587_v59, %v5311_v2  ;;  %v1616_v47 = vpop.f32.mrf.mxu1 }
 0x3d6   :  { %v1617_v39 = vadd.f32 %v1616_v47, %v5311_v2 }
 0x3d7   :  { %3939 = vtanh.f32 %v1588_v19 }
 0x3d8   :  { %3941 = vtanh.f32 %v1617_v39 }
 0x3d9   :  { %3943 = vtanh.f32 %v1585_v12 }
 0x3da   :  { %3945 = vtanh.f32 %v1614_v7 }
 0x3db   :  { %3947 = vtanh.f32 %v1582_v48 }
 0x3dc   :  { %3949 = vtanh.f32 %v1611_v11  ;;  %v1644_v62 = vpop.f32.mrf.mxu2  ;;  %v1673_v41 = vpop.f32.mrf.mxu3 }
 0x3dd   :  { %v3940_v60 = vpop.eup %3939  ;;  %3951 = vtanh.f32 %v1579_v4  ;;  %v1645_v58 = vadd.f32 %v1644_v62, %v5322_v31  ;;  %v1674_v8 = vadd.f32 %v1673_v41, %v5322_v31 }
 0x3de   :  { %v3942_v40 = vpop.eup %3941  ;;  %3953 = vtanh.f32 %v1608_v0  ;;  %1879 = vmatpush.msra.mxu0 %v3940_v60 }
 0x3df   :  { %v3944_v38 = vpop.eup %3943  ;;  %v5327_v63 = vpop.f32.mrf.mxu0  ;;  %1908 = vmatpush.msra.mxu1 %v3942_v40  ;;  %3955 = vtanh.f32 %v1645_v58 }
 0x3e0   :  { %v5329_v43 = vpop.f32.mrf.mxu1  ;;  %v3946_v29 = vpop.eup %3945  ;;  %1880 = vmatpush.msra.mxu0 %v3944_v38  ;;  %3957 = vtanh.f32 %v1674_v8  ;;  %v1711_v34 = vadd.f32 %v5327_v63, %v5322_v31 }
 0x3e1   :  { %v3948_v44 = vpop.eup %3947  ;;  %1909 = vmatpush.msra.mxu1 %v3946_v29  ;;  %v1740_v35 = vadd.f32 %v5329_v43, %v5322_v31 }
 0x3e2   :  { %v3950_v49 = vpop.eup %3949  ;;  %1881 = vmatpush.msra.mxu0 %v3948_v44 }
 0x3e3   :  { %v3952_v10 = vpop.eup %3951  ;;  %1910 = vmatpush.msra.mxu1 %v3950_v49 }
 0x3e4   :  { %v3954_v52 = vpop.eup %3953  ;;  %v1647_v53 = vpop.f32.mrf.mxu2  ;;  %1882 = vmatpush.msra.mxu0 %v3952_v10 }
 0x3e5   :  { %v1676_v54 = vpop.f32.mrf.mxu3  ;;  %1911 = vmatpush.msra.mxu1 %v3954_v52  ;;  %3453 = vmatmul.msk.f32.vlgmr.msra.gmra.mxu0 %vm324_vm0, %v5334_v25  ;;  %v1648_v18 = vadd.f32 %v1647_v53, %v5317_v37  ;;  %v3956_v24 = vpop.eup %3955 }
 0x3e6   :  { %3457 = vmatmul.msk.f32.vlgmr.msra.gmra.mxu1 %vm324_vm0, %v5334_v25  ;;  %v1677_v20 = vadd.f32 %v1676_v54, %v5317_v37  ;;  %v3958_v30 = vpop.eup %3957 }
 0x3e7   :  { %v1713_v45 = vpop.f32.mrf.mxu0  ;;  %3959 = vtanh.f32 %v1648_v18 }
 0x3e8   :  { %v1742_v56 = vpop.f32.mrf.mxu1  ;;  %3961 = vtanh.f32 %v1677_v20  ;;  %v1714_v32 = vadd.f32 %v1713_v45, %v5317_v37 }
 0x3e9   :  { %v1743_v46 = vadd.f32 %v1742_v56, %v5317_v37 }
 0x3ec   :  { %v1650_v55 = vpop.f32.mrf.mxu2 }
 0x3ed   :  { %v1679_v61 = vpop.f32.mrf.mxu3  ;;  %3454 = vmatmul.msk.f32.gmra.mxu0 %vm324_vm0, %v5343_v42  ;;  %v1651_v22 = vadd.f32 %v1650_v55, %v5313_v57  ;;  %v3960_v23 = vpop.eup %3959 }
 0x3ee   :  { %3458 = vmatmul.msk.f32.gmra.mxu1 %vm324_vm0, %v5343_v42  ;;  %v1680_v17 = vadd.f32 %v1679_v61, %v5313_v57  ;;  %v3962_v28 = vpop.eup %3961 }
 0x3ef   :  { %v1716_v3 = vpop.f32.mrf.mxu0  ;;  %3963 = vtanh.f32 %v1651_v22 }
 0x3f0   :  { %v1745_v51 = vpop.f32.mrf.mxu1  ;;  %v1717_v50 = vadd.f32 %v1716_v3, %v5313_v57 }
 0x3f1   :  { %v1746_v27 = vadd.f32 %v1745_v51, %v5313_v57 }
 0x3f4   :  { %v1653_v15 = vpop.f32.mrf.mxu2 }
 0x3f5   :  { %v1682_v21 = vpop.f32.mrf.mxu3  ;;  %v1654_v36 = vadd.f32 %v1653_v15, %v5311_v2  ;;  %3455 = vmatmul.msk.f32.gmra.mxu0 %vm324_vm0, %v5357_v14  ;;  %v3964_v33 = vpop.eup %3963 }
 0x3f6   :  { %v1683_v9 = vadd.f32 %v1682_v21, %v5311_v2  ;;  %3459 = vmatmul.msk.f32.gmra.mxu1 %vm324_vm0, %v5357_v14  ;;  %v5441_v15 = vpop.permute.xlu1 %1852 }
 0x3f7   :  { %3965 = vtanh.f32 %v1654_v36  ;;  %v1719_v26 = vpop.f32.mrf.mxu0 }
 0x3f8   :  { %v1748_v13 = vpop.f32.mrf.mxu1  ;;  %3967 = vtanh.f32 %v1683_v9  ;;  %v1720_v5 = vadd.f32 %v1719_v26, %v5311_v2  ;;  %v5447_v9 = vpop.permute.xlu0 %1842 }
 0x3f9   :  { %v1749_v16 = vadd.f32 %v1748_v13, %v5311_v2  ;;  %3969 = vtanh.f32 %v1680_v17 }
 0x3fa   :  { %3971 = vtanh.f32 %v1720_v5 }
 0x3fb   :  { %3973 = vtanh.f32 %v1749_v16 }
 0x3fc   :  { %3975 = vtanh.f32 %v1717_v50  ;;  %v1776_v12 = vpop.f32.mrf.mxu2 }
 0x3fd   :  { %v3966_v1 = vpop.eup %3965  ;;  %3977 = vtanh.f32 %v1746_v27  ;;  %3456 = vmatmul.msk.f32.gmra.mxu0 %vm324_vm0, %v5374_v6  ;;  %v1777_v45 = vadd.f32 %v1776_v12, %v5322_v31 }
 0x3fe   :  { %v3968_v59 = vpop.eup %3967  ;;  %3979 = vtanh.f32 %v1714_v32  ;;  %v1805_v19 = vpop.f32.mrf.mxu3  ;;  %1945 = vmatpush.msra.mxu2 %v3966_v1  ;;  %3460 = vmatmul.msk.f32.gmra.mxu1 %vm324_vm0, %v5374_v6  ;;  %v5460_v1 = vld [vmem:[%s5923_s1 + $0xe0] sm:$0xff] }
 0x3ff   :  { %v3970_v47 = vpop.eup %3969  ;;  %3981 = vtanh.f32 %v1743_v46  ;;  %1974 = vmatpush.msra.mxu3 %v3968_v59  ;;  %v5452_v50 = vpop.permute.xlu1 %1837 }
 0x400   :  { %v3972_v7 = vpop.eup %3971  ;;  %3983 = vtanh.f32 %v1711_v34  ;;  %1946 = vmatpush.msra.mxu2 %v3964_v33 }
 0x401   :  { %v3974_v39 = vpop.eup %3973  ;;  %3985 = vtanh.f32 %v1740_v35  ;;  %1975 = vmatpush.msra.mxu3 %v3970_v47  ;;  %2011 = vmatpush.msrb.mxu0 %v3972_v7 }
 0x402   :  { %v3976_v48 = vpop.eup %3975  ;;  %2040 = vmatpush.msrb.mxu1 %v3974_v39  ;;  %1947 = vmatpush.msra.mxu2 %v3960_v23  ;;  %v5469_v39 = vld [vmem:[%s5923_s1 + $0xe8] sm:$0xff] }
 0x403   :  { %v3978_v11 = vpop.eup %3977  ;;  %1976 = vmatpush.msra.mxu3 %v3962_v28  ;;  %2012 = vmatpush.msrb.mxu0 %v3976_v48 }
 0x404   :  { %v3980_v4 = vpop.eup %3979  ;;  %2041 = vmatpush.msrb.mxu1 %v3978_v11  ;;  %1948 = vmatpush.msra.mxu2 %v3956_v24  ;;  %v1779_v41 = vpop.f32.mrf.mxu2 }
 0x405   :  { %v3982_v0 = vpop.eup %3981  ;;  %1977 = vmatpush.msra.mxu3 %v3958_v30  ;;  %2013 = vmatpush.msrb.mxu0 %v3980_v4  ;;  %v1780_v53 = vadd.f32 %v1779_v41, %v5317_v37  ;;  %v5479_v41 = vld [vmem:[%s5923_s1 + $0xf0] sm:$0xff] }
 0x406   :  { %v3984_v62 = vpop.eup %3983  ;;  %v1808_v60 = vpop.f32.mrf.mxu3  ;;  %2042 = vmatpush.msrb.mxu1 %v3982_v0  ;;  %3461 = vmatmul.msk.f32.vlgmr.msra.gmra.mxu2 %vm324_vm0, %v5334_v25 }
 0x407   :  { %v3986_v40 = vpop.eup %3985  ;;  %3465 = vmatmul.msk.f32.vlgmr.msra.gmra.mxu3 %vm324_vm0, %v5334_v25  ;;  %2014 = vmatpush.msrb.mxu0 %v3984_v62  ;;  %v1809_v54 = vadd.f32 %v1808_v60, %v5317_v37 }
 0x408   :  { %2043 = vmatpush.msrb.mxu1 %v3986_v40  ;;  %3469 = vmatmul.msk.f32.vlgmr.msrb.gmra.mxu0 %vm324_vm0, %v5334_v25 }
 0x409   :  { %3473 = vmatmul.msk.f32.vlgmr.msrb.gmra.mxu1 %vm324_vm0, %v5334_v25 }
 0x40c   :  { %v1782_v38 = vpop.f32.mrf.mxu2 }
 0x40d   :  { %v1783_v44 = vadd.f32 %v1782_v38, %v5313_v57 }
 0x40e   :  { %v1811_v63 = vpop.f32.mrf.mxu3  ;;  %3462 = vmatmul.msk.f32.gmra.mxu2 %vm324_vm0, %v5343_v42 }
 0x40f   :  { %3466 = vmatmul.msk.f32.gmra.mxu3 %vm324_vm0, %v5343_v42  ;;  %v1812_v52 = vadd.f32 %v1811_v63, %v5313_v57 }
 0x410   :  { %3470 = vmatmul.msk.f32.gmra.mxu0 %vm324_vm0, %v5343_v42 }
 0x411   :  { %3474 = vmatmul.msk.f32.gmra.mxu1 %vm324_vm0, %v5343_v42 }
 0x414   :  { %v1785_v43 = vpop.f32.mrf.mxu2 }
 0x415   :  { %v1786_v49 = vadd.f32 %v1785_v43, %v5311_v2 }
 0x416   :  { %v1814_v29 = vpop.f32.mrf.mxu3  ;;  %3463 = vmatmul.msk.f32.gmra.mxu2 %vm324_vm0, %v5357_v14 }
 0x417   :  { %v1815_v10 = vadd.f32 %v1814_v29, %v5311_v2  ;;  %3467 = vmatmul.msk.f32.gmra.mxu3 %vm324_vm0, %v5357_v14  ;;  %3987 = vtanh.f32 %v1786_v49  ;;  %v1806_v2 = vadd.f32 %v1805_v19, %v5322_v31 }
 0x418   :  { %3471 = vmatmul.msk.f32.gmra.mxu0 %vm324_vm0, %v5357_v14 }
 0x419   :  { %3475 = vmatmul.msk.f32.gmra.mxu1 %vm324_vm0, %v5357_v14  ;;  %3989 = vtanh.f32 %v1815_v10 }
 0x41a   :  { %3991 = vtanh.f32 %v1783_v44 }
 0x41b   :  { %3993 = vtanh.f32 %v1812_v52 }
 0x41c   :  { %3995 = vtanh.f32 %v1780_v53 }
 0x41d   :  { %3997 = vtanh.f32 %v1809_v54  ;;  %v3988_v57 = vpop.eup %3987  ;;  %v5495_v54 = vld [vmem:[%s5923_s1 + $0xf8] sm:$0xff] }
 0x41e   :  { %3464 = vmatmul.msk.f32.gmra.mxu2 %vm324_vm0, %v5374_v6  ;;  %3999 = vtanh.f32 %v1777_v45 }
 0x41f   :  { %3468 = vmatmul.msk.f32.gmra.mxu3 %vm324_vm0, %v5374_v6  ;;  %v3990_v56 = vpop.eup %3989  ;;  %4001 = vtanh.f32 %v1806_v2  ;;  %2077 = vmatpush.msrb.mxu2 %v3988_v57 }
 0x420   :  { %3472 = vmatmul.msk.f32.gmra.mxu0 %vm324_vm0, %v5374_v6  ;;  %v3992_v37 = vpop.eup %3991  ;;  %2106 = vmatpush.msrb.mxu3 %v3990_v56 }
 0x421   :  { %3476 = vmatmul.msk.f32.gmra.mxu1 %vm324_vm0, %v5374_v6  ;;  %v3994_v31 = vpop.eup %3993  ;;  %2078 = vmatpush.msrb.mxu2 %v3992_v37 }
 0x422   :  { %v3996_v55 = vpop.eup %3995  ;;  %2107 = vmatpush.msrb.mxu3 %v3994_v31 }
 0x423   :  { %v3998_v61 = vpop.eup %3997  ;;  %2079 = vmatpush.msrb.mxu2 %v3996_v55 }
 0x424   :  { %v4000_v58 = vpop.eup %3999  ;;  %2108 = vmatpush.msrb.mxu3 %v3998_v61 }
 0x425   :  { %v4002_v8 = vpop.eup %4001  ;;  %2080 = vmatpush.msrb.mxu2 %v4000_v58 }
 0x426   :  { %2109 = vmatpush.msrb.mxu3 %v4002_v8  ;;  %3477 = vmatmul.msk.f32.vlgmr.msrb.gmra.mxu2 %vm324_vm0, %v5334_v25 }
 0x427   :  { %3481 = vmatmul.msk.f32.vlgmr.msrb.gmra.mxu3 %vm324_vm0, %v5334_v25 }
 0x42e   :  { %3478 = vmatmul.msk.f32.gmra.mxu2 %vm324_vm0, %v5343_v42 }
 0x42f   :  { %3482 = vmatmul.msk.f32.gmra.mxu3 %vm324_vm0, %v5343_v42  ;;  %v5443_v42 = vpop.permute.xlu2 %1847 }
 0x436   :  { %3479 = vmatmul.msk.f32.gmra.mxu2 %vm324_vm0, %v5357_v14 }
 0x437   :  { %3483 = vmatmul.msk.f32.gmra.mxu3 %vm324_vm0, %v5357_v14 }
 0x43e   :  { %3480 = vmatmul.msk.f32.gmra.mxu2 %vm324_vm0, %v5374_v6 }
 0x43f   :  { %3484 = vmatmul.msk.f32.gmra.mxu3 %vm324_vm0, %v5374_v6 }
 0x462   :  { %v1884_v3 = vpop.f32.mrf.mxu0 }
 0x463   :  { %v1913_v25 = vpop.f32.mrf.mxu1  ;;  %v1885_v16 = vadd.f32 %v1884_v3, %v5452_v50 }
 0x464   :  { %v1914_v30 = vadd.f32 %v1913_v25, %v5452_v50 }
 0x46a   :  { %v1887_v51 = vpop.f32.mrf.mxu0 }
 0x46b   :  { %v1916_v18 = vpop.f32.mrf.mxu1  ;;  %v1888_v24 = vadd.f32 %v1887_v51, %v5447_v9 }
 0x46c   :  { %v1917_v5 = vadd.f32 %v1916_v18, %v5447_v9 }
 0x472   :  { %v1890_v20 = vpop.f32.mrf.mxu0 }
 0x473   :  { %v1919_v22 = vpop.f32.mrf.mxu1  ;;  %v1891_v17 = vadd.f32 %v1890_v20, %v5443_v42 }
 0x474   :  { %v1920_v26 = vadd.f32 %v1919_v22, %v5443_v42 }
 0x47a   :  { %v1893_v21 = vpop.f32.mrf.mxu0 }
 0x47b   :  { %v1894_v14 = vadd.f32 %v1893_v21, %v5441_v15  ;;  %v1922_v36 = vpop.f32.mrf.mxu1 }
 0x47c   :  { %v1923_v13 = vadd.f32 %v1922_v36, %v5441_v15 }
 0x47d   :  { %4003 = vtanh.f32 %v1894_v14 }
 0x47e   :  { %4005 = vtanh.f32 %v1923_v13 }
 0x47f   :  { %4007 = vtanh.f32 %v1891_v17 }
 0x480   :  { %4009 = vtanh.f32 %v1920_v26 }
 0x481   :  { %4011 = vtanh.f32 %v1888_v24 }
 0x482   :  { %4013 = vtanh.f32 %v1917_v5 }
 0x483   :  { %v4004_v27 = vpop.eup %4003  ;;  %4015 = vtanh.f32 %v1885_v16 }
 0x484   :  { %v4006_v23 = vpop.eup %4005  ;;  %4017 = vtanh.f32 %v1914_v30  ;;  %2185 = vmatpush.msra.mxu0 %v4004_v27 }
 0x485   :  { %v4008_v32 = vpop.eup %4007  ;;  %v2016_v6 = vpop.f32.mrf.mxu0  ;;  %2214 = vmatpush.msra.mxu1 %v4006_v23 }
 0x486   :  { %v4010_v28 = vpop.eup %4009  ;;  %v2045_v46 = vpop.f32.mrf.mxu1  ;;  %2186 = vmatpush.msra.mxu0 %v4008_v32  ;;  %v2017_v62 = vadd.f32 %v2016_v6, %v5452_v50 }
 0x487   :  { %v4012_v33 = vpop.eup %4011  ;;  %2215 = vmatpush.msra.mxu1 %v4010_v28  ;;  %v2046_v60 = vadd.f32 %v2045_v46, %v5452_v50 }
 0x488   :  { %v4014_v34 = vpop.eup %4013  ;;  %2187 = vmatpush.msra.mxu0 %v4012_v33  ;;  %4019 = vtanh.f32 %v2017_v62 }
 0x489   :  { %v4016_v35 = vpop.eup %4015  ;;  %v1950_v59 = vpop.f32.mrf.mxu2  ;;  %2216 = vmatpush.msra.mxu1 %v4014_v34  ;;  %4021 = vtanh.f32 %v2046_v60 }
 0x48a   :  { %v4018_v12 = vpop.eup %4017  ;;  %v1979_v19 = vpop.f32.mrf.mxu3  ;;  %2188 = vmatpush.msra.mxu0 %v4016_v35  ;;  %v1951_v18 = vadd.f32 %v1950_v59, %v5452_v50 }
 0x48b   :  { %2217 = vmatpush.msra.mxu1 %v4018_v12  ;;  %3493 = vmatmul.msk.f32.vlgmr.msra.gmra.mxu0 %vm324_vm0, %v5460_v1  ;;  %v1980_v22 = vadd.f32 %v1979_v19, %v5452_v50 }
 0x48c   :  { %3497 = vmatmul.msk.f32.vlgmr.msra.gmra.mxu1 %vm324_vm0, %v5460_v1 }
 0x48d   :  { %v2019_v47 = vpop.f32.mrf.mxu0 }
 0x48e   :  { %v2048_v7 = vpop.f32.mrf.mxu1  ;;  %v2020_v38 = vadd.f32 %v2019_v47, %v5447_v9  ;;  %v4020_v2 = vpop.eup %4019 }
 0x48f   :  { %v2049_v43 = vadd.f32 %v2048_v7, %v5447_v9  ;;  %v4022_v31 = vpop.eup %4021 }
 0x490   :  { %4023 = vtanh.f32 %v2020_v38 }
 0x491   :  { %v1953_v48 = vpop.f32.mrf.mxu2  ;;  %4025 = vtanh.f32 %v2049_v43 }
 0x492   :  { %v1982_v11 = vpop.f32.mrf.mxu3  ;;  %v1954_v8 = vadd.f32 %v1953_v48, %v5447_v9 }
 0x493   :  { %3494 = vmatmul.msk.f32.gmra.mxu0 %vm324_vm0, %v5469_v39  ;;  %v1983_v25 = vadd.f32 %v1982_v11, %v5447_v9 }
 0x494   :  { %3498 = vmatmul.msk.f32.gmra.mxu1 %vm324_vm0, %v5469_v39 }
 0x495   :  { %v2022_v4 = vpop.f32.mrf.mxu0 }
 0x496   :  { %v2051_v0 = vpop.f32.mrf.mxu1  ;;  %v2023_v44 = vadd.f32 %v2022_v4, %v5443_v42  ;;  %v4024_v58 = vpop.eup %4023 }
 0x497   :  { %v2052_v52 = vadd.f32 %v2051_v0, %v5443_v42  ;;  %v4026_v3 = vpop.eup %4025 }
 0x499   :  { %v1956_v40 = vpop.f32.mrf.mxu2 }
 0x49a   :  { %v1985_v63 = vpop.f32.mrf.mxu3  ;;  %v1957_v57 = vadd.f32 %v1956_v40, %v5443_v42 }
 0x49b   :  { %3495 = vmatmul.msk.f32.gmra.mxu0 %vm324_vm0, %v5479_v41  ;;  %v1986_v55 = vadd.f32 %v1985_v63, %v5443_v42 }
 0x49c   :  { %3499 = vmatmul.msk.f32.gmra.mxu1 %vm324_vm0, %v5479_v41 }
 0x49d   :  { %v2025_v29 = vpop.f32.mrf.mxu0 }
 0x49e   :  { %v2026_v49 = vadd.f32 %v2025_v29, %v5441_v15  ;;  %v2054_v10 = vpop.f32.mrf.mxu1 }
 0x49f   :  { %v2055_v53 = vadd.f32 %v2054_v10, %v5441_v15 }
 0x4a0   :  { %4027 = vtanh.f32 %v2026_v49 }
 0x4a1   :  { %4029 = vtanh.f32 %v2055_v53  ;;  %v1959_v45 = vpop.f32.mrf.mxu2  ;;  %v5571_v53 = vpop.permute.xlu1 %2148 }
 0x4a2   :  { %4031 = vtanh.f32 %v2023_v44  ;;  %v1960_v56 = vadd.f32 %v1959_v45, %v5441_v15  ;;  %v1988_v37 = vpop.f32.mrf.mxu3  ;;  %v5565_v44 = vpop.permute.xlu2 %2158 }
 0x4a3   :  { %4033 = vtanh.f32 %v2052_v52  ;;  %v1989_v61 = vadd.f32 %v1988_v37, %v5441_v15  ;;  %3496 = vmatmul.msk.f32.gmra.mxu0 %vm324_vm0, %v5495_v54 }
 0x4a4   :  { %4035 = vtanh.f32 %v1960_v56  ;;  %3500 = vmatmul.msk.f32.gmra.mxu1 %vm324_vm0, %v5495_v54 }
 0x4a5   :  { %4037 = vtanh.f32 %v1989_v61 }
 0x4a6   :  { %v4028_v51 = vpop.eup %4027  ;;  %4039 = vtanh.f32 %v1957_v57 }
 0x4a7   :  { %v4030_v20 = vpop.eup %4029  ;;  %4041 = vtanh.f32 %v1986_v55  ;;  %2317 = vmatpush.msrb.mxu0 %v4028_v51 }
 0x4a8   :  { %v4032_v21 = vpop.eup %4031  ;;  %4043 = vtanh.f32 %v1954_v8  ;;  %2346 = vmatpush.msrb.mxu1 %v4030_v20  ;;  %v5584_v20 = vld [vmem:[%s5923_s1 + $0x100] sm:$0xff] }
 0x4a9   :  { %v4034_v17 = vpop.eup %4033  ;;  %4045 = vtanh.f32 %v1983_v25  ;;  %2318 = vmatpush.msrb.mxu0 %v4032_v21  ;;  %v2082_v36 = vpop.f32.mrf.mxu2 }
 0x4aa   :  { %v4036_v14 = vpop.eup %4035  ;;  %4047 = vtanh.f32 %v1951_v18  ;;  %2347 = vmatpush.msrb.mxu1 %v4034_v17  ;;  %v2111_v13 = vpop.f32.mrf.mxu3  ;;  %v2083_v48 = vadd.f32 %v2082_v36, %v5452_v50 }
 0x4ab   :  { %v4038_v26 = vpop.eup %4037  ;;  %4049 = vtanh.f32 %v1980_v22  ;;  %2251 = vmatpush.msra.mxu2 %v4036_v14  ;;  %2319 = vmatpush.msrb.mxu0 %v4024_v58  ;;  %v2112_v11 = vadd.f32 %v2111_v13, %v5452_v50  ;;  %v5576_v57 = vpop.permute.xlu2 %2143  ;;  %v5593_v13 = vld [vmem:[%s5923_s1 + $0x108] sm:$0xff] }
 0x4ac   :  { %v4040_v24 = vpop.eup %4039  ;;  %2280 = vmatpush.msra.mxu3 %v4038_v26  ;;  %2348 = vmatpush.msrb.mxu1 %v4026_v3 }
 0x4ad   :  { %v4042_v5 = vpop.eup %4041  ;;  %2252 = vmatpush.msra.mxu2 %v4040_v24  ;;  %2320 = vmatpush.msrb.mxu0 %v4020_v2 }
 0x4ae   :  { %v4044_v16 = vpop.eup %4043  ;;  %2281 = vmatpush.msra.mxu3 %v4042_v5  ;;  %2349 = vmatpush.msrb.mxu1 %v4022_v31 }
 0x4af   :  { %v4046_v30 = vpop.eup %4045  ;;  %3509 = vmatmul.msk.f32.vlgmr.msrb.gmra.mxu0 %vm324_vm0, %v5460_v1  ;;  %3513 = vmatmul.msk.f32.vlgmr.msrb.gmra.mxu1 %vm324_vm0, %v5460_v1 }
 0x4b0   :  { %v4048_v27 = vpop.eup %4047  ;;  %2253 = vmatpush.msra.mxu2 %v4044_v16  ;;  %2282 = vmatpush.msra.mxu3 %v4046_v30 }
 0x4b1   :  { %v4050_v23 = vpop.eup %4049  ;;  %v2085_v32 = vpop.f32.mrf.mxu2 }
 0x4b2   :  { %2254 = vmatpush.msra.mxu2 %v4048_v27  ;;  %2283 = vmatpush.msra.mxu3 %v4050_v23  ;;  %v2114_v6 = vpop.f32.mrf.mxu3  ;;  %v2086_v47 = vadd.f32 %v2085_v32, %v5447_v9  ;;  %v5602_v27 = vld [vmem:[%s5923_s1 + $0x110] sm:$0xff] }
 0x4b3   :  { %3501 = vmatmul.msk.f32.vlgmr.msra.gmra.mxu2 %vm324_vm0, %v5460_v1  ;;  %3505 = vmatmul.msk.f32.vlgmr.msra.gmra.mxu3 %vm324_vm0, %v5460_v1  ;;  %v2115_v7 = vadd.f32 %v2114_v6, %v5447_v9 }
 0x4b7   :  { %3510 = vmatmul.msk.f32.gmra.mxu0 %vm324_vm0, %v5469_v39  ;;  %3514 = vmatmul.msk.f32.gmra.mxu1 %vm324_vm0, %v5469_v39 }
 0x4b9   :  { %v2088_v28 = vpop.f32.mrf.mxu2 }
 0x4ba   :  { %v2117_v46 = vpop.f32.mrf.mxu3  ;;  %v2089_v34 = vadd.f32 %v2088_v28, %v5443_v42 }
 0x4bb   :  { %3502 = vmatmul.msk.f32.gmra.mxu2 %vm324_vm0, %v5469_v39  ;;  %3506 = vmatmul.msk.f32.gmra.mxu3 %vm324_vm0, %v5469_v39  ;;  %v2118_v12 = vadd.f32 %v2117_v46, %v5443_v42 }
 0x4bf   :  { %3511 = vmatmul.msk.f32.gmra.mxu0 %vm324_vm0, %v5479_v41  ;;  %3515 = vmatmul.msk.f32.gmra.mxu1 %vm324_vm0, %v5479_v41 }
 0x4c1   :  { %v2091_v33 = vpop.f32.mrf.mxu2 }
 0x4c2   :  { %v2092_v35 = vadd.f32 %v2091_v33, %v5441_v15  ;;  %v2120_v59 = vpop.f32.mrf.mxu3 }
 0x4c3   :  { %3503 = vmatmul.msk.f32.gmra.mxu2 %vm324_vm0, %v5479_v41  ;;  %3507 = vmatmul.msk.f32.gmra.mxu3 %vm324_vm0, %v5479_v41  ;;  %v2121_v19 = vadd.f32 %v2120_v59, %v5441_v15  ;;  %v5615_v59 = vld [vmem:[%s5923_s1 + $0x118] sm:$0xff] }
 0x4c4   :  { %4051 = vtanh.f32 %v2092_v35 }
 0x4c5   :  { %4053 = vtanh.f32 %v2121_v19 }
 0x4c6   :  { %4055 = vtanh.f32 %v2089_v34 }
 0x4c7   :  { %3512 = vmatmul.msk.f32.gmra.mxu0 %vm324_vm0, %v5495_v54  ;;  %3516 = vmatmul.msk.f32.gmra.mxu1 %vm324_vm0, %v5495_v54  ;;  %4057 = vtanh.f32 %v2118_v12 }
 0x4c8   :  { %4059 = vtanh.f32 %v2086_v47 }
 0x4c9   :  { %4061 = vtanh.f32 %v2115_v7 }
 0x4ca   :  { %v4052_v15 = vpop.eup %4051  ;;  %4063 = vtanh.f32 %v2083_v48 }
 0x4cb   :  { %3504 = vmatmul.msk.f32.gmra.mxu2 %vm324_vm0, %v5495_v54  ;;  %3508 = vmatmul.msk.f32.gmra.mxu3 %vm324_vm0, %v5495_v54  ;;  %v4054_v42 = vpop.eup %4053  ;;  %4065 = vtanh.f32 %v2112_v11 }
 0x4cc   :  { %2383 = vmatpush.msrb.mxu2 %v4052_v15  ;;  %v4056_v9 = vpop.eup %4055  ;;  %2412 = vmatpush.msrb.mxu3 %v4054_v42 }
 0x4cd   :  { %v4058_v4 = vpop.eup %4057 }
 0x4ce   :  { %2384 = vmatpush.msrb.mxu2 %v4056_v9  ;;  %v4060_v0 = vpop.eup %4059  ;;  %2413 = vmatpush.msrb.mxu3 %v4058_v4 }
 0x4cf   :  { %v4062_v50 = vpop.eup %4061 }
 0x4d0   :  { %2385 = vmatpush.msrb.mxu2 %v4060_v0  ;;  %v4064_v62 = vpop.eup %4063  ;;  %2414 = vmatpush.msrb.mxu3 %v4062_v50 }
 0x4d1   :  { %v4066_v60 = vpop.eup %4065 }
 0x4d2   :  { %2386 = vmatpush.msrb.mxu2 %v4064_v62  ;;  %2415 = vmatpush.msrb.mxu3 %v4066_v60 }
 0x4d3   :  { %3517 = vmatmul.msk.f32.vlgmr.msrb.gmra.mxu2 %vm324_vm0, %v5460_v1  ;;  %3521 = vmatmul.msk.f32.vlgmr.msrb.gmra.mxu3 %vm324_vm0, %v5460_v1 }
 0x4db   :  { %3518 = vmatmul.msk.f32.gmra.mxu2 %vm324_vm0, %v5469_v39  ;;  %3522 = vmatmul.msk.f32.gmra.mxu3 %vm324_vm0, %v5469_v39  ;;  %v5567_v39 = vpop.permute.xlu0 %2153 }
 0x4e3   :  { %3519 = vmatmul.msk.f32.gmra.mxu2 %vm324_vm0, %v5479_v41  ;;  %3523 = vmatmul.msk.f32.gmra.mxu3 %vm324_vm0, %v5479_v41 }
 0x4eb   :  { %3520 = vmatmul.msk.f32.gmra.mxu2 %vm324_vm0, %v5495_v54  ;;  %3524 = vmatmul.msk.f32.gmra.mxu3 %vm324_vm0, %v5495_v54 }
 0x508   :  { %v2190_v40 = vpop.f32.mrf.mxu0 }
 0x509   :  { %v2219_v1 = vpop.f32.mrf.mxu1  ;;  %v2191_v37 = vadd.f32 %v2190_v40, %v5576_v57 }
 0x50a   :  { %v2220_v31 = vadd.f32 %v2219_v1, %v5576_v57 }
 0x510   :  { %v2193_v38 = vpop.f32.mrf.mxu0 }
 0x511   :  { %v2222_v63 = vpop.f32.mrf.mxu1  ;;  %v2194_v2 = vadd.f32 %v2193_v38, %v5571_v53 }
 0x512   :  { %v2223_v56 = vadd.f32 %v2222_v63, %v5571_v53 }
 0x518   :  { %v2196_v43 = vpop.f32.mrf.mxu0 }
 0x519   :  { %v2225_v29 = vpop.f32.mrf.mxu1  ;;  %v2197_v10 = vadd.f32 %v2196_v43, %v5567_v39 }
 0x51a   :  { %v2226_v54 = vadd.f32 %v2225_v29, %v5567_v39 }
 0x520   :  { %v2199_v49 = vpop.f32.mrf.mxu0 }
 0x521   :  { %v2200_v41 = vadd.f32 %v2199_v49, %v5565_v44  ;;  %v2228_v52 = vpop.f32.mrf.mxu1 }
 0x522   :  { %v2229_v45 = vadd.f32 %v2228_v52, %v5565_v44 }
 0x523   :  { %4067 = vtanh.f32 %v2200_v41 }
 0x524   :  { %4069 = vtanh.f32 %v2229_v45 }
 0x525   :  { %4071 = vtanh.f32 %v2197_v10 }
 0x526   :  { %4073 = vtanh.f32 %v2226_v54 }
 0x527   :  { %4075 = vtanh.f32 %v2194_v2 }
 0x528   :  { %4077 = vtanh.f32 %v2223_v56 }
 0x529   :  { %v4068_v55 = vpop.eup %4067  ;;  %4079 = vtanh.f32 %v2191_v37 }
 0x52a   :  { %v4070_v61 = vpop.eup %4069  ;;  %4081 = vtanh.f32 %v2220_v31  ;;  %2491 = vmatpush.msra.mxu0 %v4068_v55 }
 0x52b   :  { %v4072_v58 = vpop.eup %4071  ;;  %2520 = vmatpush.msra.mxu1 %v4070_v61 }
 0x52c   :  { %v4074_v8 = vpop.eup %4073  ;;  %v2322_v3 = vpop.f32.mrf.mxu0  ;;  %2492 = vmatpush.msra.mxu0 %v4072_v58 }
 0x52d   :  { %v2351_v25 = vpop.f32.mrf.mxu1  ;;  %v4076_v51 = vpop.eup %4075  ;;  %2521 = vmatpush.msra.mxu1 %v4074_v8  ;;  %v2323_v47 = vadd.f32 %v2322_v3, %v5576_v57 }
 0x52e   :  { %v4078_v18 = vpop.eup %4077  ;;  %2493 = vmatpush.msra.mxu0 %v4076_v51  ;;  %v2352_v7 = vadd.f32 %v2351_v25, %v5576_v57 }
 0x52f   :  { %v4080_v22 = vpop.eup %4079  ;;  %2522 = vmatpush.msra.mxu1 %v4078_v18 }
 0x530   :  { %v4082_v21 = vpop.eup %4081  ;;  %2494 = vmatpush.msra.mxu0 %v4080_v22 }
 0x531   :  { %2523 = vmatpush.msra.mxu1 %v4082_v21  ;;  %3533 = vmatmul.msk.f32.vlgmr.msra.gmra.mxu0 %vm324_vm0, %v5584_v20 }
 0x532   :  { %3537 = vmatmul.msk.f32.vlgmr.msra.gmra.mxu1 %vm324_vm0, %v5584_v20 }
 0x534   :  { %v2325_v17 = vpop.f32.mrf.mxu0 }
 0x535   :  { %v2354_v14 = vpop.f32.mrf.mxu1  ;;  %v2326_v12 = vadd.f32 %v2325_v17, %v5571_v53 }
 0x536   :  { %v2256_v36 = vpop.f32.mrf.mxu2  ;;  %v2285_v26 = vpop.f32.mrf.mxu3  ;;  %v2355_v19 = vadd.f32 %v2354_v14, %v5571_v53 }
 0x537   :  { %v2257_v29 = vadd.f32 %v2256_v36, %v5576_v57  ;;  %v2286_v10 = vadd.f32 %v2285_v26, %v5576_v57 }
 0x539   :  { %3534 = vmatmul.msk.f32.gmra.mxu0 %vm324_vm0, %v5593_v13 }
 0x53a   :  { %3538 = vmatmul.msk.f32.gmra.mxu1 %vm324_vm0, %v5593_v13 }
 0x53c   :  { %v2328_v24 = vpop.f32.mrf.mxu0 }
 0x53d   :  { %v2357_v5 = vpop.f32.mrf.mxu1  ;;  %v2329_v6 = vadd.f32 %v2328_v24, %v5567_v39 }
 0x53e   :  { %v2259_v16 = vpop.f32.mrf.mxu2  ;;  %v2288_v30 = vpop.f32.mrf.mxu3  ;;  %v2358_v33 = vadd.f32 %v2357_v5, %v5567_v39 }
 0x53f   :  { %v2260_v1 = vadd.f32 %v2259_v16, %v5571_v53  ;;  %v2289_v63 = vadd.f32 %v2288_v30, %v5571_v53 }
 0x541   :  { %3535 = vmatmul.msk.f32.gmra.mxu0 %vm324_vm0, %v5602_v27 }
 0x542   :  { %3539 = vmatmul.msk.f32.gmra.mxu1 %vm324_vm0, %v5602_v27 }
 0x544   :  { %v2331_v23 = vpop.f32.mrf.mxu0 }
 0x545   :  { %v2360_v32 = vpop.f32.mrf.mxu1  ;;  %v2332_v28 = vadd.f32 %v2331_v23, %v5565_v44 }
 0x546   :  { %v2361_v46 = vadd.f32 %v2360_v32, %v5565_v44  ;;  %v2262_v34 = vpop.f32.mrf.mxu2  ;;  %v2291_v35 = vpop.f32.mrf.mxu3 }
 0x547   :  { %4083 = vtanh.f32 %v2332_v28  ;;  %v2263_v4 = vadd.f32 %v2262_v34, %v5567_v39  ;;  %v2292_v60 = vadd.f32 %v2291_v35, %v5567_v39  ;;  %v5689_v35 = vpop.permute.xlu0 %2464 }
 0x548   :  { %4085 = vtanh.f32 %v2361_v46 }
 0x549   :  { %4087 = vtanh.f32 %v2329_v6  ;;  %3536 = vmatmul.msk.f32.gmra.mxu0 %vm324_vm0, %v5615_v59 }
 0x54a   :  { %4089 = vtanh.f32 %v2358_v33  ;;  %3540 = vmatmul.msk.f32.gmra.mxu1 %vm324_vm0, %v5615_v59 }
 0x54b   :  { %4091 = vtanh.f32 %v2326_v12 }
 0x54c   :  { %4093 = vtanh.f32 %v2355_v19 }
 0x54d   :  { %v4084_v48 = vpop.eup %4083  ;;  %4095 = vtanh.f32 %v2323_v47 }
 0x54e   :  { %v4086_v11 = vpop.eup %4085  ;;  %4097 = vtanh.f32 %v2352_v7  ;;  %v2265_v15 = vpop.f32.mrf.mxu2  ;;  %2623 = vmatpush.msrb.mxu0 %v4084_v48 }
 0x54f   :  { %v2294_v42 = vpop.f32.mrf.mxu3  ;;  %v4088_v9 = vpop.eup %4087  ;;  %v2266_v0 = vadd.f32 %v2265_v15, %v5565_v44  ;;  %2652 = vmatpush.msrb.mxu1 %v4086_v11 }
 0x550   :  { %v2295_v50 = vadd.f32 %v2294_v42, %v5565_v44  ;;  %v4090_v62 = vpop.eup %4089  ;;  %2624 = vmatpush.msrb.mxu0 %v4088_v9  ;;  %v5695_v7 = vpop.permute.xlu2 %2454 }
 0x551   :  { %v4092_v40 = vpop.eup %4091  ;;  %4099 = vtanh.f32 %v2266_v0  ;;  %2653 = vmatpush.msrb.mxu1 %v4090_v62  ;;  %v5700_v15 = vpop.permute.xlu0 %2449 }
 0x552   :  { %v4094_v38 = vpop.eup %4093  ;;  %4101 = vtanh.f32 %v2295_v50  ;;  %2625 = vmatpush.msrb.mxu0 %v4092_v40 }
 0x553   :  { %v4096_v43 = vpop.eup %4095  ;;  %4103 = vtanh.f32 %v2263_v4  ;;  %2654 = vmatpush.msrb.mxu1 %v4094_v38 }
 0x554   :  { %v4098_v49 = vpop.eup %4097  ;;  %4105 = vtanh.f32 %v2292_v60  ;;  %2626 = vmatpush.msrb.mxu0 %v4096_v43  ;;  %v5708_v43 = vld [vmem:[%s5923_s1 + $0x120] sm:$0xff] }
 0x555   :  { %4107 = vtanh.f32 %v2260_v1  ;;  %2655 = vmatpush.msrb.mxu1 %v4098_v49  ;;  %3549 = vmatmul.msk.f32.vlgmr.msrb.gmra.mxu0 %vm324_vm0, %v5584_v20 }
 0x556   :  { %4109 = vtanh.f32 %v2289_v63  ;;  %3553 = vmatmul.msk.f32.vlgmr.msrb.gmra.mxu1 %vm324_vm0, %v5584_v20  ;;  %v2388_v41 = vpop.f32.mrf.mxu2 }
 0x557   :  { %v4100_v52 = vpop.eup %4099  ;;  %4111 = vtanh.f32 %v2257_v29  ;;  %v2417_v54 = vpop.f32.mrf.mxu3  ;;  %v2389_v24 = vadd.f32 %v2388_v41, %v5576_v57 }
 0x558   :  { %v4102_v45 = vpop.eup %4101  ;;  %4113 = vtanh.f32 %v2286_v10  ;;  %2557 = vmatpush.msra.mxu2 %v4100_v52  ;;  %v2418_v5 = vadd.f32 %v2417_v54, %v5576_v57  ;;  %v5717_v52 = vld [vmem:[%s5923_s1 + $0x128] sm:$0xff] }
 0x559   :  { %v4104_v2 = vpop.eup %4103  ;;  %2586 = vmatpush.msra.mxu3 %v4102_v45 }
 0x55a   :  { %v4106_v56 = vpop.eup %4105  ;;  %2558 = vmatpush.msra.mxu2 %v4104_v2 }
 0x55b   :  { %v4108_v37 = vpop.eup %4107  ;;  %2587 = vmatpush.msra.mxu3 %v4106_v56 }
 0x55c   :  { %v4110_v31 = vpop.eup %4109  ;;  %2559 = vmatpush.msra.mxu2 %v4108_v37  ;;  %v5726_v37 = vld [vmem:[%s5923_s1 + $0x130] sm:$0xff] }
 0x55d   :  { %v4112_v55 = vpop.eup %4111  ;;  %2588 = vmatpush.msra.mxu3 %v4110_v31  ;;  %3550 = vmatmul.msk.f32.gmra.mxu0 %vm324_vm0, %v5593_v13 }
 0x55e   :  { %v4114_v61 = vpop.eup %4113  ;;  %3554 = vmatmul.msk.f32.gmra.mxu1 %vm324_vm0, %v5593_v13  ;;  %v2391_v58 = vpop.f32.mrf.mxu2  ;;  %2560 = vmatpush.msra.mxu2 %v4112_v55 }
 0x55f   :  { %v2420_v8 = vpop.f32.mrf.mxu3  ;;  %2589 = vmatpush.msra.mxu3 %v4114_v61  ;;  %3541 = vmatmul.msk.f32.vlgmr.msra.gmra.mxu2 %vm324_vm0, %v5584_v20  ;;  %v2392_v36 = vadd.f32 %v2391_v58, %v5571_v53 }
 0x560   :  { %3545 = vmatmul.msk.f32.vlgmr.msra.gmra.mxu3 %vm324_vm0, %v5584_v20  ;;  %v2421_v26 = vadd.f32 %v2420_v8, %v5571_v53 }
 0x565   :  { %3551 = vmatmul.msk.f32.gmra.mxu0 %vm324_vm0, %v5602_v27 }
 0x566   :  { %3555 = vmatmul.msk.f32.gmra.mxu1 %vm324_vm0, %v5602_v27  ;;  %v2394_v3 = vpop.f32.mrf.mxu2 }
 0x567   :  { %v2423_v25 = vpop.f32.mrf.mxu3  ;;  %3542 = vmatmul.msk.f32.gmra.mxu2 %vm324_vm0, %v5593_v13  ;;  %v2395_v18 = vadd.f32 %v2394_v3, %v5567_v39 }
 0x568   :  { %3546 = vmatmul.msk.f32.gmra.mxu3 %vm324_vm0, %v5593_v13  ;;  %v2424_v17 = vadd.f32 %v2423_v25, %v5567_v39  ;;  %v5737_v25 = vld [vmem:[%s5923_s1 + $0x138] sm:$0xff]  ;;  %s4287_s1 = smov [#allocation2]  }
 0x569   :  { %s3227_s30 = sshll.u32 %s4287_s1, 4  ;;  %s3228_s30 = int_to_ptr.vmem [resolvable:$true] %s3227_s30 }
 0x56d   :  { %3552 = vmatmul.msk.f32.gmra.mxu0 %vm324_vm0, %v5615_v59 }
 0x56e   :  { %3556 = vmatmul.msk.f32.gmra.mxu1 %vm324_vm0, %v5615_v59  ;;  %v2397_v51 = vpop.f32.mrf.mxu2 }
 0x56f   :  { %v2398_v22 = vadd.f32 %v2397_v51, %v5565_v44  ;;  %v2426_v21 = vpop.f32.mrf.mxu3  ;;  %3543 = vmatmul.msk.f32.gmra.mxu2 %vm324_vm0, %v5602_v27 }
 0x570   :  { %v2427_v14 = vadd.f32 %v2426_v21, %v5565_v44  ;;  %3547 = vmatmul.msk.f32.gmra.mxu3 %vm324_vm0, %v5602_v27 }
 0x571   :  { %4115 = vtanh.f32 %v2398_v22 }
 0x572   :  { %4117 = vtanh.f32 %v2427_v14 }
 0x573   :  { %4119 = vtanh.f32 %v2395_v18 }
 0x574   :  { %4121 = vtanh.f32 %v2424_v17 }
 0x575   :  { %4123 = vtanh.f32 %v2392_v36 }
 0x576   :  { %4125 = vtanh.f32 %v2421_v26 }
 0x577   :  { %v4116_v39 = vpop.eup %4115  ;;  %4127 = vtanh.f32 %v2389_v24  ;;  %3544 = vmatmul.msk.f32.gmra.mxu2 %vm324_vm0, %v5615_v59 }
 0x578   :  { %v4118_v44 = vpop.eup %4117  ;;  %4129 = vtanh.f32 %v2418_v5  ;;  %3548 = vmatmul.msk.f32.gmra.mxu3 %vm324_vm0, %v5615_v59  ;;  %2689 = vmatpush.msrb.mxu2 %v4116_v39 }
 0x579   :  { %v4120_v53 = vpop.eup %4119  ;;  %2718 = vmatpush.msrb.mxu3 %v4118_v44 }
 0x57a   :  { %v4122_v16 = vpop.eup %4121  ;;  %2690 = vmatpush.msrb.mxu2 %v4120_v53 }
 0x57b   :  { %v4124_v30 = vpop.eup %4123  ;;  %2719 = vmatpush.msrb.mxu3 %v4122_v16 }
 0x57c   :  { %v4126_v57 = vpop.eup %4125  ;;  %2691 = vmatpush.msrb.mxu2 %v4124_v30 }
 0x57d   :  { %v4128_v23 = vpop.eup %4127  ;;  %2720 = vmatpush.msrb.mxu3 %v4126_v57 }
 0x57e   :  { %v4130_v32 = vpop.eup %4129  ;;  %2692 = vmatpush.msrb.mxu2 %v4128_v23 }
 0x57f   :  { %2721 = vmatpush.msrb.mxu3 %v4130_v32  ;;  %3557 = vmatmul.msk.f32.vlgmr.msrb.gmra.mxu2 %vm324_vm0, %v5584_v20 }
 0x580   :  { %3561 = vmatmul.msk.f32.vlgmr.msrb.gmra.mxu3 %vm324_vm0, %v5584_v20 }
 0x587   :  { %3558 = vmatmul.msk.f32.gmra.mxu2 %vm324_vm0, %v5593_v13 }
 0x588   :  { %3562 = vmatmul.msk.f32.gmra.mxu3 %vm324_vm0, %v5593_v13  ;;  %v5691_v13 = vpop.permute.xlu1 %2459 }
 0x58f   :  { %3559 = vmatmul.msk.f32.gmra.mxu2 %vm324_vm0, %v5602_v27 }
 0x590   :  { %3563 = vmatmul.msk.f32.gmra.mxu3 %vm324_vm0, %v5602_v27 }
 0x597   :  { %3560 = vmatmul.msk.f32.gmra.mxu2 %vm324_vm0, %v5615_v59 }
 0x598   :  { %3564 = vmatmul.msk.f32.gmra.mxu3 %vm324_vm0, %v5615_v59 }
 0x5ae   :  { %v2496_v6 = vpop.f32.mrf.mxu0 }
 0x5af   :  { %v2525_v20 = vpop.f32.mrf.mxu1  ;;  %v2497_v9 = vadd.f32 %v2496_v6, %v5700_v15 }
 0x5b0   :  { %v2526_v4 = vadd.f32 %v2525_v20, %v5700_v15 }
 0x5b6   :  { %v2499_v28 = vpop.f32.mrf.mxu0 }
 0x5b7   :  { %v2528_v46 = vpop.f32.mrf.mxu1  ;;  %v2500_v11 = vadd.f32 %v2499_v28, %v5695_v7 }
 0x5b8   :  { %v2529_v42 = vadd.f32 %v2528_v46, %v5695_v7 }
 0x5be   :  { %v2502_v33 = vpop.f32.mrf.mxu0 }
 0x5bf   :  { %v2531_v34 = vpop.f32.mrf.mxu1  ;;  %v2503_v19 = vadd.f32 %v2502_v33, %v5691_v13 }
 0x5c0   :  { %v2532_v59 = vadd.f32 %v2531_v34, %v5691_v13 }
 0x5c6   :  { %v2505_v12 = vpop.f32.mrf.mxu0 }
 0x5c7   :  { %v2506_v27 = vadd.f32 %v2505_v12, %v5689_v35  ;;  %v2534_v47 = vpop.f32.mrf.mxu1 }
 0x5c8   :  { %v2535_v48 = vadd.f32 %v2534_v47, %v5689_v35 }
 0x5c9   :  { %4131 = vtanh.f32 %v2506_v27 }
 0x5ca   :  { %4133 = vtanh.f32 %v2535_v48 }
 0x5cb   :  { %4135 = vtanh.f32 %v2503_v19 }
 0x5cc   :  { %4137 = vtanh.f32 %v2532_v59 }
 0x5cd   :  { %4139 = vtanh.f32 %v2500_v11 }
 0x5ce   :  { %4141 = vtanh.f32 %v2529_v42 }
 0x5cf   :  { %v4132_v0 = vpop.eup %4131  ;;  %4143 = vtanh.f32 %v2497_v9 }
 0x5d0   :  { %v4134_v50 = vpop.eup %4133  ;;  %4145 = vtanh.f32 %v2526_v4  ;;  %2797 = vmatpush.msra.mxu0 %v4132_v0 }
 0x5d1   :  { %v4136_v62 = vpop.eup %4135  ;;  %2826 = vmatpush.msra.mxu1 %v4134_v50 }
 0x5d2   :  { %v4138_v60 = vpop.eup %4137  ;;  %v2628_v40 = vpop.f32.mrf.mxu0  ;;  %2798 = vmatpush.msra.mxu0 %v4136_v62 }
 0x5d3   :  { %v4140_v1 = vpop.eup %4139  ;;  %v2657_v38 = vpop.f32.mrf.mxu1  ;;  %2827 = vmatpush.msra.mxu1 %v4138_v60  ;;  %v2629_v17 = vadd.f32 %v2628_v40, %v5700_v15 }
 0x5d4   :  { %v4142_v63 = vpop.eup %4141  ;;  %2799 = vmatpush.msra.mxu0 %v4140_v1  ;;  %v2658_v14 = vadd.f32 %v2657_v38, %v5700_v15 }
 0x5d5   :  { %v4144_v29 = vpop.eup %4143  ;;  %2828 = vmatpush.msra.mxu1 %v4142_v63 }
 0x5d6   :  { %v4146_v49 = vpop.eup %4145  ;;  %2800 = vmatpush.msra.mxu0 %v4144_v29 }
 0x5d7   :  { %2829 = vmatpush.msra.mxu1 %v4146_v49  ;;  %3573 = vmatmul.msk.f32.vlgmr.msra.gmra.mxu0 %vm324_vm0, %v5708_v43 }
 0x5d8   :  { %3577 = vmatmul.msk.f32.vlgmr.msra.gmra.mxu1 %vm324_vm0, %v5708_v43 }
 0x5da   :  { %v2631_v10 = vpop.f32.mrf.mxu0 }
 0x5db   :  { %v2660_v41 = vpop.f32.mrf.mxu1  ;;  %v2632_v22 = vadd.f32 %v2631_v10, %v5695_v7 }
 0x5dc   :  { %v2661_v21 = vadd.f32 %v2660_v41, %v5695_v7 }
 0x5df   :  { %3574 = vmatmul.msk.f32.gmra.mxu0 %vm324_vm0, %v5717_v52 }
 0x5e0   :  { %3578 = vmatmul.msk.f32.gmra.mxu1 %vm324_vm0, %v5717_v52 }
 0x5e2   :  { %v2562_v54 = vpop.f32.mrf.mxu2  ;;  %v2634_v45 = vpop.f32.mrf.mxu0 }
 0x5e3   :  { %v2591_v2 = vpop.f32.mrf.mxu3  ;;  %v2663_v56 = vpop.f32.mrf.mxu1  ;;  %v2635_v51 = vadd.f32 %v2634_v45, %v5691_v13  ;;  %v2563_v12 = vadd.f32 %v2562_v54, %v5700_v15 }
 0x5e4   :  { %v2664_v18 = vadd.f32 %v2663_v56, %v5691_v13  ;;  %v2592_v19 = vadd.f32 %v2591_v2, %v5700_v15 }
 0x5e7   :  { %3575 = vmatmul.msk.f32.gmra.mxu0 %vm324_vm0, %v5726_v37 }
 0x5e8   :  { %3579 = vmatmul.msk.f32.gmra.mxu1 %vm324_vm0, %v5726_v37 }
 0x5ea   :  { %v2565_v31 = vpop.f32.mrf.mxu2  ;;  %v2637_v55 = vpop.f32.mrf.mxu0 }
 0x5eb   :  { %v2594_v61 = vpop.f32.mrf.mxu3  ;;  %v2638_v58 = vadd.f32 %v2637_v55, %v5689_v35  ;;  %v2666_v8 = vpop.f32.mrf.mxu1  ;;  %v2566_v33 = vadd.f32 %v2565_v31, %v5695_v7 }
 0x5ec   :  { %v2667_v3 = vadd.f32 %v2666_v8, %v5689_v35  ;;  %v2595_v34 = vadd.f32 %v2594_v61, %v5695_v7 }
 0x5ed   :  { %4147 = vtanh.f32 %v2638_v58 }
 0x5ee   :  { %4149 = vtanh.f32 %v2667_v3 }
 0x5ef   :  { %3576 = vmatmul.msk.f32.gmra.mxu0 %vm324_vm0, %v5737_v25  ;;  %4151 = vtanh.f32 %v2635_v51  ;;  %v5813_v51 = vpop.permute.xlu1 %2755 }
 0x5f0   :  { %3580 = vmatmul.msk.f32.gmra.mxu1 %vm324_vm0, %v5737_v25  ;;  %4153 = vtanh.f32 %v2664_v18 }
 0x5f1   :  { %4155 = vtanh.f32 %v2632_v22  ;;  %v5815_v22 = vpop.permute.xlu2 %2760 }
 0x5f2   :  { %v2568_v36 = vpop.f32.mrf.mxu2  ;;  %4157 = vtanh.f32 %v2661_v21 }
 0x5f3   :  { %v2597_v26 = vpop.f32.mrf.mxu3  ;;  %v4148_v24 = vpop.eup %4147  ;;  %4159 = vtanh.f32 %v2629_v17  ;;  %v2569_v23 = vadd.f32 %v2568_v36, %v5691_v13 }
 0x5f4   :  { %v4150_v5 = vpop.eup %4149  ;;  %4161 = vtanh.f32 %v2658_v14  ;;  %2929 = vmatpush.msrb.mxu0 %v4148_v24  ;;  %v2598_v28 = vadd.f32 %v2597_v26, %v5691_v13  ;;  %v5820_v17 = vpop.permute.xlu0 %2765 }
 0x5f5   :  { %v4152_v39 = vpop.eup %4151  ;;  %2958 = vmatpush.msrb.mxu1 %v4150_v5 }
 0x5f6   :  { %v4154_v44 = vpop.eup %4153  ;;  %2930 = vmatpush.msrb.mxu0 %v4152_v39 }
 0x5f7   :  { %v4156_v53 = vpop.eup %4155  ;;  %2959 = vmatpush.msrb.mxu1 %v4154_v44  ;;  %v5825_v5 = vpop.permute.xlu1 %2770 }
 0x5f8   :  { %v4158_v16 = vpop.eup %4157  ;;  %2931 = vmatpush.msrb.mxu0 %v4156_v53 }
 0x5f9   :  { %v4160_v57 = vpop.eup %4159  ;;  %2960 = vmatpush.msrb.mxu1 %v4158_v16  ;;  %v5827_v44 = vpop.permute.xlu2 %3058 }
 0x5fa   :  { %v2571_v30 = vpop.f32.mrf.mxu2  ;;  %v4162_v20 = vpop.eup %4161  ;;  %2932 = vmatpush.msrb.mxu0 %v4160_v57 }
 0x5fb   :  { %v2572_v32 = vadd.f32 %v2571_v30, %v5689_v35  ;;  %v2600_v6 = vpop.f32.mrf.mxu3  ;;  %2961 = vmatpush.msrb.mxu1 %v4162_v20  ;;  %3589 = vmatmul.msk.f32.vlgmr.msrb.gmra.mxu0 %vm324_vm0, %v5708_v43 }
 0x5fc   :  { %v2601_v46 = vadd.f32 %v2600_v6, %v5689_v35  ;;  %3593 = vmatmul.msk.f32.vlgmr.msrb.gmra.mxu1 %vm324_vm0, %v5708_v43 }
 0x5fd   :  { %4163 = vtanh.f32 %v2572_v32 }
 0x5fe   :  { %4165 = vtanh.f32 %v2601_v46 }
 0x5ff   :  { %4167 = vtanh.f32 %v2569_v23 }
 0x600   :  { %4169 = vtanh.f32 %v2598_v28  ;;  %v5831_v28 = vpop.permute.xlu0 %3063 }
 0x601   :  { %4171 = vtanh.f32 %v2566_v33 }
 0x602   :  { %4173 = vtanh.f32 %v2595_v34  ;;  %v2694_v27 = vpop.f32.mrf.mxu2  ;;  %v5834_v34 = vpop.permute.xlu1 %3068 }
 0x603   :  { %v4164_v47 = vpop.eup %4163  ;;  %4175 = vtanh.f32 %v2563_v12  ;;  %v2723_v59 = vpop.f32.mrf.mxu3  ;;  %3590 = vmatmul.msk.f32.gmra.mxu0 %vm324_vm0, %v5717_v52  ;;  %v2695_v2 = vadd.f32 %v2694_v27, %v5700_v15 }
 0x604   :  { %v4166_v48 = vpop.eup %4165  ;;  %4177 = vtanh.f32 %v2592_v19  ;;  %2863 = vmatpush.msra.mxu2 %v4164_v47  ;;  %3594 = vmatmul.msk.f32.gmra.mxu1 %vm324_vm0, %v5717_v52  ;;  %v2724_v56 = vadd.f32 %v2723_v59, %v5700_v15 }
 0x605   :  { %v4168_v11 = vpop.eup %4167  ;;  %2892 = vmatpush.msra.mxu3 %v4166_v48 }
 0x606   :  { %v4170_v42 = vpop.eup %4169  ;;  %2864 = vmatpush.msra.mxu2 %v4168_v11 }
 0x607   :  { %v4172_v9 = vpop.eup %4171  ;;  %2893 = vmatpush.msra.mxu3 %v4170_v42  ;;  %v5841_v42 = vpop.permute.xlu2 %3073 }
 0x608   :  { %v4174_v4 = vpop.eup %4173  ;;  %2865 = vmatpush.msra.mxu2 %v4172_v9 }
 0x609   :  { %v4176_v0 = vpop.eup %4175  ;;  %2894 = vmatpush.msra.mxu3 %v4174_v4 }
 0x60a   :  { %v4178_v50 = vpop.eup %4177  ;;  %v2697_v62 = vpop.f32.mrf.mxu2  ;;  %2866 = vmatpush.msra.mxu2 %v4176_v0 }
 0x60b   :  { %v2726_v60 = vpop.f32.mrf.mxu3  ;;  %2895 = vmatpush.msra.mxu3 %v4178_v50  ;;  %3581 = vmatmul.msk.f32.vlgmr.msra.gmra.mxu2 %vm324_vm0, %v5708_v43  ;;  %v2698_v54 = vadd.f32 %v2697_v62, %v5695_v7 }
 0x60c   :  { %3585 = vmatmul.msk.f32.vlgmr.msra.gmra.mxu3 %vm324_vm0, %v5708_v43  ;;  %3591 = vmatmul.msk.f32.gmra.mxu0 %vm324_vm0, %v5726_v37  ;;  %v2727_v45 = vadd.f32 %v2726_v60, %v5695_v7 }
 0x60d   :  { %3595 = vmatmul.msk.f32.gmra.mxu1 %vm324_vm0, %v5726_v37 }
 0x612   :  { %v2700_v40 = vpop.f32.mrf.mxu2 }
 0x613   :  { %v2729_v1 = vpop.f32.mrf.mxu3  ;;  %3582 = vmatmul.msk.f32.gmra.mxu2 %vm324_vm0, %v5717_v52  ;;  %v2701_v63 = vadd.f32 %v2700_v40, %v5691_v13 }
 0x614   :  { %3586 = vmatmul.msk.f32.gmra.mxu3 %vm324_vm0, %v5717_v52  ;;  %3592 = vmatmul.msk.f32.gmra.mxu0 %vm324_vm0, %v5737_v25  ;;  %v2730_v10 = vadd.f32 %v2729_v1, %v5691_v13 }
 0x615   :  { %3596 = vmatmul.msk.f32.gmra.mxu1 %vm324_vm0, %v5737_v25 }
 0x61a   :  { %v2703_v38 = vpop.f32.mrf.mxu2 }
 0x61b   :  { %v2704_v29 = vadd.f32 %v2703_v38, %v5689_v35  ;;  %v2732_v49 = vpop.f32.mrf.mxu3  ;;  %3583 = vmatmul.msk.f32.gmra.mxu2 %vm324_vm0, %v5726_v37 }
 0x61c   :  { %v2733_v41 = vadd.f32 %v2732_v49, %v5689_v35  ;;  %3587 = vmatmul.msk.f32.gmra.mxu3 %vm324_vm0, %v5726_v37 }
 0x61d   :  { %4179 = vtanh.f32 %v2704_v29 }
 0x61e   :  { %4181 = vtanh.f32 %v2733_v41 }
 0x61f   :  { %4183 = vtanh.f32 %v2701_v63 }
 0x620   :  { %4185 = vtanh.f32 %v2730_v10 }
 0x621   :  { %4187 = vtanh.f32 %v2698_v54 }
 0x622   :  { %4189 = vtanh.f32 %v2727_v45 }
 0x623   :  { %v4180_v13 = vpop.eup %4179  ;;  %4191 = vtanh.f32 %v2695_v2  ;;  %3584 = vmatmul.msk.f32.gmra.mxu2 %vm324_vm0, %v5737_v25 }
 0x624   :  { %v4182_v35 = vpop.eup %4181  ;;  %4193 = vtanh.f32 %v2724_v56  ;;  %3588 = vmatmul.msk.f32.gmra.mxu3 %vm324_vm0, %v5737_v25  ;;  %2995 = vmatpush.msrb.mxu2 %v4180_v13 }
 0x625   :  { %v4184_v7 = vpop.eup %4183  ;;  %3024 = vmatpush.msrb.mxu3 %v4182_v35 }
 0x626   :  { %v4186_v31 = vpop.eup %4185  ;;  %2996 = vmatpush.msrb.mxu2 %v4184_v7 }
 0x627   :  { %v4188_v55 = vpop.eup %4187  ;;  %3025 = vmatpush.msrb.mxu3 %v4186_v31 }
 0x628   :  { %v4190_v15 = vpop.eup %4189  ;;  %2997 = vmatpush.msrb.mxu2 %v4188_v55 }
 0x629   :  { %v4192_v61 = vpop.eup %4191  ;;  %3026 = vmatpush.msrb.mxu3 %v4190_v15 }
 0x62a   :  { %v4194_v58 = vpop.eup %4193  ;;  %2998 = vmatpush.msrb.mxu2 %v4192_v61  ;;  %v3115_v61 = vlaneseq }
 0x62b   :  { %3027 = vmatpush.msrb.mxu3 %v4194_v58  ;;  %3597 = vmatmul.msk.f32.vlgmr.msrb.gmra.mxu2 %vm324_vm0, %v5708_v43  ;;  %v5845_v58 = vpop.permute.xlu0 %3104 }
 0x62c   :  { %3601 = vmatmul.msk.f32.vlgmr.msrb.gmra.mxu3 %vm324_vm0, %v5708_v43  ;;  %vm5852_vm2 = vcmp.lt.s32.totalorder %v3115_v61, 256 }
 0x633   :  { %3598 = vmatmul.msk.f32.gmra.mxu2 %vm324_vm0, %v5717_v52 }
 0x634   :  { %3602 = vmatmul.msk.f32.gmra.mxu3 %vm324_vm0, %v5717_v52 }
 0x63b   :  { %3599 = vmatmul.msk.f32.gmra.mxu2 %vm324_vm0, %v5726_v37 }
 0x63c   :  { %3603 = vmatmul.msk.f32.gmra.mxu3 %vm324_vm0, %v5726_v37 }
 0x643   :  { %3600 = vmatmul.msk.f32.gmra.mxu2 %vm324_vm0, %v5737_v25 }
 0x644   :  { %3604 = vmatmul.msk.f32.gmra.mxu3 %vm324_vm0, %v5737_v25 }
 0x654   :  { %v2802_v8 = vpop.f32.mrf.mxu0 }
 0x655   :  { %v2831_v43 = vpop.f32.mrf.mxu1  ;;  %v2803_v52 = vadd.f32 %v2802_v8, %v5813_v51 }
 0x656   :  { %v2832_v21 = vadd.f32 %v2831_v43, %v5813_v51 }
 0x657   :  { %4195 = vtanh.f32 %v2803_v52 }
 0x658   :  { %4197 = vtanh.f32 %v2832_v21 }
 0x65c   :  { %v2805_v3 = vpop.f32.mrf.mxu0 }
 0x65d   :  { %v2834_v18 = vpop.f32.mrf.mxu1  ;;  %v2806_v37 = vadd.f32 %v2805_v3, %v5815_v22  ;;  %v4196_v39 = vpop.eup %4195 }
 0x65e   :  { %v2835_v14 = vadd.f32 %v2834_v18, %v5815_v22  ;;  %v4198_v53 = vpop.eup %4197  ;;  %v3076_v19 = vmul.f32 %v4196_v39, %v5827_v44 }
 0x65f   :  { %4199 = vtanh.f32 %v2806_v37  ;;  %v3077_v47 = vmul.f32 %v4198_v53, %v5827_v44 }
 0x660   :  { %4201 = vtanh.f32 %v2835_v14 }
 0x664   :  { %v2808_v36 = vpop.f32.mrf.mxu0 }
 0x665   :  { %v2809_v25 = vadd.f32 %v2808_v36, %v5820_v17  ;;  %v2837_v26 = vpop.f32.mrf.mxu1  ;;  %v4200_v30 = vpop.eup %4199 }
 0x666   :  { %v2838_v24 = vadd.f32 %v2837_v26, %v5820_v17  ;;  %v4202_v32 = vpop.eup %4201  ;;  %v3078_v33 = vmul.f32 %v4200_v30, %v5831_v28 }
 0x667   :  { %4203 = vtanh.f32 %v2809_v25  ;;  %v3079_v12 = vmul.f32 %v4202_v32, %v5831_v28 }
 0x668   :  { %4205 = vtanh.f32 %v2838_v24  ;;  %v3084_v48 = vadd.f32 %v3078_v33, %v3076_v19 }
 0x669   :  { %v3093_v9 = vadd.f32 %v3079_v12, %v3077_v47 }
 0x66c   :  { %v2811_v16 = vpop.f32.mrf.mxu0 }
 0x66d   :  { %v2812_v57 = vadd.f32 %v2811_v16, %v5825_v5  ;;  %v2840_v23 = vpop.f32.mrf.mxu1  ;;  %v4204_v20 = vpop.eup %4203 }
 0x66e   :  { %v2841_v6 = vadd.f32 %v2840_v23, %v5825_v5  ;;  %v4206_v46 = vpop.eup %4205  ;;  %v3080_v27 = vmul.f32 %v4204_v20, %v5834_v34 }
 0x66f   :  { %4207 = vtanh.f32 %v2812_v57  ;;  %v3081_v59 = vmul.f32 %v4206_v46, %v5834_v34 }
 0x670   :  { %4209 = vtanh.f32 %v2841_v6  ;;  %v3085_v0 = vadd.f32 %v3084_v48, %v3080_v27 }
 0x671   :  { %v3094_v62 = vadd.f32 %v3093_v9, %v3081_v59 }
 0x675   :  { %v4208_v11 = vpop.eup %4207 }
 0x676   :  { %v4210_v4 = vpop.eup %4209  ;;  %v3082_v50 = vmul.f32 %v4208_v11, %v5841_v42 }
 0x677   :  { %v3083_v60 = vmul.f32 %v4210_v4, %v5841_v42 }
 0x678   :  { %v3086_v40 = vadd.f32 %v3085_v0, %v3082_v50  ;;  %v2934_v63 = vpop.f32.mrf.mxu0 }
 0x679   :  { %v3095_v1 = vadd.f32 %v3094_v62, %v3083_v60  ;;  %v2963_v49 = vpop.f32.mrf.mxu1  ;;  %v2935_v8 = vadd.f32 %v2934_v63, %v5813_v51 }
 0x67a   :  { %v3087_v38 = vrot.slane %v3086_v40, 4  ;;  %v2964_v3 = vadd.f32 %v2963_v49, %v5813_v51 }
 0x67b   :  { %v3096_v29 = vrot.slane %v3095_v1, 4  ;;  %4211 = vtanh.f32 %v2935_v8 }
 0x67c   :  { %v3088_v10 = vadd.f32 %v3087_v38, %v3086_v40  ;;  %4213 = vtanh.f32 %v2964_v3 }
 0x67d   :  { %v3097_v41 = vadd.f32 %v3096_v29, %v3095_v1 }
 0x67e   :  { %v3089_v54 = vrot.slane %v3088_v10, 2 }
 0x67f   :  { %v3098_v45 = vrot.slane %v3097_v41, 2 }
 0x680   :  { %v3090_v2 = vadd.f32 %v3089_v54, %v3088_v10  ;;  %v2937_v35 = vpop.f32.mrf.mxu0 }
 0x681   :  { %v3099_v56 = vadd.f32 %v3098_v45, %v3097_v41  ;;  %v2966_v31 = vpop.f32.mrf.mxu1  ;;  %v2938_v18 = vadd.f32 %v2937_v35, %v5815_v22  ;;  %v4212_v30 = vpop.eup %4211 }
 0x682   :  { %v3091_v13 = vrot.slane %v3090_v2, 1  ;;  %v2967_v14 = vadd.f32 %v2966_v31, %v5815_v22  ;;  %v4214_v57 = vpop.eup %4213  ;;  %v3154_v11 = vmul.f32 %v4212_v30, %v5827_v44 }
 0x683   :  { %v3100_v7 = vrot.slane %v3099_v56, 1  ;;  %4215 = vtanh.f32 %v2938_v18  ;;  %v3155_v4 = vmul.f32 %v4214_v57, %v5827_v44 }
 0x684   :  { %v3092_v55 = vadd.f32 %v3091_v13, %v3090_v2  ;;  %4217 = vtanh.f32 %v2967_v14 }
 0x685   :  { %v3101_v15 = vadd.f32 %v3100_v7, %v3099_v56 }
 0x686   :  { %v3107_v52 = vadd.f32 %v5845_v58, %v3092_v55 }
 0x687   :  { %v3108_v43 = vadd.f32 %v5845_v58, %v3101_v15 }
 0x689   :  { %v3111_v21 = vrot.slane %v3108_v43, 7  ;;  %v2940_v36 = vpop.f32.mrf.mxu0  ;;  %v4216_v32 = vpop.eup %4215 }
 0x68a   :  { %v2941_v25 = vadd.f32 %v2940_v36, %v5820_v17  ;;  %v2969_v26 = vpop.f32.mrf.mxu1  ;;  %v4218_v46 = vpop.eup %4217  ;;  %v3156_v27 = vmul.f32 %v4216_v32, %v5831_v28 }
 0x68b   :  { %v3113_v24 = vsel %vm3112_vm1, %v3107_v52, %v3111_v21  ;;  %v2970_v39 = vadd.f32 %v2969_v26, %v5820_v17  ;;  %v3157_v59 = vmul.f32 %v4218_v46, %v5831_v28 }
 0x68c   :  { %3119 = vst.msk [vmem:[#allocation2] sm:$0x3] %vm5852_vm2, %v3113_v24  ;;  %4219 = vtanh.f32 %v2941_v25  ;;  %v3162_v50 = vadd.f32 %v3156_v27, %v3154_v11 }
 0x68d   :  { %4221 = vtanh.f32 %v2970_v39  ;;  %v3171_v60 = vadd.f32 %v3157_v59, %v3155_v4 }
 0x68e   :  { %v2868_v53 = vpop.f32.mrf.mxu2 }
 0x68f   :  { %v2897_v16 = vpop.f32.mrf.mxu3  ;;  %v2869_v40 = vadd.f32 %v2868_v53, %v5813_v51 }
 0x690   :  { %v2898_v63 = vadd.f32 %v2897_v16, %v5813_v51 }
 0x691   :  { %v2943_v23 = vpop.f32.mrf.mxu0 }
 0x692   :  { %v2944_v6 = vadd.f32 %v2943_v23, %v5825_v5  ;;  %v2972_v20 = vpop.f32.mrf.mxu1  ;;  %v4220_v12 = vpop.eup %4219 }
 0x693   :  { %v2973_v33 = vadd.f32 %v2972_v20, %v5825_v5  ;;  %v4222_v19 = vpop.eup %4221  ;;  %v3158_v9 = vmul.f32 %v4220_v12, %v5834_v34 }
 0x694   :  { %4223 = vtanh.f32 %v2944_v6  ;;  %v3159_v0 = vmul.f32 %v4222_v19, %v5834_v34 }
 0x695   :  { %4225 = vtanh.f32 %v2973_v33  ;;  %v3163_v38 = vadd.f32 %v3162_v50, %v3158_v9 }
 0x696   :  { %v2871_v47 = vpop.f32.mrf.mxu2  ;;  %v3172_v49 = vadd.f32 %v3171_v60, %v3159_v0  ;;  %4227 = vtanh.f32 %v2869_v40 }
 0x697   :  { %v2900_v48 = vpop.f32.mrf.mxu3  ;;  %v2872_v41 = vadd.f32 %v2871_v47, %v5815_v22  ;;  %4229 = vtanh.f32 %v2898_v63 }
 0x698   :  { %v2901_v45 = vadd.f32 %v2900_v48, %v5815_v22 }
 0x699   :  { %4231 = vtanh.f32 %v2872_v41 }
 0x69a   :  { %v4224_v62 = vpop.eup %4223  ;;  %4233 = vtanh.f32 %v2901_v45 }
 0x69b   :  { %v4226_v1 = vpop.eup %4225  ;;  %v3160_v29 = vmul.f32 %v4224_v62, %v5841_v42 }
 0x69c   :  { %v3161_v10 = vmul.f32 %v4226_v1, %v5841_v42  ;;  %v4228_v43 = vpop.eup %4227 }
 0x69d   :  { %v3164_v54 = vadd.f32 %v3163_v38, %v3160_v29  ;;  %v4230_v18 = vpop.eup %4229  ;;  %v3120_v46 = vmul.f32 %v4228_v43, %v5827_v44 }
 0x69e   :  { %v2874_v2 = vpop.f32.mrf.mxu2  ;;  %v3173_v56 = vadd.f32 %v3172_v49, %v3161_v10  ;;  %v3121_v12 = vmul.f32 %v4230_v18, %v5827_v44 }
 0x69f   :  { %v2875_v13 = vadd.f32 %v2874_v2, %v5820_v17  ;;  %v2903_v35 = vpop.f32.mrf.mxu3  ;;  %v3165_v7 = vrot.slane %v3164_v54, 4  ;;  %v4232_v14 = vpop.eup %4231 }
 0x6a0   :  { %v2904_v31 = vadd.f32 %v2903_v35, %v5820_v17  ;;  %v3174_v55 = vrot.slane %v3173_v56, 4  ;;  %v4234_v24 = vpop.eup %4233  ;;  %v3122_v23 = vmul.f32 %v4232_v14, %v5831_v28 }
 0x6a1   :  { %v3166_v15 = vadd.f32 %v3165_v7, %v3164_v54  ;;  %4235 = vtanh.f32 %v2875_v13  ;;  %v3123_v20 = vmul.f32 %v4234_v24, %v5831_v28 }
 0x6a2   :  { %v3175_v61 = vadd.f32 %v3174_v55, %v3173_v56  ;;  %4237 = vtanh.f32 %v2904_v31  ;;  %v3128_v47 = vadd.f32 %v3122_v23, %v3120_v46 }
 0x6a3   :  { %v3167_v8 = vrot.slane %v3166_v15, 2  ;;  %v3137_v11 = vadd.f32 %v3123_v20, %v3121_v12 }
 0x6a4   :  { %v3176_v3 = vrot.slane %v3175_v61, 2 }
 0x6a5   :  { %v3168_v52 = vadd.f32 %v3167_v8, %v3166_v15 }
 0x6a6   :  { %v2877_v21 = vpop.f32.mrf.mxu2  ;;  %v3177_v36 = vadd.f32 %v3176_v3, %v3175_v61 }
 0x6a7   :  { %v2878_v25 = vadd.f32 %v2877_v21, %v5825_v5  ;;  %v2906_v26 = vpop.f32.mrf.mxu3  ;;  %v3169_v39 = vrot.slane %v3168_v52, 1  ;;  %v4236_v16 = vpop.eup %4235 }
 0x6a8   :  { %v2907_v53 = vadd.f32 %v2906_v26, %v5825_v5  ;;  %v3178_v30 = vrot.slane %v3177_v36, 1  ;;  %v4238_v57 = vpop.eup %4237  ;;  %v3124_v33 = vmul.f32 %v4236_v16, %v5834_v34 }
 0x6a9   :  { %4239 = vtanh.f32 %v2878_v25  ;;  %v3170_v32 = vadd.f32 %v3169_v39, %v3168_v52  ;;  %v3125_v19 = vmul.f32 %v4238_v57, %v5834_v34 }
 0x6aa   :  { %4241 = vtanh.f32 %v2907_v53  ;;  %v3179_v6 = vadd.f32 %v3178_v30, %v3177_v36  ;;  %v3129_v62 = vadd.f32 %v3128_v47, %v3124_v33 }
 0x6ab   :  { %v3180_v4 = vadd.f32 %v3170_v32, %v5845_v58  ;;  %v3138_v40 = vadd.f32 %v3137_v11, %v3125_v19 }
 0x6ac   :  { %v3181_v27 = vadd.f32 %v3179_v6, %v5845_v58 }
 0x6ae   :  { %v3000_v59 = vpop.f32.mrf.mxu2  ;;  %v3184_v0 = vrot.slane %v3181_v27, 7 }
 0x6af   :  { %v4240_v48 = vpop.eup %4239  ;;  %v3029_v9 = vpop.f32.mrf.mxu3  ;;  %v3001_v31 = vadd.f32 %v3000_v59, %v5813_v51 }
 0x6b0   :  { %v4242_v50 = vpop.eup %4241  ;;  %v3126_v60 = vmul.f32 %v4240_v48, %v5841_v42  ;;  %v3185_v38 = vsel %vm3112_vm1, %v3180_v4, %v3184_v0  ;;  %v3030_v15 = vadd.f32 %v3029_v9, %v5813_v51 }
 0x6b1   :  { %v3127_v1 = vmul.f32 %v4242_v50, %v5841_v42  ;;  %3187 = vst.msk [vmem:[#allocation2 + $0x4] sm:$0x3] %vm5852_vm2, %v3185_v38  ;;  %4243 = vtanh.f32 %v3001_v31 }
 0x6b2   :  { %v3130_v63 = vadd.f32 %v3129_v62, %v3126_v60  ;;  %4245 = vtanh.f32 %v3030_v15 }
 0x6b3   :  { %v3139_v29 = vadd.f32 %v3138_v40, %v3127_v1 }
 0x6b4   :  { %v3131_v49 = vrot.slane %v3130_v63, 4 }
 0x6b5   :  { %v3140_v10 = vrot.slane %v3139_v29, 4 }
 0x6b6   :  { %v3132_v41 = vadd.f32 %v3131_v49, %v3130_v63  ;;  %v3003_v54 = vpop.f32.mrf.mxu2 }
 0x6b7   :  { %v3141_v45 = vadd.f32 %v3140_v10, %v3139_v29  ;;  %v3032_v2 = vpop.f32.mrf.mxu3  ;;  %v3004_v8 = vadd.f32 %v3003_v54, %v5815_v22 }
 0x6b8   :  { %v3133_v56 = vrot.slane %v3132_v41, 2  ;;  %v3033_v43 = vadd.f32 %v3032_v2, %v5815_v22  ;;  %v4244_v22 = vpop.eup %4243 }
 0x6b9   :  { %v3142_v13 = vrot.slane %v3141_v45, 2  ;;  %4247 = vtanh.f32 %v3004_v8  ;;  %v4246_v39 = vpop.eup %4245  ;;  %v3188_v33 = vmul.f32 %v4244_v22, %v5827_v44 }
 0x6ba   :  { %v3134_v35 = vadd.f32 %v3133_v56, %v3132_v41  ;;  %4249 = vtanh.f32 %v3033_v43  ;;  %v3189_v19 = vmul.f32 %v4246_v39, %v5827_v44 }
 0x6bb   :  { %v3143_v7 = vadd.f32 %v3142_v13, %v3141_v45 }
 0x6bc   :  { %v3135_v55 = vrot.slane %v3134_v35, 1 }
 0x6bd   :  { %v3144_v61 = vrot.slane %v3143_v7, 1 }
 0x6be   :  { %v3006_v3 = vpop.f32.mrf.mxu2  ;;  %v3136_v18 = vadd.f32 %v3135_v55, %v3134_v35 }
 0x6bf   :  { %v3145_v52 = vadd.f32 %v3144_v61, %v3143_v7  ;;  %v3007_v21 = vadd.f32 %v3006_v3, %v5820_v17  ;;  %v3035_v14 = vpop.f32.mrf.mxu3  ;;  %v4248_v16 = vpop.eup %4247 }
 0x6c0   :  { %v3036_v36 = vadd.f32 %v3035_v14, %v5820_v17  ;;  %v3146_v51 = vadd.f32 %v3136_v18, %v5845_v58  ;;  %v4250_v57 = vpop.eup %4249  ;;  %v3190_v20 = vmul.f32 %v4248_v16, %v5831_v28 }
 0x6c1   :  { %v3147_v25 = vadd.f32 %v3145_v52, %v5845_v58  ;;  %4251 = vtanh.f32 %v3007_v21  ;;  %v3191_v46 = vmul.f32 %v4250_v57, %v5831_v28 }
 0x6c2   :  { %4253 = vtanh.f32 %v3036_v36  ;;  %v3196_v47 = vadd.f32 %v3190_v20, %v3188_v33 }
 0x6c3   :  { %v3150_v26 = vrot.slane %v3147_v25, 7  ;;  %v3205_v48 = vadd.f32 %v3191_v46, %v3189_v19 }
 0x6c5   :  { %v3151_v24 = vsel %vm3112_vm1, %v3146_v51, %v3150_v26 }
 0x6c6   :  { %v3009_v53 = vpop.f32.mrf.mxu2  ;;  %3153 = vst.msk [vmem:[#allocation2 + $0x2] sm:$0x3] %vm5852_vm2, %v3151_v24 }
 0x6c7   :  { %v3010_v17 = vadd.f32 %v3009_v53, %v5825_v5  ;;  %v3038_v30 = vpop.f32.mrf.mxu3  ;;  %v4252_v32 = vpop.eup %4251 }
 0x6c8   :  { %v3039_v23 = vadd.f32 %v3038_v30, %v5825_v5  ;;  %v4254_v6 = vpop.eup %4253  ;;  %v3192_v12 = vmul.f32 %v4252_v32, %v5834_v34 }
 0x6c9   :  { %4255 = vtanh.f32 %v3010_v17  ;;  %v3193_v27 = vmul.f32 %v4254_v6, %v5834_v34 }
 0x6ca   :  { %4257 = vtanh.f32 %v3039_v23  ;;  %v3197_v11 = vadd.f32 %v3196_v47, %v3192_v12 }
 0x6cb   :  { %v3206_v4 = vadd.f32 %v3205_v48, %v3193_v27 }
 0x6cf   :  { %v4256_v59 = vpop.eup %4255 }
 0x6d0   :  { %v4258_v5 = vpop.eup %4257  ;;  %v3194_v9 = vmul.f32 %v4256_v59, %v5841_v42 }
 0x6d1   :  { %v3195_v0 = vmul.f32 %v4258_v5, %v5841_v42 }
 0x6d2   :  { %v3198_v50 = vadd.f32 %v3197_v11, %v3194_v9 }
 0x6d3   :  { %v3207_v28 = vadd.f32 %v3206_v4, %v3195_v0 }
 0x6d4   :  { %v3199_v62 = vrot.slane %v3198_v50, 4 }
 0x6d5   :  { %v3208_v60 = vrot.slane %v3207_v28, 4 }
 0x6d6   :  { %v3200_v40 = vadd.f32 %v3199_v62, %v3198_v50 }
 0x6d7   :  { %v3209_v1 = vadd.f32 %v3208_v60, %v3207_v28 }
 0x6d8   :  { %v3201_v38 = vrot.slane %v3200_v40, 2 }
 0x6d9   :  { %v3210_v44 = vrot.slane %v3209_v1, 2 }
 0x6da   :  { %v3202_v63 = vadd.f32 %v3201_v38, %v3200_v40 }
 0x6db   :  { %v3211_v34 = vadd.f32 %v3210_v44, %v3209_v1 }
 0x6dc   :  { %v3203_v29 = vrot.slane %v3202_v63, 1 }
 0x6dd   :  { %v3212_v49 = vrot.slane %v3211_v34, 1 }
 0x6de   :  { %v3204_v10 = vadd.f32 %v3203_v29, %v3202_v63 }
 0x6df   :  { %v3213_v41 = vadd.f32 %v3212_v49, %v3211_v34 }
 0x6e0   :  { %v3214_v42 = vadd.f32 %v3204_v10, %v5845_v58 }
 0x6e1   :  { %v3215_v54 = vadd.f32 %v3213_v41, %v5845_v58 }
 0x6e3   :  { %v3218_v45 = vrot.slane %v3215_v54, 7 }
 0x6e5   :  { %v3219_v2 = vsel %vm3112_vm1, %v3214_v42, %v3218_v45 }
 0x6e6   :  { %3221 = vst.msk [vmem:[#allocation2 + $0x6] sm:$0x3] %vm5852_vm2, %v3219_v2 }
 0x6e7   :  { %3232 = dma.vmem_to_hbm [thread:$0]  %s3228_s30, 128, %s3230_s5, [#allocation3]  }
 0x6e8   :  { %4283 = dma.done.wait [#allocation3], 128  }
 0x6e9   :  { %4284 = vsyncadd [#allocation3], 4294967168 }
 0x6ea   :  { %3237 = vsyncpa [#allocation3], 1 }

</bundles_post_ra>
